<compile_context>
chip_gen: v7x
topology: tpu7x:2x2x1
jax: 0.10.0
libtpu: 0.0.40
codegen_flags: <defaults>
</compile_context>

<pallas_src>
import functools

import jax
import jax.numpy as jnp
from jax.experimental import pallas as pl
from jax.experimental.pallas import tpu as pltpu


# ----------------------- fused whole-network kernel (grid over layers) -----------------------
def _transformer_kernel(x_ref, cvec_ref, pww_ref, pwb_ref, wo_ref, dvec_ref,
                        w1_ref, b1_ref, w2_ref,
                        o_ref, x_scr, pad_scr,
                        *, B, H, W, heads, dim_head):
    layer = pl.program_id(0)
    M, dim = x_ref.shape
    N = H * W
    inner = heads * dim_head
    C3 = 3 * dim
    scale = float(dim_head) ** -0.5

    # layer-0 init: load activation carry, zero the conv halo once (interior is rewritten below)
    @pl.when(layer == 0)
    def _():
        x_scr[...] = x_ref[...].astype(jnp.float32)
        pad_scr[...] = jnp.zeros_like(pad_scr)

    x = x_scr[...]                                            # (M, dim) f32 carry

    dvec = dvec_ref[...]                                      # (6, dim) f32
    ln1_g, ln1_b = dvec[0:1], dvec[1:2]
    bo = dvec[2:3]
    ln2_g, ln2_b = dvec[3:4], dvec[4:5]
    b2 = dvec[5:6]

    # ======================= attention block =======================
    # PreNorm: LayerNorm over channels (f32 stats)
    mu = jnp.mean(x, axis=-1, keepdims=True)
    var = jnp.mean(jnp.square(x - mu), axis=-1, keepdims=True)
    xn = (x - mu) * jax.lax.rsqrt(var + 1e-5) * ln1_g + ln1_b

    # stacked q/k/v SepConv2d: replicate channels to 3*dim so depthwise+BN+pointwise run once
    xn3 = jnp.concatenate([xn, xn, xn], axis=-1)              # (M, 3*dim)
    pad_scr[:, 1:H + 1, 1:W + 1, :] = xn3.reshape(B, H, W, C3)

    cvec = cvec_ref[...]                                      # (12, 3*dim) f32
    acc = jnp.zeros((M, C3), jnp.float32)
    for t in range(9):                                        # depthwise 3x3 taps (shared halo)
        ki, kj = divmod(t, 3)
        tap = pad_scr[:, ki:ki + H, kj:kj + W, :].reshape(M, C3)
        acc = acc + tap * cvec[t:t + 1]
    acc = acc + cvec[9:10]                                    # depthwise bias

    # BatchNorm2d with training-mode batch statistics over (B, H, W)
    bm = jnp.mean(acc, axis=0, keepdims=True)
    bv = jnp.mean(jnp.square(acc - bm), axis=0, keepdims=True)
    nrm = (acc - bm) * jax.lax.rsqrt(bv + 1e-5) * cvec[10:11] + cvec[11:12]

    # pointwise 1x1 conv for q/k/v as ONE block-diagonal matmul (bf16 MXU, f32 accumulate)
    qkv = jnp.dot(nrm.astype(jnp.bfloat16), pww_ref[...],
                  preferred_element_type=jnp.float32) + pwb_ref[...]      # (M, 3*inner)

    q3 = (qkv[:, 0:inner] * scale).reshape(B, N, inner)       # softmax scale folded into q
    k3 = qkv[:, inner:2 * inner].reshape(B, N, inner)
    v3 = qkv[:, 2 * inner:3 * inner].reshape(B, N, inner)

    # multi-head attention: batched over B, heads unrolled, exact softmax normalization
    outs = []
    for h in range(heads):
        sl = slice(h * dim_head, (h + 1) * dim_head)
        qh = q3[:, :, sl].astype(jnp.bfloat16)
        kh = k3[:, :, sl].astype(jnp.bfloat16)
        vh = v3[:, :, sl].astype(jnp.bfloat16)
        s = jnp.einsum('bqd,bkd->bqk', qh, kh,
                       preferred_element_type=jnp.float32)                # (B, N, N)
        s = s - jnp.max(s, axis=-1, keepdims=True)
        p = jnp.exp(s)
        p = p * (1.0 / jnp.sum(p, axis=-1, keepdims=True))
        outs.append(jnp.einsum('bqk,bkd->bqd', p.astype(jnp.bfloat16), vh,
                               preferred_element_type=jnp.float32))
    att = jnp.concatenate(outs, axis=-1).reshape(M, inner)    # heads back to channel dim
    y = jnp.dot(att.astype(jnp.bfloat16), wo_ref[...],
                preferred_element_type=jnp.float32) + bo      # to_out Linear
    x = x + y                                                 # residual

    # ======================= feed-forward block =======================
    mu2 = jnp.mean(x, axis=-1, keepdims=True)
    var2 = jnp.mean(jnp.square(x - mu2), axis=-1, keepdims=True)
    xn2 = (x - mu2) * jax.lax.rsqrt(var2 + 1e-5) * ln2_g + ln2_b
    h1 = jnp.dot(xn2.astype(jnp.bfloat16), w1_ref[...],
                 preferred_element_type=jnp.float32) + b1_ref[...]
    # TODO(synk): PyTorch nn.GELU() default is exact erf; tanh approximation used (~1e-3 diff).
    h1 = jax.nn.gelu(h1, approximate=True)
    y2 = jnp.dot(h1.astype(jnp.bfloat16), w2_ref[...],
                 preferred_element_type=jnp.float32) + b2
    x = x + y2                                                # residual

    x_scr[...] = x                                            # carry to next layer

    @pl.when(layer == pl.num_programs(0) - 1)
    def _():
        o_ref[...] = x.astype(o_ref.dtype)                    # single lane-dense store


# ------------------------------------ wrapper -------------------------------------
def transformer_forward(x, packed, *, img_size, heads, dim_head):
    # TODO(synk): last_stage=True (cls-token concat path) is not implemented.
    B, N, dim = x.shape
    H = W = img_size
    M = B * N
    C3 = 3 * dim
    inner = heads * dim_head
    I3 = 3 * inner
    depth = packed["cvec"].shape[0]
    mlp_dim = packed["w1"].shape[-1]

    kern = functools.partial(_transformer_kernel, B=B, H=H, W=W,
                             heads=heads, dim_head=dim_head)
    out = pl.pallas_call(
        kern,
        out_shape=jax.ShapeDtypeStruct((M, dim), x.dtype),
        grid=(depth,),
        in_specs=[
            pl.BlockSpec((M, dim), lambda l: (0, 0)),                 # x (used at layer 0)
            pl.BlockSpec((None, 12, C3), lambda l: (l, 0, 0)),        # dw_w taps + dw_b/bn_g/bn_b
            pl.BlockSpec((None, C3, I3), lambda l: (l, 0, 0)),        # block-diag pointwise W (bf16)
            pl.BlockSpec((None, 1, I3), lambda l: (l, 0, 0)),         # pointwise bias
            pl.BlockSpec((None, inner, dim), lambda l: (l, 0, 0)),    # to_out W (bf16)
            pl.BlockSpec((None, 6, dim), lambda l: (l, 0, 0)),        # ln1/bo/ln2/b2 vectors
            pl.BlockSpec((None, dim, mlp_dim), lambda l: (l, 0, 0)),  # FFN W1 (bf16)
            pl.BlockSpec((None, 1, mlp_dim), lambda l: (l, 0, 0)),    # FFN b1
            pl.BlockSpec((None, mlp_dim, dim), lambda l: (l, 0, 0)),  # FFN W2 (bf16)
        ],
        out_specs=pl.BlockSpec((M, dim), lambda l: (0, 0)),
        scratch_shapes=[
            pltpu.VMEM((M, dim), jnp.float32),                        # activation carry
            pltpu.VMEM((B, H + 2, W + 2, C3), jnp.float32),           # zero-padded conv image
        ],
        compiler_params=pltpu.CompilerParams(
            dimension_semantics=("arbitrary",),
            vmem_limit_bytes=32 * 1024 * 1024),
    )(x.reshape(M, dim), packed["cvec"], packed["pw_w"], packed["pw_b"],
      packed["wo"], packed["dvec"], packed["w1"], packed["b1"], packed["w2"])
    return out.reshape(B, N, dim)


# ---------------------- parameter packing (done once, outside jit) ----------------------
def pack_params(params, *, dim, heads, dim_head):
    inner = heads * dim_head
    C3, I3 = 3 * dim, 3 * inner
    cvec_l, pww_l, pwb_l, wo_l, dvec_l, w1_l, b1_l, w2_l = ([] for _ in range(8))
    for lp in params["layers"]:
        a = lp["attn"]
        dw = a["dw_w"].reshape(3, 9, dim)                    # (branch q/k/v, tap, C)
        dw9 = jnp.transpose(dw, (1, 0, 2)).reshape(9, C3)    # (tap, q|k|v stacked channels)
        cvec_l.append(jnp.concatenate(
            [dw9, a["dw_b"].reshape(1, C3), a["bn_g"].reshape(1, C3),
             a["bn_b"].reshape(1, C3)], axis=0).astype(jnp.float32))
        bd = jnp.zeros((C3, I3), jnp.float32)                # block-diagonal pointwise weight
        for p in range(3):
            bd = bd.at[p * dim:(p + 1) * dim, p * inner:(p + 1) * inner].set(a["pw_w"][p])
        pww_l.append(bd.astype(jnp.bfloat16))
        pwb_l.append(a["pw_b"].reshape(1, I3).astype(jnp.float32))
        wo_l.append(a["wo"].astype(jnp.bfloat16))
        dvec_l.append(jnp.stack([lp["ln1_g"], lp["ln1_b"], a["bo"],
                                 lp["ln2_g"], lp["ln2_b"], lp["b2"]],
                                axis=0).astype(jnp.float32))
        w1_l.append(lp["w1"].astype(jnp.bfloat16))
        b1_l.append(lp["b1"].reshape(1, -1).astype(jnp.float32))
        w2_l.append(lp["w2"].astype(jnp.bfloat16))
    return dict(cvec=jnp.stack(cvec_l), pw_w=jnp.stack(pww_l), pw_b=jnp.stack(pwb_l),
                wo=jnp.stack(wo_l), dvec=jnp.stack(dvec_l),
                w1=jnp.stack(w1_l), b1=jnp.stack(b1_l), w2=jnp.stack(w2_l))


# ------------------------------- deterministic init -------------------------------
def _w(key, shape, scale=0.05):
    return scale * jax.random.normal(key, shape, dtype=jnp.float32)


def init_params(key, dim, heads, dim_head, mlp_dim, depth):
    inner = heads * dim_head
    layers = []
    for _ in range(depth):
        key, *ks = jax.random.split(key, 18)
        it = iter(ks)
        nk = lambda: next(it)
        layers.append(dict(
            ln1_g=1.0 + _w(nk(), (dim,)), ln1_b=_w(nk(), (dim,)),
            attn=dict(
                dw_w=_w(nk(), (3, 3, 3, dim)),        # [q/k/v branch, kh, kw, C] depthwise
                dw_b=_w(nk(), (3, dim)),
                bn_g=1.0 + _w(nk(), (3, dim)),
                bn_b=_w(nk(), (3, dim)),
                pw_w=_w(nk(), (3, dim, inner)),       # pointwise 1x1 conv == matmul
                pw_b=_w(nk(), (3, inner)),
                wo=_w(nk(), (inner, dim)),            # to_out Linear
                bo=_w(nk(), (dim,)),
            ),
            ln2_g=1.0 + _w(nk(), (dim,)), ln2_b=_w(nk(), (dim,)),
            w1=_w(nk(), (dim, mlp_dim)), b1=_w(nk(), (mlp_dim,)),
            w2=_w(nk(), (mlp_dim, dim)), b2=_w(nk(), (dim,)),
        ))
    return dict(layers=layers)


if __name__ == "__main__":
    B, dim, img_size = 2, 32, 8
    depth, heads, dim_head, mlp_dim = 2, 4, 8, 64
    N = img_size * img_size  # 64 tokens

    key = jax.random.PRNGKey(0)
    kx, kp = jax.random.split(key)
    x = jax.random.normal(kx, (B, N, dim), dtype=jnp.float32)
    params = init_params(kp, dim, heads, dim_head, mlp_dim, depth)
    packed = pack_params(params, dim=dim, heads=heads, dim_head=dim_head)

    fwd = jax.jit(functools.partial(transformer_forward,
                                    img_size=img_size, heads=heads, dim_head=dim_head))
    out = fwd(x, packed)
    jax.block_until_ready(out)
    assert out.shape == (B, N, dim)
    assert bool(jnp.all(jnp.isfinite(out)))
    print("KERNEL_OK")
</pallas_src>

<mosaic_0001>
module attributes {stable_mosaic.version = 11 : i64} {
  func.func @_transformer_kernel(%arg0: i32, %arg1: memref<128x32xf32, #tpu.memory_space<vmem>>, %arg2: memref<1x12x96xf32, #tpu.memory_space<vmem>>, %arg3: memref<1x96x96xbf16, #tpu.memory_space<vmem>>, %arg4: memref<1x1x96xf32, #tpu.memory_space<vmem>>, %arg5: memref<1x32x32xbf16, #tpu.memory_space<vmem>>, %arg6: memref<1x6x32xf32, #tpu.memory_space<vmem>>, %arg7: memref<1x32x64xbf16, #tpu.memory_space<vmem>>, %arg8: memref<1x1x64xf32, #tpu.memory_space<vmem>>, %arg9: memref<1x64x32xbf16, #tpu.memory_space<vmem>>, %arg10: memref<128x32xf32, #tpu.memory_space<vmem>>, %arg11: memref<128x32xf32, #tpu.memory_space<vmem>>, %arg12: memref<2x10x10x96xf32, #tpu.memory_space<vmem>>) attributes {dimension_semantics = [#tpu.dimension_semantics<arbitrary>], iteration_bounds = array<i64: 2>, scalar_prefetch = 0 : i64, scratch_operands = 2 : i64, tpu.core_type = #tpu.core_type<tc>, window_params = [{pipeline_mode = #tpu.pipeline_mode<synchronous>, transform_indices = @transform_0, window_bounds = array<i64: 128, 32>}, {transform_indices = @transform_1, window_bounds = array<i64: 1, 12, 96>}, {transform_indices = @transform_2, window_bounds = array<i64: 1, 96, 96>}, {transform_indices = @transform_3, window_bounds = array<i64: 1, 1, 96>}, {transform_indices = @transform_4, window_bounds = array<i64: 1, 32, 32>}, {transform_indices = @transform_5, window_bounds = array<i64: 1, 6, 32>}, {transform_indices = @transform_6, window_bounds = array<i64: 1, 32, 64>}, {transform_indices = @transform_7, window_bounds = array<i64: 1, 1, 64>}, {transform_indices = @transform_8, window_bounds = array<i64: 1, 64, 32>}, {pipeline_mode = #tpu.pipeline_mode<synchronous>, transform_indices = @transform_9, window_bounds = array<i64: 128, 32>}]} {
    %c0_i32 = arith.constant 0 : i32
    %0 = arith.cmpi eq, %arg0, %c0_i32 : i32
    %1 = arith.extui %0 : i1 to i32
    %c0_i32_0 = arith.constant 0 : i32
    %2 = arith.cmpi ne, %1, %c0_i32_0 : i32
    scf.if %2 {
      %c0_111 = arith.constant 0 : index
      %c0_112 = arith.constant 0 : index
      %280 = vector.load %arg1[%c0_111, %c0_112] : memref<128x32xf32, #tpu.memory_space<vmem>>, vector<128x32xf32>
      %c0_113 = arith.constant 0 : index
      %c0_114 = arith.constant 0 : index
      %281 = vector.load %arg11[%c0_113, %c0_114] : memref<128x32xf32, #tpu.memory_space<vmem>>, vector<128x32xf32>
      tpu.vector_store %arg11[%c0_113, %c0_114], %280 {strides = array<i32>} : memref<128x32xf32, #tpu.memory_space<vmem>>, vector<128x32xf32>,
      %cst_115 = arith.constant 0.000000e+00 : f32
      %282 = vector.broadcast %cst_115 : f32 to vector<2x10x10x96xf32>
      %c0_116 = arith.constant 0 : index
      %c0_117 = arith.constant 0 : index
      %c0_118 = arith.constant 0 : index
      %c0_119 = arith.constant 0 : index
      %283 = vector.load %arg12[%c0_116, %c0_117, %c0_118, %c0_119] : memref<2x10x10x96xf32, #tpu.memory_space<vmem>>, vector<2x10x10x96xf32>
      tpu.vector_store %arg12[%c0_116, %c0_117, %c0_118, %c0_119], %282 {strides = array<i32>} : memref<2x10x10x96xf32, #tpu.memory_space<vmem>>, vector<2x10x10x96xf32>,
    } else {
    }
    %c0 = arith.constant 0 : index
    %c0_1 = arith.constant 0 : index
    %3 = vector.load %arg11[%c0, %c0_1] : memref<128x32xf32, #tpu.memory_space<vmem>>, vector<128x32xf32>
    %c0_2 = arith.constant 0 : index
    %c0_3 = arith.constant 0 : index
    %c0_4 = arith.constant 0 : index
    %4 = vector.load %arg6[%c0_2, %c0_3, %c0_4] : memref<1x6x32xf32, #tpu.memory_space<vmem>>, vector<1x6x32xf32>
    %5 = vector.shape_cast %4 : vector<1x6x32xf32> to vector<6x32xf32>
    %6 = vector.extract_strided_slice %5 {offsets = [0, 0], sizes = [1, 32], strides = [1, 1]} : vector<6x32xf32> to vector<1x32xf32>
    %7 = vector.extract_strided_slice %5 {offsets = [1, 0], sizes = [1, 32], strides = [1, 1]} : vector<6x32xf32> to vector<1x32xf32>
    %8 = vector.extract_strided_slice %5 {offsets = [2, 0], sizes = [1, 32], strides = [1, 1]} : vector<6x32xf32> to vector<1x32xf32>
    %9 = vector.extract_strided_slice %5 {offsets = [3, 0], sizes = [1, 32], strides = [1, 1]} : vector<6x32xf32> to vector<1x32xf32>
    %10 = vector.extract_strided_slice %5 {offsets = [4, 0], sizes = [1, 32], strides = [1, 1]} : vector<6x32xf32> to vector<1x32xf32>
    %11 = vector.extract_strided_slice %5 {offsets = [5, 0], sizes = [1, 32], strides = [1, 1]} : vector<6x32xf32> to vector<1x32xf32>
    %cst = arith.constant dense<0.000000e+00> : vector<128xf32>
    %12 = vector.multi_reduction <add>, %3, %cst [1] : vector<128x32xf32> to vector<128xf32>
    %13 = vector.shape_cast %12 : vector<128xf32> to vector<128x1xf32>
    %cst_5 = arith.constant 3.200000e+01 : f32
    %14 = vector.broadcast %cst_5 : f32 to vector<128x1xf32>
    %15 = arith.divf %13, %14 : vector<128x1xf32>
    %16 = vector.broadcast %15 : vector<128x1xf32> to vector<128x32xf32>
    %17 = arith.subf %3, %16 : vector<128x32xf32>
    %18 = arith.mulf %17, %17 : vector<128x32xf32>
    %cst_6 = arith.constant dense<0.000000e+00> : vector<128xf32>
    %19 = vector.multi_reduction <add>, %18, %cst_6 [1] : vector<128x32xf32> to vector<128xf32>
    %20 = vector.shape_cast %19 : vector<128xf32> to vector<128x1xf32>
    %cst_7 = arith.constant 3.200000e+01 : f32
    %21 = vector.broadcast %cst_7 : f32 to vector<128x1xf32>
    %22 = arith.divf %20, %21 : vector<128x1xf32>
    %23 = vector.broadcast %15 : vector<128x1xf32> to vector<128x32xf32>
    %24 = arith.subf %3, %23 : vector<128x32xf32>
    %cst_8 = arith.constant 9.99999974E-6 : f32
    %25 = vector.broadcast %cst_8 : f32 to vector<128x1xf32>
    %26 = arith.addf %22, %25 : vector<128x1xf32>
    %27 = math.rsqrt %26 : vector<128x1xf32>
    %28 = vector.broadcast %27 : vector<128x1xf32> to vector<128x32xf32>
    %29 = arith.mulf %24, %28 : vector<128x32xf32>
    %30 = vector.broadcast %6 : vector<1x32xf32> to vector<128x32xf32>
    %31 = arith.mulf %29, %30 : vector<128x32xf32>
    %32 = vector.broadcast %7 : vector<1x32xf32> to vector<128x32xf32>
    %33 = arith.addf %31, %32 : vector<128x32xf32>
    %34 = tpu.concatenate %33, %33, %33 in 1 : vector<128x32xf32>, vector<128x32xf32>, vector<128x32xf32> -> vector<128x96xf32>
    %35 = vector.shape_cast %34 : vector<128x96xf32> to vector<2x8x8x96xf32>
    %c0_9 = arith.constant 0 : index
    %c1 = arith.constant 1 : index
    %c1_10 = arith.constant 1 : index
    %c0_11 = arith.constant 0 : index
    %36 = vector.load %arg12[%c0_9, %c1, %c1_10, %c0_11] : memref<2x10x10x96xf32, #tpu.memory_space<vmem>>, vector<2x8x8x96xf32>
    tpu.vector_store %arg12[%c0_9, %c1, %c1_10, %c0_11], %35 {strides = array<i32>} : memref<2x10x10x96xf32, #tpu.memory_space<vmem>>, vector<2x8x8x96xf32>,
    %c0_12 = arith.constant 0 : index
    %c0_13 = arith.constant 0 : index
    %c0_14 = arith.constant 0 : index
    %37 = vector.load %arg2[%c0_12, %c0_13, %c0_14] : memref<1x12x96xf32, #tpu.memory_space<vmem>>, vector<1x12x96xf32>
    %38 = vector.shape_cast %37 : vector<1x12x96xf32> to vector<12x96xf32>
    %cst_15 = arith.constant 0.000000e+00 : f32
    %39 = vector.broadcast %cst_15 : f32 to vector<128x96xf32>
    %c0_16 = arith.constant 0 : index
    %c0_17 = arith.constant 0 : index
    %c0_18 = arith.constant 0 : index
    %c0_19 = arith.constant 0 : index
    %40 = vector.load %arg12[%c0_16, %c0_17, %c0_18, %c0_19] : memref<2x10x10x96xf32, #tpu.memory_space<vmem>>, vector<2x8x8x96xf32>
    %41 = vector.shape_cast %40 : vector<2x8x8x96xf32> to vector<128x96xf32>
    %42 = vector.extract_strided_slice %38 {offsets = [0, 0], sizes = [1, 96], strides = [1, 1]} : vector<12x96xf32> to vector<1x96xf32>
    %43 = vector.broadcast %42 : vector<1x96xf32> to vector<128x96xf32>
    %44 = arith.mulf %41, %43 : vector<128x96xf32>
    %45 = arith.addf %39, %44 : vector<128x96xf32>
    %c0_20 = arith.constant 0 : index
    %c0_21 = arith.constant 0 : index
    %c1_22 = arith.constant 1 : index
    %c0_23 = arith.constant 0 : index
    %46 = vector.load %arg12[%c0_20, %c0_21, %c1_22, %c0_23] : memref<2x10x10x96xf32, #tpu.memory_space<vmem>>, vector<2x8x8x96xf32>
    %47 = vector.shape_cast %46 : vector<2x8x8x96xf32> to vector<128x96xf32>
    %48 = vector.extract_strided_slice %38 {offsets = [1, 0], sizes = [1, 96], strides = [1, 1]} : vector<12x96xf32> to vector<1x96xf32>
    %49 = vector.broadcast %48 : vector<1x96xf32> to vector<128x96xf32>
    %50 = arith.mulf %47, %49 : vector<128x96xf32>
    %51 = arith.addf %45, %50 : vector<128x96xf32>
    %c0_24 = arith.constant 0 : index
    %c0_25 = arith.constant 0 : index
    %c2 = arith.constant 2 : index
    %c0_26 = arith.constant 0 : index
    %52 = vector.load %arg12[%c0_24, %c0_25, %c2, %c0_26] : memref<2x10x10x96xf32, #tpu.memory_space<vmem>>, vector<2x8x8x96xf32>
    %53 = vector.shape_cast %52 : vector<2x8x8x96xf32> to vector<128x96xf32>
    %54 = vector.extract_strided_slice %38 {offsets = [2, 0], sizes = [1, 96], strides = [1, 1]} : vector<12x96xf32> to vector<1x96xf32>
    %55 = vector.broadcast %54 : vector<1x96xf32> to vector<128x96xf32>
    %56 = arith.mulf %53, %55 : vector<128x96xf32>
    %57 = arith.addf %51, %56 : vector<128x96xf32>
    %c0_27 = arith.constant 0 : index
    %c1_28 = arith.constant 1 : index
    %c0_29 = arith.constant 0 : index
    %c0_30 = arith.constant 0 : index
    %58 = vector.load %arg12[%c0_27, %c1_28, %c0_29, %c0_30] : memref<2x10x10x96xf32, #tpu.memory_space<vmem>>, vector<2x8x8x96xf32>
    %59 = vector.shape_cast %58 : vector<2x8x8x96xf32> to vector<128x96xf32>
    %60 = vector.extract_strided_slice %38 {offsets = [3, 0], sizes = [1, 96], strides = [1, 1]} : vector<12x96xf32> to vector<1x96xf32>
    %61 = vector.broadcast %60 : vector<1x96xf32> to vector<128x96xf32>
    %62 = arith.mulf %59, %61 : vector<128x96xf32>
    %63 = arith.addf %57, %62 : vector<128x96xf32>
    %c0_31 = arith.constant 0 : index
    %c1_32 = arith.constant 1 : index
    %c1_33 = arith.constant 1 : index
    %c0_34 = arith.constant 0 : index
    %64 = vector.load %arg12[%c0_31, %c1_32, %c1_33, %c0_34] : memref<2x10x10x96xf32, #tpu.memory_space<vmem>>, vector<2x8x8x96xf32>
    %65 = vector.shape_cast %64 : vector<2x8x8x96xf32> to vector<128x96xf32>
    %66 = vector.extract_strided_slice %38 {offsets = [4, 0], sizes = [1, 96], strides = [1, 1]} : vector<12x96xf32> to vector<1x96xf32>
    %67 = vector.broadcast %66 : vector<1x96xf32> to vector<128x96xf32>
    %68 = arith.mulf %65, %67 : vector<128x96xf32>
    %69 = arith.addf %63, %68 : vector<128x96xf32>
    %c0_35 = arith.constant 0 : index
    %c1_36 = arith.constant 1 : index
    %c2_37 = arith.constant 2 : index
    %c0_38 = arith.constant 0 : index
    %70 = vector.load %arg12[%c0_35, %c1_36, %c2_37, %c0_38] : memref<2x10x10x96xf32, #tpu.memory_space<vmem>>, vector<2x8x8x96xf32>
    %71 = vector.shape_cast %70 : vector<2x8x8x96xf32> to vector<128x96xf32>
    %72 = vector.extract_strided_slice %38 {offsets = [5, 0], sizes = [1, 96], strides = [1, 1]} : vector<12x96xf32> to vector<1x96xf32>
    %73 = vector.broadcast %72 : vector<1x96xf32> to vector<128x96xf32>
    %74 = arith.mulf %71, %73 : vector<128x96xf32>
    %75 = arith.addf %69, %74 : vector<128x96xf32>
    %c0_39 = arith.constant 0 : index
    %c2_40 = arith.constant 2 : index
    %c0_41 = arith.constant 0 : index
    %c0_42 = arith.constant 0 : index
    %76 = vector.load %arg12[%c0_39, %c2_40, %c0_41, %c0_42] : memref<2x10x10x96xf32, #tpu.memory_space<vmem>>, vector<2x8x8x96xf32>
    %77 = vector.shape_cast %76 : vector<2x8x8x96xf32> to vector<128x96xf32>
    %78 = vector.extract_strided_slice %38 {offsets = [6, 0], sizes = [1, 96], strides = [1, 1]} : vector<12x96xf32> to vector<1x96xf32>
    %79 = vector.broadcast %78 : vector<1x96xf32> to vector<128x96xf32>
    %80 = arith.mulf %77, %79 : vector<128x96xf32>
    %81 = arith.addf %75, %80 : vector<128x96xf32>
    %c0_43 = arith.constant 0 : index
    %c2_44 = arith.constant 2 : index
    %c1_45 = arith.constant 1 : index
    %c0_46 = arith.constant 0 : index
    %82 = vector.load %arg12[%c0_43, %c2_44, %c1_45, %c0_46] : memref<2x10x10x96xf32, #tpu.memory_space<vmem>>, vector<2x8x8x96xf32>
    %83 = vector.shape_cast %82 : vector<2x8x8x96xf32> to vector<128x96xf32>
    %84 = vector.extract_strided_slice %38 {offsets = [7, 0], sizes = [1, 96], strides = [1, 1]} : vector<12x96xf32> to vector<1x96xf32>
    %85 = vector.broadcast %84 : vector<1x96xf32> to vector<128x96xf32>
    %86 = arith.mulf %83, %85 : vector<128x96xf32>
    %87 = arith.addf %81, %86 : vector<128x96xf32>
    %c0_47 = arith.constant 0 : index
    %c2_48 = arith.constant 2 : index
    %c2_49 = arith.constant 2 : index
    %c0_50 = arith.constant 0 : index
    %88 = vector.load %arg12[%c0_47, %c2_48, %c2_49, %c0_50] : memref<2x10x10x96xf32, #tpu.memory_space<vmem>>, vector<2x8x8x96xf32>
    %89 = vector.shape_cast %88 : vector<2x8x8x96xf32> to vector<128x96xf32>
    %90 = vector.extract_strided_slice %38 {offsets = [8, 0], sizes = [1, 96], strides = [1, 1]} : vector<12x96xf32> to vector<1x96xf32>
    %91 = vector.broadcast %90 : vector<1x96xf32> to vector<128x96xf32>
    %92 = arith.mulf %89, %91 : vector<128x96xf32>
    %93 = arith.addf %87, %92 : vector<128x96xf32>
    %94 = vector.extract_strided_slice %38 {offsets = [9, 0], sizes = [1, 96], strides = [1, 1]} : vector<12x96xf32> to vector<1x96xf32>
    %95 = vector.broadcast %94 : vector<1x96xf32> to vector<128x96xf32>
    %96 = arith.addf %93, %95 : vector<128x96xf32>
    %cst_51 = arith.constant dense<0.000000e+00> : vector<96xf32>
    %97 = vector.multi_reduction <add>, %96, %cst_51 [0] : vector<128x96xf32> to vector<96xf32>
    %98 = vector.shape_cast %97 : vector<96xf32> to vector<1x96xf32>
    %cst_52 = arith.constant 1.280000e+02 : f32
    %99 = vector.broadcast %cst_52 : f32 to vector<1x96xf32>
    %100 = arith.divf %98, %99 : vector<1x96xf32>
    %101 = vector.broadcast %100 : vector<1x96xf32> to vector<128x96xf32>
    %102 = arith.subf %96, %101 : vector<128x96xf32>
    %103 = arith.mulf %102, %102 : vector<128x96xf32>
    %cst_53 = arith.constant dense<0.000000e+00> : vector<96xf32>
    %104 = vector.multi_reduction <add>, %103, %cst_53 [0] : vector<128x96xf32> to vector<96xf32>
    %105 = vector.shape_cast %104 : vector<96xf32> to vector<1x96xf32>
    %cst_54 = arith.constant 1.280000e+02 : f32
    %106 = vector.broadcast %cst_54 : f32 to vector<1x96xf32>
    %107 = arith.divf %105, %106 : vector<1x96xf32>
    %108 = vector.broadcast %100 : vector<1x96xf32> to vector<128x96xf32>
    %109 = arith.subf %96, %108 : vector<128x96xf32>
    %cst_55 = arith.constant 9.99999974E-6 : f32
    %110 = vector.broadcast %cst_55 : f32 to vector<1x96xf32>
    %111 = arith.addf %107, %110 : vector<1x96xf32>
    %112 = math.rsqrt %111 : vector<1x96xf32>
    %113 = vector.broadcast %112 : vector<1x96xf32> to vector<128x96xf32>
    %114 = arith.mulf %109, %113 : vector<128x96xf32>
    %115 = vector.extract_strided_slice %38 {offsets = [10, 0], sizes = [1, 96], strides = [1, 1]} : vector<12x96xf32> to vector<1x96xf32>
    %116 = vector.broadcast %115 : vector<1x96xf32> to vector<128x96xf32>
    %117 = arith.mulf %114, %116 : vector<128x96xf32>
    %118 = vector.extract_strided_slice %38 {offsets = [11, 0], sizes = [1, 96], strides = [1, 1]} : vector<12x96xf32> to vector<1x96xf32>
    %119 = vector.broadcast %118 : vector<1x96xf32> to vector<128x96xf32>
    %120 = arith.addf %117, %119 : vector<128x96xf32>
    %121 = arith.truncf %120 : vector<128x96xf32> to vector<128x96xbf16>
    %c0_56 = arith.constant 0 : index
    %c0_57 = arith.constant 0 : index
    %c0_58 = arith.constant 0 : index
    %122 = vector.load %arg3[%c0_56, %c0_57, %c0_58] : memref<1x96x96xbf16, #tpu.memory_space<vmem>>, vector<1x96x96xbf16>
    %123 = vector.shape_cast %122 : vector<1x96x96xbf16> to vector<96x96xbf16>
    %cst_59 = arith.constant dense<0.000000e+00> : vector<128x96xf32>
    %124 = tpu.matmul %121, %123, %cst_59 {dimension_numbers = #tpu.dot_dimension_numbers<[1], [0], [0], [1], [0, 0, 1, 1], [], []>} : vector<128x96xbf16>, vector<96x96xbf16>, vector<128x96xf32> -> vector<128x96xf32>
    %c0_60 = arith.constant 0 : index
    %c0_61 = arith.constant 0 : index
    %c0_62 = arith.constant 0 : index
    %125 = vector.load %arg4[%c0_60, %c0_61, %c0_62] : memref<1x1x96xf32, #tpu.memory_space<vmem>>, vector<1x1x96xf32>
    %126 = vector.shape_cast %125 : vector<1x1x96xf32> to vector<1x96xf32>
    %127 = vector.broadcast %126 : vector<1x96xf32> to vector<128x96xf32>
    %128 = arith.addf %124, %127 : vector<128x96xf32>
    %129 = vector.extract_strided_slice %128 {offsets = [0, 0], sizes = [128, 32], strides = [1, 1]} : vector<128x96xf32> to vector<128x32xf32>
    %cst_63 = arith.constant 0.353553385 : f32
    %130 = vector.broadcast %cst_63 : f32 to vector<128x32xf32>
    %131 = arith.mulf %129, %130 : vector<128x32xf32>
    %132 = vector.shape_cast %131 : vector<128x32xf32> to vector<2x64x32xf32>
    %133 = vector.extract_strided_slice %128 {offsets = [0, 32], sizes = [128, 32], strides = [1, 1]} : vector<128x96xf32> to vector<128x32xf32>
    %134 = vector.shape_cast %133 : vector<128x32xf32> to vector<2x64x32xf32>
    %135 = vector.extract_strided_slice %128 {offsets = [0, 64], sizes = [128, 32], strides = [1, 1]} : vector<128x96xf32> to vector<128x32xf32>
    %136 = vector.shape_cast %135 : vector<128x32xf32> to vector<2x64x32xf32>
    %137 = vector.extract_strided_slice %132 {offsets = [0, 0, 0], sizes = [2, 64, 8], strides = [1, 1, 1]} : vector<2x64x32xf32> to vector<2x64x8xf32>
    %138 = arith.truncf %137 : vector<2x64x8xf32> to vector<2x64x8xbf16>
    %139 = vector.extract_strided_slice %134 {offsets = [0, 0, 0], sizes = [2, 64, 8], strides = [1, 1, 1]} : vector<2x64x32xf32> to vector<2x64x8xf32>
    %140 = arith.truncf %139 : vector<2x64x8xf32> to vector<2x64x8xbf16>
    %141 = vector.extract_strided_slice %136 {offsets = [0, 0, 0], sizes = [2, 64, 8], strides = [1, 1, 1]} : vector<2x64x32xf32> to vector<2x64x8xf32>
    %142 = arith.truncf %141 : vector<2x64x8xf32> to vector<2x64x8xbf16>
    "tpu.trace_start"() <{level = 10 : i32, message = "bqd,bkd->bqk"}> : () -> ()
    %cst_64 = arith.constant dense<0.000000e+00> : vector<2x64x64xf32>
    %143 = tpu.matmul %138, %140, %cst_64 {dimension_numbers = #tpu.dot_dimension_numbers<[2], [2], [1], [1], [0, 0, 0, 1, 1, 1], [0], [0]>} : vector<2x64x8xbf16>, vector<2x64x8xbf16>, vector<2x64x64xf32> -> vector<2x64x64xf32>
    "tpu.trace_stop"() : () -> ()
    %cst_65 = arith.constant dense<0xFF800000> : vector<2x64xf32>
    %144 = vector.multi_reduction <maximumf>, %143, %cst_65 [2] : vector<2x64x64xf32> to vector<2x64xf32>
    %145 = vector.shape_cast %144 : vector<2x64xf32> to vector<2x64x1xf32>
    %146 = vector.broadcast %145 : vector<2x64x1xf32> to vector<2x64x64xf32>
    %147 = arith.subf %143, %146 : vector<2x64x64xf32>
    %148 = math.exp %147 : vector<2x64x64xf32>
    %cst_66 = arith.constant dense<0.000000e+00> : vector<2x64xf32>
    %149 = vector.multi_reduction <add>, %148, %cst_66 [2] : vector<2x64x64xf32> to vector<2x64xf32>
    %150 = vector.shape_cast %149 : vector<2x64xf32> to vector<2x64x1xf32>
    %cst_67 = arith.constant 1.000000e+00 : f32
    %151 = vector.broadcast %cst_67 : f32 to vector<2x64x1xf32>
    %152 = arith.divf %151, %150 : vector<2x64x1xf32>
    %153 = vector.broadcast %152 : vector<2x64x1xf32> to vector<2x64x64xf32>
    %154 = arith.mulf %148, %153 : vector<2x64x64xf32>
    %155 = arith.truncf %154 : vector<2x64x64xf32> to vector<2x64x64xbf16>
    "tpu.trace_start"() <{level = 10 : i32, message = "bqk,bkd->bqd"}> : () -> ()
    %cst_68 = arith.constant dense<0.000000e+00> : vector<2x64x8xf32>
    %156 = tpu.matmul %155, %142, %cst_68 {dimension_numbers = #tpu.dot_dimension_numbers<[2], [1], [1], [2], [0, 0, 0, 1, 1, 2], [0], [0]>} : vector<2x64x64xbf16>, vector<2x64x8xbf16>, vector<2x64x8xf32> -> vector<2x64x8xf32>
    "tpu.trace_stop"() : () -> ()
    %157 = vector.extract_strided_slice %132 {offsets = [0, 0, 8], sizes = [2, 64, 8], strides = [1, 1, 1]} : vector<2x64x32xf32> to vector<2x64x8xf32>
    %158 = arith.truncf %157 : vector<2x64x8xf32> to vector<2x64x8xbf16>
    %159 = vector.extract_strided_slice %134 {offsets = [0, 0, 8], sizes = [2, 64, 8], strides = [1, 1, 1]} : vector<2x64x32xf32> to vector<2x64x8xf32>
    %160 = arith.truncf %159 : vector<2x64x8xf32> to vector<2x64x8xbf16>
    %161 = vector.extract_strided_slice %136 {offsets = [0, 0, 8], sizes = [2, 64, 8], strides = [1, 1, 1]} : vector<2x64x32xf32> to vector<2x64x8xf32>
    %162 = arith.truncf %161 : vector<2x64x8xf32> to vector<2x64x8xbf16>
    "tpu.trace_start"() <{level = 10 : i32, message = "bqd,bkd->bqk"}> : () -> ()
    %cst_69 = arith.constant dense<0.000000e+00> : vector<2x64x64xf32>
    %163 = tpu.matmul %158, %160, %cst_69 {dimension_numbers = #tpu.dot_dimension_numbers<[2], [2], [1], [1], [0, 0, 0, 1, 1, 1], [0], [0]>} : vector<2x64x8xbf16>, vector<2x64x8xbf16>, vector<2x64x64xf32> -> vector<2x64x64xf32>
    "tpu.trace_stop"() : () -> ()
    %cst_70 = arith.constant dense<0xFF800000> : vector<2x64xf32>
    %164 = vector.multi_reduction <maximumf>, %163, %cst_70 [2] : vector<2x64x64xf32> to vector<2x64xf32>
    %165 = vector.shape_cast %164 : vector<2x64xf32> to vector<2x64x1xf32>
    %166 = vector.broadcast %165 : vector<2x64x1xf32> to vector<2x64x64xf32>
    %167 = arith.subf %163, %166 : vector<2x64x64xf32>
    %168 = math.exp %167 : vector<2x64x64xf32>
    %cst_71 = arith.constant dense<0.000000e+00> : vector<2x64xf32>
    %169 = vector.multi_reduction <add>, %168, %cst_71 [2] : vector<2x64x64xf32> to vector<2x64xf32>
    %170 = vector.shape_cast %169 : vector<2x64xf32> to vector<2x64x1xf32>
    %cst_72 = arith.constant 1.000000e+00 : f32
    %171 = vector.broadcast %cst_72 : f32 to vector<2x64x1xf32>
    %172 = arith.divf %171, %170 : vector<2x64x1xf32>
    %173 = vector.broadcast %172 : vector<2x64x1xf32> to vector<2x64x64xf32>
    %174 = arith.mulf %168, %173 : vector<2x64x64xf32>
    %175 = arith.truncf %174 : vector<2x64x64xf32> to vector<2x64x64xbf16>
    "tpu.trace_start"() <{level = 10 : i32, message = "bqk,bkd->bqd"}> : () -> ()
    %cst_73 = arith.constant dense<0.000000e+00> : vector<2x64x8xf32>
    %176 = tpu.matmul %175, %162, %cst_73 {dimension_numbers = #tpu.dot_dimension_numbers<[2], [1], [1], [2], [0, 0, 0, 1, 1, 2], [0], [0]>} : vector<2x64x64xbf16>, vector<2x64x8xbf16>, vector<2x64x8xf32> -> vector<2x64x8xf32>
    "tpu.trace_stop"() : () -> ()
    %177 = vector.extract_strided_slice %132 {offsets = [0, 0, 16], sizes = [2, 64, 8], strides = [1, 1, 1]} : vector<2x64x32xf32> to vector<2x64x8xf32>
    %178 = arith.truncf %177 : vector<2x64x8xf32> to vector<2x64x8xbf16>
    %179 = vector.extract_strided_slice %134 {offsets = [0, 0, 16], sizes = [2, 64, 8], strides = [1, 1, 1]} : vector<2x64x32xf32> to vector<2x64x8xf32>
    %180 = arith.truncf %179 : vector<2x64x8xf32> to vector<2x64x8xbf16>
    %181 = vector.extract_strided_slice %136 {offsets = [0, 0, 16], sizes = [2, 64, 8], strides = [1, 1, 1]} : vector<2x64x32xf32> to vector<2x64x8xf32>
    %182 = arith.truncf %181 : vector<2x64x8xf32> to vector<2x64x8xbf16>
    "tpu.trace_start"() <{level = 10 : i32, message = "bqd,bkd->bqk"}> : () -> ()
    %cst_74 = arith.constant dense<0.000000e+00> : vector<2x64x64xf32>
    %183 = tpu.matmul %178, %180, %cst_74 {dimension_numbers = #tpu.dot_dimension_numbers<[2], [2], [1], [1], [0, 0, 0, 1, 1, 1], [0], [0]>} : vector<2x64x8xbf16>, vector<2x64x8xbf16>, vector<2x64x64xf32> -> vector<2x64x64xf32>
    "tpu.trace_stop"() : () -> ()
    %cst_75 = arith.constant dense<0xFF800000> : vector<2x64xf32>
    %184 = vector.multi_reduction <maximumf>, %183, %cst_75 [2] : vector<2x64x64xf32> to vector<2x64xf32>
    %185 = vector.shape_cast %184 : vector<2x64xf32> to vector<2x64x1xf32>
    %186 = vector.broadcast %185 : vector<2x64x1xf32> to vector<2x64x64xf32>
    %187 = arith.subf %183, %186 : vector<2x64x64xf32>
    %188 = math.exp %187 : vector<2x64x64xf32>
    %cst_76 = arith.constant dense<0.000000e+00> : vector<2x64xf32>
    %189 = vector.multi_reduction <add>, %188, %cst_76 [2] : vector<2x64x64xf32> to vector<2x64xf32>
    %190 = vector.shape_cast %189 : vector<2x64xf32> to vector<2x64x1xf32>
    %cst_77 = arith.constant 1.000000e+00 : f32
    %191 = vector.broadcast %cst_77 : f32 to vector<2x64x1xf32>
    %192 = arith.divf %191, %190 : vector<2x64x1xf32>
    %193 = vector.broadcast %192 : vector<2x64x1xf32> to vector<2x64x64xf32>
    %194 = arith.mulf %188, %193 : vector<2x64x64xf32>
    %195 = arith.truncf %194 : vector<2x64x64xf32> to vector<2x64x64xbf16>
    "tpu.trace_start"() <{level = 10 : i32, message = "bqk,bkd->bqd"}> : () -> ()
    %cst_78 = arith.constant dense<0.000000e+00> : vector<2x64x8xf32>
    %196 = tpu.matmul %195, %182, %cst_78 {dimension_numbers = #tpu.dot_dimension_numbers<[2], [1], [1], [2], [0, 0, 0, 1, 1, 2], [0], [0]>} : vector<2x64x64xbf16>, vector<2x64x8xbf16>, vector<2x64x8xf32> -> vector<2x64x8xf32>
    "tpu.trace_stop"() : () -> ()
    %197 = vector.extract_strided_slice %132 {offsets = [0, 0, 24], sizes = [2, 64, 8], strides = [1, 1, 1]} : vector<2x64x32xf32> to vector<2x64x8xf32>
    %198 = arith.truncf %197 : vector<2x64x8xf32> to vector<2x64x8xbf16>
    %199 = vector.extract_strided_slice %134 {offsets = [0, 0, 24], sizes = [2, 64, 8], strides = [1, 1, 1]} : vector<2x64x32xf32> to vector<2x64x8xf32>
    %200 = arith.truncf %199 : vector<2x64x8xf32> to vector<2x64x8xbf16>
    %201 = vector.extract_strided_slice %136 {offsets = [0, 0, 24], sizes = [2, 64, 8], strides = [1, 1, 1]} : vector<2x64x32xf32> to vector<2x64x8xf32>
    %202 = arith.truncf %201 : vector<2x64x8xf32> to vector<2x64x8xbf16>
    "tpu.trace_start"() <{level = 10 : i32, message = "bqd,bkd->bqk"}> : () -> ()
    %cst_79 = arith.constant dense<0.000000e+00> : vector<2x64x64xf32>
    %203 = tpu.matmul %198, %200, %cst_79 {dimension_numbers = #tpu.dot_dimension_numbers<[2], [2], [1], [1], [0, 0, 0, 1, 1, 1], [0], [0]>} : vector<2x64x8xbf16>, vector<2x64x8xbf16>, vector<2x64x64xf32> -> vector<2x64x64xf32>
    "tpu.trace_stop"() : () -> ()
    %cst_80 = arith.constant dense<0xFF800000> : vector<2x64xf32>
    %204 = vector.multi_reduction <maximumf>, %203, %cst_80 [2] : vector<2x64x64xf32> to vector<2x64xf32>
    %205 = vector.shape_cast %204 : vector<2x64xf32> to vector<2x64x1xf32>
    %206 = vector.broadcast %205 : vector<2x64x1xf32> to vector<2x64x64xf32>
    %207 = arith.subf %203, %206 : vector<2x64x64xf32>
    %208 = math.exp %207 : vector<2x64x64xf32>
    %cst_81 = arith.constant dense<0.000000e+00> : vector<2x64xf32>
    %209 = vector.multi_reduction <add>, %208, %cst_81 [2] : vector<2x64x64xf32> to vector<2x64xf32>
    %210 = vector.shape_cast %209 : vector<2x64xf32> to vector<2x64x1xf32>
    %cst_82 = arith.constant 1.000000e+00 : f32
    %211 = vector.broadcast %cst_82 : f32 to vector<2x64x1xf32>
    %212 = arith.divf %211, %210 : vector<2x64x1xf32>
    %213 = vector.broadcast %212 : vector<2x64x1xf32> to vector<2x64x64xf32>
    %214 = arith.mulf %208, %213 : vector<2x64x64xf32>
    %215 = arith.truncf %214 : vector<2x64x64xf32> to vector<2x64x64xbf16>
    "tpu.trace_start"() <{level = 10 : i32, message = "bqk,bkd->bqd"}> : () -> ()
    %cst_83 = arith.constant dense<0.000000e+00> : vector<2x64x8xf32>
    %216 = tpu.matmul %215, %202, %cst_83 {dimension_numbers = #tpu.dot_dimension_numbers<[2], [1], [1], [2], [0, 0, 0, 1, 1, 2], [0], [0]>} : vector<2x64x64xbf16>, vector<2x64x8xbf16>, vector<2x64x8xf32> -> vector<2x64x8xf32>
    "tpu.trace_stop"() : () -> ()
    %217 = tpu.concatenate %156, %176, %196, %216 in 2 : vector<2x64x8xf32>, vector<2x64x8xf32>, vector<2x64x8xf32>, vector<2x64x8xf32> -> vector<2x64x32xf32>
    %218 = vector.shape_cast %217 : vector<2x64x32xf32> to vector<128x32xf32>
    %219 = arith.truncf %218 : vector<128x32xf32> to vector<128x32xbf16>
    %c0_84 = arith.constant 0 : index
    %c0_85 = arith.constant 0 : index
    %c0_86 = arith.constant 0 : index
    %220 = vector.load %arg5[%c0_84, %c0_85, %c0_86] : memref<1x32x32xbf16, #tpu.memory_space<vmem>>, vector<1x32x32xbf16>
    %221 = vector.shape_cast %220 : vector<1x32x32xbf16> to vector<32x32xbf16>
    %cst_87 = arith.constant dense<0.000000e+00> : vector<128x32xf32>
    %222 = tpu.matmul %219, %221, %cst_87 {dimension_numbers = #tpu.dot_dimension_numbers<[1], [0], [0], [1], [0, 0, 1, 1], [], []>} : vector<128x32xbf16>, vector<32x32xbf16>, vector<128x32xf32> -> vector<128x32xf32>
    %223 = vector.broadcast %8 : vector<1x32xf32> to vector<128x32xf32>
    %224 = arith.addf %222, %223 : vector<128x32xf32>
    %225 = arith.addf %3, %224 : vector<128x32xf32>
    %cst_88 = arith.constant dense<0.000000e+00> : vector<128xf32>
    %226 = vector.multi_reduction <add>, %225, %cst_88 [1] : vector<128x32xf32> to vector<128xf32>
    %227 = vector.shape_cast %226 : vector<128xf32> to vector<128x1xf32>
    %cst_89 = arith.constant 3.200000e+01 : f32
    %228 = vector.broadcast %cst_89 : f32 to vector<128x1xf32>
    %229 = arith.divf %227, %228 : vector<128x1xf32>
    %230 = vector.broadcast %229 : vector<128x1xf32> to vector<128x32xf32>
    %231 = arith.subf %225, %230 : vector<128x32xf32>
    %232 = arith.mulf %231, %231 : vector<128x32xf32>
    %cst_90 = arith.constant dense<0.000000e+00> : vector<128xf32>
    %233 = vector.multi_reduction <add>, %232, %cst_90 [1] : vector<128x32xf32> to vector<128xf32>
    %234 = vector.shape_cast %233 : vector<128xf32> to vector<128x1xf32>
    %cst_91 = arith.constant 3.200000e+01 : f32
    %235 = vector.broadcast %cst_91 : f32 to vector<128x1xf32>
    %236 = arith.divf %234, %235 : vector<128x1xf32>
    %237 = vector.broadcast %229 : vector<128x1xf32> to vector<128x32xf32>
    %238 = arith.subf %225, %237 : vector<128x32xf32>
    %cst_92 = arith.constant 9.99999974E-6 : f32
    %239 = vector.broadcast %cst_92 : f32 to vector<128x1xf32>
    %240 = arith.addf %236, %239 : vector<128x1xf32>
    %241 = math.rsqrt %240 : vector<128x1xf32>
    %242 = vector.broadcast %241 : vector<128x1xf32> to vector<128x32xf32>
    %243 = arith.mulf %238, %242 : vector<128x32xf32>
    %244 = vector.broadcast %9 : vector<1x32xf32> to vector<128x32xf32>
    %245 = arith.mulf %243, %244 : vector<128x32xf32>
    %246 = vector.broadcast %10 : vector<1x32xf32> to vector<128x32xf32>
    %247 = arith.addf %245, %246 : vector<128x32xf32>
    %248 = arith.truncf %247 : vector<128x32xf32> to vector<128x32xbf16>
    %c0_93 = arith.constant 0 : index
    %c0_94 = arith.constant 0 : index
    %c0_95 = arith.constant 0 : index
    %249 = vector.load %arg7[%c0_93, %c0_94, %c0_95] : memref<1x32x64xbf16, #tpu.memory_space<vmem>>, vector<1x32x64xbf16>
    %250 = vector.shape_cast %249 : vector<1x32x64xbf16> to vector<32x64xbf16>
    %cst_96 = arith.constant dense<0.000000e+00> : vector<128x64xf32>
    %251 = tpu.matmul %248, %250, %cst_96 {dimension_numbers = #tpu.dot_dimension_numbers<[1], [0], [0], [1], [0, 0, 1, 1], [], []>} : vector<128x32xbf16>, vector<32x64xbf16>, vector<128x64xf32> -> vector<128x64xf32>
    %c0_97 = arith.constant 0 : index
    %c0_98 = arith.constant 0 : index
    %c0_99 = arith.constant 0 : index
    %252 = vector.load %arg8[%c0_97, %c0_98, %c0_99] : memref<1x1x64xf32, #tpu.memory_space<vmem>>, vector<1x1x64xf32>
    %253 = vector.shape_cast %252 : vector<1x1x64xf32> to vector<1x64xf32>
    %254 = vector.broadcast %253 : vector<1x64xf32> to vector<128x64xf32>
    %255 = arith.addf %251, %254 : vector<128x64xf32>
    %256 = arith.mulf %255, %255 : vector<128x64xf32>
    %257 = arith.mulf %255, %256 : vector<128x64xf32>
    %cst_100 = arith.constant 4.471500e-02 : f32
    %258 = vector.broadcast %cst_100 : f32 to vector<128x64xf32>
    %259 = arith.mulf %258, %257 : vector<128x64xf32>
    %260 = arith.addf %255, %259 : vector<128x64xf32>
    %cst_101 = arith.constant 0.797884583 : f32
    %261 = vector.broadcast %cst_101 : f32 to vector<128x64xf32>
    %262 = arith.mulf %261, %260 : vector<128x64xf32>
    %263 = math.tanh %262 : vector<128x64xf32>
    %cst_102 = arith.constant 1.000000e+00 : f32
    %264 = vector.broadcast %cst_102 : f32 to vector<128x64xf32>
    %265 = arith.addf %264, %263 : vector<128x64xf32>
    %cst_103 = arith.constant 5.000000e-01 : f32
    %266 = vector.broadcast %cst_103 : f32 to vector<128x64xf32>
    %267 = arith.mulf %266, %265 : vector<128x64xf32>
    %268 = arith.mulf %255, %267 : vector<128x64xf32>
    %269 = arith.truncf %268 : vector<128x64xf32> to vector<128x64xbf16>
    %c0_104 = arith.constant 0 : index
    %c0_105 = arith.constant 0 : index
    %c0_106 = arith.constant 0 : index
    %270 = vector.load %arg9[%c0_104, %c0_105, %c0_106] : memref<1x64x32xbf16, #tpu.memory_space<vmem>>, vector<1x64x32xbf16>
    %271 = vector.shape_cast %270 : vector<1x64x32xbf16> to vector<64x32xbf16>
    %cst_107 = arith.constant dense<0.000000e+00> : vector<128x32xf32>
    %272 = tpu.matmul %269, %271, %cst_107 {dimension_numbers = #tpu.dot_dimension_numbers<[1], [0], [0], [1], [0, 0, 1, 1], [], []>} : vector<128x64xbf16>, vector<64x32xbf16>, vector<128x32xf32> -> vector<128x32xf32>
    %273 = vector.broadcast %11 : vector<1x32xf32> to vector<128x32xf32>
    %274 = arith.addf %272, %273 : vector<128x32xf32>
    %275 = arith.addf %225, %274 : vector<128x32xf32>
    %c0_108 = arith.constant 0 : index
    %c0_109 = arith.constant 0 : index
    %276 = vector.load %arg11[%c0_108, %c0_109] : memref<128x32xf32, #tpu.memory_space<vmem>>, vector<128x32xf32>
    tpu.vector_store %arg11[%c0_108, %c0_109], %275 {strides = array<i32>} : memref<128x32xf32, #tpu.memory_space<vmem>>, vector<128x32xf32>,
    %c1_i32 = arith.constant 1 : i32
    %277 = arith.cmpi eq, %arg0, %c1_i32 : i32
    %278 = arith.extui %277 : i1 to i32
    %c0_i32_110 = arith.constant 0 : i32
    %279 = arith.cmpi ne, %278, %c0_i32_110 : i32
    scf.if %279 {
      %c0_111 = arith.constant 0 : index
      %c0_112 = arith.constant 0 : index
      %280 = vector.load %arg10[%c0_111, %c0_112] : memref<128x32xf32, #tpu.memory_space<vmem>>, vector<128x32xf32>
      tpu.vector_store %arg10[%c0_111, %c0_112], %275 {strides = array<i32>} : memref<128x32xf32, #tpu.memory_space<vmem>>, vector<128x32xf32>,
    } else {
    }
    return
  }
  func.func @transform_0(%arg0: i32) -> (i32, i32) {
    %c0_i32 = arith.constant 0 : i32
    %c0_i32_0 = arith.constant 0 : i32
    %c0_i32_1 = arith.constant 0 : i32
    return %c0_i32, %c0_i32_0 : i32, i32
  }
  func.func @transform_1(%arg0: i32) -> (i32, i32, i32) {
    %c0_i32 = arith.constant 0 : i32
    %c0_i32_0 = arith.constant 0 : i32
    %c0_i32_1 = arith.constant 0 : i32
    return %arg0, %c0_i32, %c0_i32_0 : i32, i32, i32
  }
  func.func @transform_2(%arg0: i32) -> (i32, i32, i32) {
    %c0_i32 = arith.constant 0 : i32
    %c0_i32_0 = arith.constant 0 : i32
    %c0_i32_1 = arith.constant 0 : i32
    return %arg0, %c0_i32, %c0_i32_0 : i32, i32, i32
  }
  func.func @transform_3(%arg0: i32) -> (i32, i32, i32) {
    %c0_i32 = arith.constant 0 : i32
    %c0_i32_0 = arith.constant 0 : i32
    %c0_i32_1 = arith.constant 0 : i32
    return %arg0, %c0_i32, %c0_i32_0 : i32, i32, i32
  }
  func.func @transform_4(%arg0: i32) -> (i32, i32, i32) {
    %c0_i32 = arith.constant 0 : i32
    %c0_i32_0 = arith.constant 0 : i32
    %c0_i32_1 = arith.constant 0 : i32
    return %arg0, %c0_i32, %c0_i32_0 : i32, i32, i32
  }
  func.func @transform_5(%arg0: i32) -> (i32, i32, i32) {
    %c0_i32 = arith.constant 0 : i32
    %c0_i32_0 = arith.constant 0 : i32
    %c0_i32_1 = arith.constant 0 : i32
    return %arg0, %c0_i32, %c0_i32_0 : i32, i32, i32
  }
  func.func @transform_6(%arg0: i32) -> (i32, i32, i32) {
    %c0_i32 = arith.constant 0 : i32
    %c0_i32_0 = arith.constant 0 : i32
    %c0_i32_1 = arith.constant 0 : i32
    return %arg0, %c0_i32, %c0_i32_0 : i32, i32, i32
  }
  func.func @transform_7(%arg0: i32) -> (i32, i32, i32) {
    %c0_i32 = arith.constant 0 : i32
    %c0_i32_0 = arith.constant 0 : i32
    %c0_i32_1 = arith.constant 0 : i32
    return %arg0, %c0_i32, %c0_i32_0 : i32, i32, i32
  }
  func.func @transform_8(%arg0: i32) -> (i32, i32, i32) {
    %c0_i32 = arith.constant 0 : i32
    %c0_i32_0 = arith.constant 0 : i32
    %c0_i32_1 = arith.constant 0 : i32
    return %arg0, %c0_i32, %c0_i32_0 : i32, i32, i32
  }
  func.func @transform_9(%arg0: i32) -> (i32, i32) {
    %c0_i32 = arith.constant 0 : i32
    %c0_i32_0 = arith.constant 0 : i32
    %c0_i32_1 = arith.constant 0 : i32
    return %c0_i32, %c0_i32_0 : i32, i32
  }
}

</mosaic_0001>

<bundles_post_ra>
// kernel: transformer_forward.1
= control target key start
LH: loop header
LB: loop body
LE: loop exit
PB: predicated region body
PF: predicated region fallthrough
CT: control target
= control target key end

     0   :  { %s6747_s30 = smov 0   ;;  %s9675_s0 = inlined_call_operand.vmem [shape: f32[128,32], index: 0, kind: input, shape index: {}]   ;;  %s9676_s1 = inlined_call_operand.vmem [shape: f32[2,12,96], index: 1, kind: input, shape index: {}]   ;;  %s9677_s2 = inlined_call_operand.vmem [shape: bf16[2,96,96], index: 2, kind: input, shape index: {}]   ;;  %s9678_s3 = inlined_call_operand.vmem [shape: f32[2,1,96], index: 3, kind: input, shape index: {}]   ;;  %s9679_s4 = inlined_call_operand.vmem [shape: bf16[2,32,32], index: 4, kind: input, shape index: {}]   ;;  %s9680_s5 = inlined_call_operand.vmem [shape: f32[2,6,32], index: 5, kind: input, shape index: {}]   ;;  %s9681_s6 = inlined_call_operand.vmem [shape: bf16[2,32,64], index: 6, kind: input, shape index: {}]   ;;  %s9682_s7 = inlined_call_operand.vmem [shape: f32[2,1,64], index: 7, kind: input, shape index: {}]   ;;  %s9683_s8 = inlined_call_operand.vmem [shape: bf16[2,64,32], index: 8, kind: input, shape index: {}]   ;;  %s9684_s9 = inlined_call_operand.vmem [shape: f32[128,32], index: 9, kind: output, shape index: {}]  }
   0x1 LB: > { %s6753_s10 = sadd.s32 4294967295, %s6679_s30   ;;  %p5457_p0 = scmp.ge.s32.totalorder %s6679_s30, 1  ;;  %s6679_s30 = sphi %s6747_s30, %s19_s30  }
   0x2   : > { %p347_p1 = scmp.lt.s32.totalorder %s6679_s30, 3 }
   0x4   : > { %p348_p2 = pnand %p5457_p0, %p347_p1 }
   0x6   : > { %351 = sbr.rel (%p348_p2) target bundleno = 5331 (0x14d3), region = 56 }
   0xd   : > { %p408_p3 = scmp.lt.s32.totalorder %s6753_s10, 1  ;;  %p5468_p4 = scmp.ne.s32.totalorder %s6753_s10, 0 }
   0xe   : > { %v448_v0 = vld [vmem:[%s9675_s0] sm:$0xff] (!%p5468_p4)  ;;  %vm464_vm0 = vcmask (!%p5468_p4), 261120   ;;  %v449_v1 = vld [vmem:[%s9675_s0 + $0x8] sm:$0xff] (!%p5468_p4)  ;;  %v450_v2 = vld [vmem:[%s9675_s0 + $0x10] sm:$0xff] (!%p5468_p4)  ;;  %vm481_vm1 = vcmask (!%p5468_p4), 785408   ;;  %v6681_v6 = vmov (!%p5468_p4), 0.0  }
   0xf   : > { %s6759_s11 = scalar_select %p408_p3, %s6753_s10, 1 }
  0x10   : > { %447 = sbr.rel (%p5468_p4) target bundleno = 44 (0x2c), region = 60  ;;  %465 = vst.msk [vmem:[#allocation2] sm:$0xff] (!%p5468_p4), %vm464_vm0, %v448_v0  ;;  %466 = vst.msk [vmem:[#allocation2 + $0x8] sm:$0xff] (!%p5468_p4), %vm464_vm0, %v449_v1  ;;  %v451_v3 = vld [vmem:[%s9675_s0 + $0x18] sm:$0xff] (!%p5468_p4)  ;;  %v452_v4 = vld [vmem:[%s9675_s0 + $0x20] sm:$0xff] (!%p5468_p4)  ;;  %vm483_vm2 = vcmask (!%p5468_p4), 779264  }
  0x11   : > { %s5584_s12 = sshll.u32 %s6759_s11, 4  ;;  %s6142_s13 = smul.u32 48, %s6759_s11  ;;  %467 = vst.msk [vmem:[#allocation2 + $0x10] sm:$0xff] (!%p5468_p4), %vm464_vm0, %v450_v2  ;;  %v453_v5 = vld [vmem:[%s9675_s0 + $0x28] sm:$0xff] (!%p5468_p4)  ;;  %468 = vst.msk [vmem:[#allocation2 + $0x18] sm:$0xff] (!%p5468_p4), %vm464_vm0, %v451_v3  ;;  %v454_v7 = vld [vmem:[%s9675_s0 + $0x30] sm:$0xff] (!%p5468_p4) }
  0x12   : > { %s6766_s16 = scalar_lea.vmem %s9676_s1, %s5584_s12  ;;  %s6780_s25 = scalar_lea.vmem %s9679_s4, %s5584_s12  ;;  %482 = vst.msk [vmem:[#allocation3] sm:$0xff] (!%p5468_p4), %vm481_vm1, %v6681_v6  ;;  %485 = vst.msk [vmem:[#allocation3 + $0x10] sm:$0xff] (!%p5468_p4), %vm481_vm1, %v6681_v6  ;;  %v455_v8 = vld [vmem:[%s9675_s0 + $0x38] sm:$0xff] (!%p5468_p4)  ;;  %v456_v9 = vld [vmem:[%s9675_s0 + $0x40] sm:$0xff] (!%p5468_p4) }
  0x13   : > { %s6775_s22 = scalar_lea.vmem %s9677_s2, %s6142_s13  ;;  %s5463_s26 = sshll.u32 %s6759_s11, 3  ;;  %487 = vst.msk [vmem:[#allocation3 + $0x20] sm:$0xff] (!%p5468_p4), %vm481_vm1, %v6681_v6  ;;  %489 = vst.msk [vmem:[#allocation3 + $0x30] sm:$0xff] (!%p5468_p4), %vm481_vm1, %v6681_v6  ;;  %v457_v10 = vld [vmem:[%s9675_s0 + $0x48] sm:$0xff] (!%p5468_p4)  ;;  %v458_v11 = vld [vmem:[%s9675_s0 + $0x50] sm:$0xff] (!%p5468_p4) }
  0x14   : > { %s6786_s29 = scalar_lea.vmem %s9681_s6, %s5584_s12  ;;  %s6791_s17 = scalar_lea.vmem %s9680_s5, %s5463_s26  ;;  %491 = vst.msk [vmem:[#allocation3 + $0x40] sm:$0xff] (!%p5468_p4), %vm481_vm1, %v6681_v6  ;;  %493 = vst.msk [vmem:[#allocation3 + $0x50] sm:$0xff] (!%p5468_p4), %vm481_vm1, %v6681_v6  ;;  %v459_v12 = vld [vmem:[%s9675_s0 + $0x58] sm:$0xff] (!%p5468_p4)  ;;  %v460_v13 = vld [vmem:[%s9675_s0 + $0x60] sm:$0xff] (!%p5468_p4) }
  0x15   : > { %s437_s13 = scalar_lea.vmem %s9682_s7, %s6759_s11  ;;  %s5587_s21 = sshll.u32 %s6759_s11, 5  ;;  %495 = vst.msk [vmem:[#allocation3 + $0x60] sm:$0xff] (!%p5468_p4), %vm481_vm1, %v6681_v6  ;;  %497 = vst.msk [vmem:[#allocation3 + $0x70] sm:$0xff] (!%p5468_p4), %vm481_vm1, %v6681_v6  ;;  %v461_v14 = vld [vmem:[%s9675_s0 + $0x68] sm:$0xff] (!%p5468_p4)  ;;  %v462_v15 = vld [vmem:[%s9675_s0 + $0x70] sm:$0xff] (!%p5468_p4) }
  0x16   : > { %s6801_s24 = scalar_lea.vmem %s9683_s8, %s5587_s21  ;;  %499 = vst.msk [vmem:[#allocation3 + $0x80] sm:$0xff] (!%p5468_p4), %vm481_vm1, %v6681_v6  ;;  %501 = vst.msk [vmem:[#allocation3 + $0x90] sm:$0xff] (!%p5468_p4), %vm481_vm1, %v6681_v6  ;;  %v463_v16 = vld [vmem:[%s9675_s0 + $0x78] sm:$0xff] (!%p5468_p4) }
  0x17   : > { %503 = vst.msk [vmem:[#allocation3 + $0xa0] sm:$0xff] %vm481_vm1, %v6681_v6  ;;  %505 = vst.msk [vmem:[#allocation3 + $0xb0] sm:$0xff] %vm481_vm1, %v6681_v6 }
  0x18   : > { %507 = vst.msk [vmem:[#allocation3 + $0xc0] sm:$0xff] %vm481_vm1, %v6681_v6  ;;  %509 = vst.msk [vmem:[#allocation3 + $0xd0] sm:$0xff] %vm481_vm1, %v6681_v6 }
  0x19   : > { %511 = vst.msk [vmem:[#allocation3 + $0xe0] sm:$0xff] %vm481_vm1, %v6681_v6  ;;  %513 = vst.msk [vmem:[#allocation3 + $0xf0] sm:$0xff] %vm481_vm1, %v6681_v6 }
  0x1a   : > { %515 = vst.msk [vmem:[#allocation3 + $0x100] sm:$0xff] %vm481_vm1, %v6681_v6  ;;  %517 = vst.msk [vmem:[#allocation3 + $0x110] sm:$0xff] %vm481_vm1, %v6681_v6 }
  0x1b   : > { %519 = vst.msk [vmem:[#allocation3 + $0x120] sm:$0xff] %vm481_vm1, %v6681_v6  ;;  %521 = vst.msk [vmem:[#allocation3 + $0x130] sm:$0xff] %vm481_vm1, %v6681_v6 }
  0x1c   : > { %469 = vst.msk [vmem:[#allocation2 + $0x20] sm:$0xff] %vm464_vm0, %v452_v4  ;;  %470 = vst.msk [vmem:[#allocation2 + $0x28] sm:$0xff] %vm464_vm0, %v453_v5 }
  0x1d   : > { %484 = vst.msk [vmem:[#allocation3 + $0x8] sm:$0x3] %vm483_vm2, %v6681_v6  ;;  %486 = vst.msk [vmem:[#allocation3 + $0x18] sm:$0x3] %vm483_vm2, %v6681_v6 }
  0x1e   : > { %488 = vst.msk [vmem:[#allocation3 + $0x28] sm:$0x3] %vm483_vm2, %v6681_v6  ;;  %490 = vst.msk [vmem:[#allocation3 + $0x38] sm:$0x3] %vm483_vm2, %v6681_v6 }
  0x1f   : > { %492 = vst.msk [vmem:[#allocation3 + $0x48] sm:$0x3] %vm483_vm2, %v6681_v6  ;;  %494 = vst.msk [vmem:[#allocation3 + $0x58] sm:$0x3] %vm483_vm2, %v6681_v6 }
  0x20   : > { %496 = vst.msk [vmem:[#allocation3 + $0x68] sm:$0x3] %vm483_vm2, %v6681_v6  ;;  %498 = vst.msk [vmem:[#allocation3 + $0x78] sm:$0x3] %vm483_vm2, %v6681_v6 }
  0x21   : > { %500 = vst.msk [vmem:[#allocation3 + $0x88] sm:$0x3] %vm483_vm2, %v6681_v6  ;;  %502 = vst.msk [vmem:[#allocation3 + $0x98] sm:$0x3] %vm483_vm2, %v6681_v6 }
  0x22   : > { %504 = vst.msk [vmem:[#allocation3 + $0xa8] sm:$0x3] %vm483_vm2, %v6681_v6  ;;  %506 = vst.msk [vmem:[#allocation3 + $0xb8] sm:$0x3] %vm483_vm2, %v6681_v6 }
  0x23   : > { %508 = vst.msk [vmem:[#allocation3 + $0xc8] sm:$0x3] %vm483_vm2, %v6681_v6  ;;  %510 = vst.msk [vmem:[#allocation3 + $0xd8] sm:$0x3] %vm483_vm2, %v6681_v6 }
  0x24   : > { %512 = vst.msk [vmem:[#allocation3 + $0xe8] sm:$0x3] %vm483_vm2, %v6681_v6  ;;  %514 = vst.msk [vmem:[#allocation3 + $0xf8] sm:$0x3] %vm483_vm2, %v6681_v6 }
  0x25   : > { %516 = vst.msk [vmem:[#allocation3 + $0x108] sm:$0x3] %vm483_vm2, %v6681_v6  ;;  %518 = vst.msk [vmem:[#allocation3 + $0x118] sm:$0x3] %vm483_vm2, %v6681_v6 }
  0x26   : > { %520 = vst.msk [vmem:[#allocation3 + $0x128] sm:$0x3] %vm483_vm2, %v6681_v6  ;;  %522 = vst.msk [vmem:[#allocation3 + $0x138] sm:$0x3] %vm483_vm2, %v6681_v6 }
  0x27   : > { %471 = vst.msk [vmem:[#allocation2 + $0x30] sm:$0xff] %vm464_vm0, %v454_v7  ;;  %472 = vst.msk [vmem:[#allocation2 + $0x38] sm:$0xff] %vm464_vm0, %v455_v8 }
  0x28   : > { %473 = vst.msk [vmem:[#allocation2 + $0x40] sm:$0xff] %vm464_vm0, %v456_v9  ;;  %474 = vst.msk [vmem:[#allocation2 + $0x48] sm:$0xff] %vm464_vm0, %v457_v10 }
  0x29   : > { %475 = vst.msk [vmem:[#allocation2 + $0x50] sm:$0xff] %vm464_vm0, %v458_v11  ;;  %476 = vst.msk [vmem:[#allocation2 + $0x58] sm:$0xff] %vm464_vm0, %v459_v12 }
  0x2a   : > { %477 = vst.msk [vmem:[#allocation2 + $0x60] sm:$0xff] %vm464_vm0, %v460_v13  ;;  %478 = vst.msk [vmem:[#allocation2 + $0x68] sm:$0xff] %vm464_vm0, %v461_v14 }
  0x2b   : > { %479 = vst.msk [vmem:[#allocation2 + $0x70] sm:$0xff] %vm464_vm0, %v462_v15  ;;  %480 = vst.msk [vmem:[#allocation2 + $0x78] sm:$0xff] %vm464_vm0, %v463_v16 }
  0x2c PF: > { %v523_v17 = vld [vmem:[#allocation2] sm:$0xff]  ;;  %vm540_vm3 = vcmask 261120   ;;  %v524_v19 = vld [vmem:[#allocation2 + $0x8] sm:$0xff]  ;;  %s6682_s23 = smov 64   ;;  %s6683_s12 = smov 32   ;;  %vm918_vm4 = vcmask 523264  }
  0x2d   : > { %v525_v18 = vld [vmem:[#allocation2 + $0x10] sm:$0xff]  ;;  %v541_v20 = vsel %vm540_vm3, %v523_v17, 0.0  ;;  %v526_v22 = vld [vmem:[#allocation2 + $0x18] sm:$0xff]  ;;  %v6910_v23 = vld [vmem:[#allocation2 + $0x20] sm:$0xff]  ;;  %v544_v25 = vsel %vm540_vm3, %v524_v19, 0.0  ;;  %vm936_vm5 = vcmask 785408   ;;  %s9732_s27 = scalar_lea.vmem %s9678_s3, %s6759_s11 }
  0x2e   : > { %v547_v21 = vsel %vm540_vm3, %v525_v18, 0.0  ;;  %542 = vadd.xlane.f32.xlu0 %v541_v20  ;;  %v6912_v24 = vld [vmem:[#allocation2 + $0x28] sm:$0xff]  ;;  %v550_v26 = vsel %vm540_vm3, %v526_v22, 0.0  ;;  %v6916_v27 = vld [vmem:[#allocation2 + $0x30] sm:$0xff]  ;;  %v6918_v28 = vld [vmem:[#allocation2 + $0x38] sm:$0xff]  ;;  %v553_v29 = vsel %vm540_vm3, %v6910_v23, 0.0 }
  0x2f   : > { %548 = vadd.xlane.f32.xlu1 %v547_v21  ;;  %v556_v30 = vsel %vm540_vm3, %v6912_v24, 0.0  ;;  %v559_v31 = vsel %vm540_vm3, %v6916_v27, 0.0  ;;  %v562_v32 = vsel %vm540_vm3, %v6918_v28, 0.0  ;;  %v6928_v33 = vld [vmem:[#allocation2 + $0x40] sm:$0xff]  ;;  %v6930_v34 = vld [vmem:[#allocation2 + $0x48] sm:$0xff]  ;;  %s6684_s26 = smov 96  }
  0x30   : > { %v565_v35 = vsel %vm540_vm3, %v6928_v33, 0.0  ;;  %v568_v36 = vsel %vm540_vm3, %v6930_v34, 0.0  ;;  %v6936_v37 = vld [vmem:[#allocation2 + $0x50] sm:$0xff]  ;;  %v6938_v38 = vld [vmem:[#allocation2 + $0x58] sm:$0xff]  ;;  %vm1839_vm6 = vcmask 64512   ;;  %s6685_s28 = smov 88  }
  0x31   : > { %v571_v39 = vsel %vm540_vm3, %v6936_v37, 0.0  ;;  %v574_v40 = vsel %vm540_vm3, %v6938_v38, 0.0  ;;  %v6944_v41 = vld [vmem:[#allocation2 + $0x60] sm:$0xff]  ;;  %v6946_v42 = vld [vmem:[#allocation2 + $0x68] sm:$0xff]  ;;  %s6686_s14 = smov 120   ;;  %s6687_s15 = smov 56  }
  0x32   : > { %545 = vadd.xlane.f32.xlu0 %v544_v25  ;;  %v577_v43 = vsel %vm540_vm3, %v6944_v41, 0.0  ;;  %v580_v44 = vsel %vm540_vm3, %v6946_v42, 0.0  ;;  %v6952_v45 = vld [vmem:[#allocation2 + $0x70] sm:$0xff]  ;;  %v6954_v46 = vld [vmem:[#allocation2 + $0x78] sm:$0xff]  ;;  %s6688_s19 = smov 80   ;;  %s6689_s18 = smov 112  }
  0x33   : > { %551 = vadd.xlane.f32.xlu1 %v550_v26  ;;  %v583_v47 = vsel %vm540_vm3, %v6952_v45, 0.0  ;;  %v586_v48 = vsel %vm540_vm3, %v6954_v46, 0.0  ;;  %s6690_s20 = smov 48   ;;  %s6691_s21 = smov 72   ;;  %vm4388_vm7 = vcmask 130048   ;;  %vm4405_vm8 = vcmask 195584  }
  0x34   : > { %p5581_p5 = scmp.ne.s32.totalorder %s6753_s10, 1 }
  0x36   : > { %554 = vadd.xlane.f32.xlu0 %v553_v29 }
  0x37   : > { %557 = vadd.xlane.f32.xlu1 %v556_v30 }
  0x3a   : > { %560 = vadd.xlane.f32.xlu0 %v559_v31 }
  0x3b   : > { %563 = vadd.xlane.f32.xlu1 %v562_v32 }
  0x3e   : > { %566 = vadd.xlane.f32.xlu0 %v565_v35 }
  0x3f   : > { %569 = vadd.xlane.f32.xlu1 %v568_v36 }
  0x42   : > { %572 = vadd.xlane.f32.xlu0 %v571_v39 }
  0x43   : > { %575 = vadd.xlane.f32.xlu1 %v574_v40 }
  0x46   : > { %578 = vadd.xlane.f32.xlu0 %v577_v43 }
  0x47   : > { %581 = vadd.xlane.f32.xlu1 %v580_v44 }
  0x4a   : > { %584 = vadd.xlane.f32.xlu0 %v583_v47 }
  0x4b   : > { %587 = vadd.xlane.f32.xlu1 %v586_v48 }
  0xbb   : > { %v543_v49 = vpop.xlane.xlu0 %542 }
  0xbc   : > { %v549_v50 = vpop.xlane.xlu1 %548  ;;  %v590_v51 = vmul.f32 0.03125, %v543_v49 }
  0xbd   : > { %v592_v52 = vmul.f32 0.03125, %v549_v50 }
  0xbe   : > { %v6960_v53 = vsub.f32 %v523_v17, %v590_v51 }
  0xbf   : > { %v6962_v54 = vsub.f32 %v525_v18, %v592_v52  ;;  %v546_v55 = vpop.xlane.xlu0 %545 }
  0xc0   : > { %v552_v56 = vpop.xlane.xlu1 %551  ;;  %v591_v57 = vmul.f32 0.03125, %v546_v55  ;;  %v622_v59 = vmul.f32 %v6960_v53, %v6960_v53 }
  0xc1   : > { %v593_v58 = vmul.f32 0.03125, %v552_v56  ;;  %v624_v60 = vmul.f32 %v6962_v54, %v6962_v54 }
  0xc2   : > { %v6968_v61 = vsub.f32 %v524_v19, %v591_v57  ;;  %v638_v63 = vsel %vm540_vm3, %v622_v59, 0.0 }
  0xc3   : > { %v6970_v62 = vsub.f32 %v526_v22, %v593_v58  ;;  %639 = vadd.xlane.f32.xlu0 %v638_v63  ;;  %v555_v0 = vpop.xlane.xlu0 %554  ;;  %v644_v2 = vsel %vm540_vm3, %v624_v60, 0.0 }
  0xc4   : > { %v558_v1 = vpop.xlane.xlu1 %557  ;;  %v594_v3 = vmul.f32 0.03125, %v555_v0  ;;  %v623_v5 = vmul.f32 %v6968_v61, %v6968_v61 }
  0xc5   : > { %v595_v4 = vmul.f32 0.03125, %v558_v1  ;;  %v625_v6 = vmul.f32 %v6970_v62, %v6970_v62 }
  0xc6   : > { %v6979_v7 = vsub.f32 %v6910_v23, %v594_v3  ;;  %v641_v9 = vsel %vm540_vm3, %v623_v5, 0.0 }
  0xc7   : > { %v6982_v8 = vsub.f32 %v6912_v24, %v595_v4  ;;  %645 = vadd.xlane.f32.xlu0 %v644_v2  ;;  %642 = vadd.xlane.f32.xlu1 %v641_v9  ;;  %v561_v10 = vpop.xlane.xlu0 %560  ;;  %v647_v12 = vsel %vm540_vm3, %v625_v6, 0.0  ;;  %v750_v9 = vlaneseq }
  0xc8   : > { %v564_v11 = vpop.xlane.xlu1 %563  ;;  %v596_v13 = vmul.f32 0.03125, %v561_v10  ;;  %v626_v15 = vmul.f32 %v6979_v7, %v6979_v7 }
  0xc9   : > { %v597_v14 = vmul.f32 0.03125, %v564_v11  ;;  %v627_v16 = vmul.f32 %v6982_v8, %v6982_v8 }
  0xca   : > { %v6991_v17 = vsub.f32 %v6916_v27, %v596_v13  ;;  %v650_v19 = vsel %vm540_vm3, %v626_v15, 0.0  ;;  %v7052_v15 = vshrl.u32 %v750_v9, 7 }
  0xcb   : > { %v6994_v18 = vsub.f32 %v6918_v28, %v597_v14  ;;  %648 = vadd.xlane.f32.xlu1 %v647_v12  ;;  %651 = vadd.xlane.f32.xlu0 %v650_v19  ;;  %v567_v20 = vpop.xlane.xlu0 %566  ;;  %v653_v22 = vsel %vm540_vm3, %v627_v16, 0.0 }
  0xcc   : > { %v570_v21 = vpop.xlane.xlu1 %569  ;;  %v598_v23 = vmul.f32 0.03125, %v567_v20  ;;  %v628_v25 = vmul.f32 %v6991_v17, %v6991_v17  ;;  %9705 = vst [vmem:[#allocation4_spill] sm:$0xff] %v7052_v15 }
  0xcd   : > { %v599_v24 = vmul.f32 0.03125, %v570_v21  ;;  %v629_v26 = vmul.f32 %v6994_v18, %v6994_v18 }
  0xce   : > { %v7003_v27 = vsub.f32 %v6928_v33, %v598_v23  ;;  %v656_v29 = vsel %vm540_vm3, %v628_v25, 0.0 }
  0xcf   : > { %v7006_v28 = vsub.f32 %v6930_v34, %v599_v24  ;;  %654 = vadd.xlane.f32.xlu1 %v653_v22  ;;  %657 = vadd.xlane.f32.xlu0 %v656_v29  ;;  %v573_v30 = vpop.xlane.xlu0 %572  ;;  %v659_v32 = vsel %vm540_vm3, %v629_v26, 0.0  ;;  %v7055_v24 = vsub.s32 0, %v7052_v15  ;;  %v539_v29 = vld [vmem:[%s6791_s17] sm:$0x3f] }
  0xd0   : > { %v576_v31 = vpop.xlane.xlu1 %575  ;;  %v600_v35 = vmul.f32 0.03125, %v573_v30  ;;  %v630_v39 = vmul.f32 %v7003_v27, %v7003_v27 }
  0xd1   : > { %v601_v36 = vmul.f32 0.03125, %v576_v31  ;;  %v631_v33 = vmul.f32 %v7006_v28, %v7006_v28 }
  0xd2   : > { %v7015_v40 = vsub.f32 %v6936_v37, %v600_v35  ;;  %v662_v43 = vsel %vm540_vm3, %v630_v39, 0.0  ;;  %v7062_v39 = vrot.slane %v539_v29, %v7055_v24 }
  0xd3   : > { %v7018_v34 = vsub.f32 %v6938_v38, %v601_v36  ;;  %660 = vadd.xlane.f32.xlu1 %v659_v32  ;;  %663 = vadd.xlane.f32.xlu0 %v662_v43  ;;  %v579_v44 = vpop.xlane.xlu0 %578  ;;  %v665_v48 = vsel %vm540_vm3, %v631_v33, 0.0  ;;  %v7059_v32 = vsub.s32 1, %v7052_v15 }
  0xd4   : > { %v582_v47 = vpop.xlane.xlu1 %581  ;;  %v602_v49 = vmul.f32 0.03125, %v579_v44  ;;  %v632_v51 = vmul.f32 %v7015_v40, %v7015_v40 }
  0xd5   : > { %v603_v50 = vmul.f32 0.03125, %v582_v47  ;;  %v633_v37 = vmul.f32 %v7018_v34, %v7018_v34 }
  0xd6   : > { %v7027_v52 = vsub.f32 %v6944_v41, %v602_v49  ;;  %v668_v55 = vsel %vm540_vm3, %v632_v51, 0.0  ;;  %v7066_v49 = vrot.slane %v539_v29, %v7059_v32 }
  0xd7   : > { %v7030_v38 = vsub.f32 %v6946_v42, %v603_v50  ;;  %666 = vadd.xlane.f32.xlu1 %v665_v48  ;;  %669 = vadd.xlane.f32.xlu0 %v668_v55  ;;  %v585_v56 = vpop.xlane.xlu0 %584  ;;  %v671_v58 = vsel %vm540_vm3, %v633_v37, 0.0 }
  0xd8   : > { %v588_v57 = vpop.xlane.xlu1 %587  ;;  %v604_v59 = vmul.f32 0.03125, %v585_v56  ;;  %v634_v63 = vmul.f32 %v7027_v52, %v7027_v52 }
  0xd9   : > { %v605_v60 = vmul.f32 0.03125, %v588_v57  ;;  %v635_v41 = vmul.f32 %v7030_v38, %v7030_v38 }
  0xda   : > { %v7039_v0 = vsub.f32 %v6952_v45, %v604_v59  ;;  %v674_v1 = vsel %vm540_vm3, %v634_v63, 0.0 }
  0xdb   : > { %v7042_v42 = vsub.f32 %v6954_v46, %v605_v60  ;;  %672 = vadd.xlane.f32.xlu1 %v671_v58  ;;  %675 = vadd.xlane.f32.xlu0 %v674_v1  ;;  %v677_v2 = vsel %vm540_vm3, %v635_v41, 0.0 }
  0xdc   : > { %v636_v3 = vmul.f32 %v7039_v0, %v7039_v0 }
  0xdd   : > { %v637_v4 = vmul.f32 %v7042_v42, %v7042_v42 }
  0xde   : > { %v680_v5 = vsel %vm540_vm3, %v636_v3, 0.0 }
  0xdf   : > { %678 = vadd.xlane.f32.xlu1 %v677_v2  ;;  %681 = vadd.xlane.f32.xlu0 %v680_v5  ;;  %v683_v45 = vsel %vm540_vm3, %v637_v4, 0.0 }
  0xe3   : > { %684 = vadd.xlane.f32.xlu1 %v683_v45 }
 0x150   : > { %v640_v46 = vpop.xlane.xlu0 %639 }
 0x151   : > { %v686_v6 = vmul.f32 0.03125, %v640_v46 }
 0x153   : > { %v702_v10 = vadd.f32 1e-05, %v686_v6 }
 0x154   : > { %v643_v11 = vpop.xlane.xlu1 %642  ;;  %v646_v12 = vpop.xlane.xlu0 %645 }
 0x155   : > { %6301 = vrsqrt.f32 %v702_v10  ;;  %v687_v13 = vmul.f32 0.03125, %v643_v11  ;;  %v688_v14 = vmul.f32 0.03125, %v646_v12 }
 0x157   : > { %v703_v16 = vadd.f32 1e-05, %v687_v13  ;;  %v704_v19 = vadd.f32 1e-05, %v688_v14 }
 0x158   : > { %v649_v20 = vpop.xlane.xlu1 %648  ;;  %v652_v21 = vpop.xlane.xlu0 %651 }
 0x159   : > { %6303 = vrsqrt.f32 %v703_v16  ;;  %v689_v22 = vmul.f32 0.03125, %v649_v20  ;;  %v690_v23 = vmul.f32 0.03125, %v652_v21 }
 0x15a   : > { %6305 = vrsqrt.f32 %v704_v19 }
 0x15b   : > { %v705_v25 = vadd.f32 1e-05, %v689_v22  ;;  %v706_v26 = vadd.f32 1e-05, %v690_v23 }
 0x15c   : > { %v655_v30 = vpop.xlane.xlu1 %654  ;;  %v658_v31 = vpop.xlane.xlu0 %657 }
 0x15d   : > { %6307 = vrsqrt.f32 %v705_v25  ;;  %v691_v35 = vmul.f32 0.03125, %v655_v30  ;;  %v692_v36 = vmul.f32 0.03125, %v658_v31 }
 0x15e   : > { %6309 = vrsqrt.f32 %v706_v26 }
 0x15f   : > { %v6302_v33 = vpop.eup %6301  ;;  %v707_v43 = vadd.f32 1e-05, %v691_v35  ;;  %v708_v44 = vadd.f32 1e-05, %v692_v36 }
 0x160   : > { %v661_v47 = vpop.xlane.xlu1 %660  ;;  %v734_v48 = vmul.f32 %v6302_v33, %v6960_v53  ;;  %v664_v55 = vpop.xlane.xlu0 %663 }
 0x161   : > { %6311 = vrsqrt.f32 %v707_v43  ;;  %v693_v50 = vmul.f32 0.03125, %v661_v47  ;;  %v694_v1 = vmul.f32 0.03125, %v664_v55 }
 0x162   : > { %v754_v51 = vmul.f32 %v7062_v39, %v734_v48  ;;  %6313 = vrsqrt.f32 %v708_v44 }
 0x163   : > { %v6304_v37 = vpop.eup %6303  ;;  %v709_v57 = vadd.f32 1e-05, %v693_v50  ;;  %v710_v10 = vadd.f32 1e-05, %v694_v1 }
 0x164   : > { %v6306_v56 = vpop.eup %6305  ;;  %v7070_v58 = vadd.f32 %v7066_v49, %v754_v51  ;;  %v735_v59 = vmul.f32 %v6304_v37, %v6968_v61  ;;  %v667_v60 = vpop.xlane.xlu1 %666 }
 0x165   : > { %v736_v53 = vmul.f32 %v6306_v56, %v6962_v54  ;;  %6315 = vrsqrt.f32 %v709_v57  ;;  %v695_v61 = vmul.f32 0.03125, %v667_v60  ;;  %v670_v5 = vpop.xlane.xlu0 %669 }
 0x166   : > { %854 = vrot.lane.b32.xlu1 %v7070_v58, %s6682_s23  ;;  %806 = vrot.lane.b32.xlu0 %v7070_v58, %s6683_s12  ;;  %v755_v63 = vmul.f32 %v7062_v39, %v735_v59  ;;  %v696_v12 = vmul.f32 0.03125, %v670_v5  ;;  %6317 = vrsqrt.f32 %v710_v10 }
 0x167   : > { %v6308_v41 = vpop.eup %6307  ;;  %v756_v2 = vmul.f32 %v7062_v39, %v736_v53  ;;  %v711_v11 = vadd.f32 1e-05, %v695_v61 }
 0x168   : > { %v6310_v3 = vpop.eup %6309  ;;  %v7081_v4 = vadd.f32 %v7066_v49, %v755_v63  ;;  %v737_v54 = vmul.f32 %v6308_v41, %v6970_v62  ;;  %v673_v13 = vpop.xlane.xlu1 %672 }
 0x169   : > { %v7085_v45 = vadd.f32 %v7066_v49, %v756_v2  ;;  %v738_v6 = vmul.f32 %v6310_v3, %v6979_v7  ;;  %6319 = vrsqrt.f32 %v711_v11  ;;  %v712_v7 = vadd.f32 1e-05, %v696_v12  ;;  %v676_v21 = vpop.xlane.xlu0 %675 }
 0x16a   : > { %808 = vrot.lane.b32.xlu1 %v7081_v4, %s6683_s12  ;;  %v757_v46 = vmul.f32 %v7062_v39, %v737_v54  ;;  %v697_v20 = vmul.f32 0.03125, %v673_v13  ;;  %v698_v29 = vmul.f32 0.03125, %v676_v21  ;;  %v6288_v21 = vld [vmem:[%s6775_s22 + $0x8] sm:$0xff]  }
 0x16b   : > { %v6312_v9 = vpop.eup %6311  ;;  %810 = vrot.lane.b32.xlu0 %v7085_v45, %s6683_s12  ;;  %v758_v14 = vmul.f32 %v7062_v39, %v738_v6  ;;  %6321 = vrsqrt.f32 %v712_v7 }
 0x16c   : > { %v7094_v62 = vadd.f32 %v7066_v49, %v757_v46  ;;  %v739_v16 = vmul.f32 %v6312_v9, %v6982_v8  ;;  %v6314_v19 = vpop.eup %6313  ;;  %v713_v26 = vadd.f32 1e-05, %v697_v20  ;;  %v679_v30 = vpop.xlane.xlu1 %678 }
 0x16d   : > { %v7103_v22 = vadd.f32 %v7066_v49, %v758_v14  ;;  %v740_v25 = vmul.f32 %v6314_v19, %v6991_v17  ;;  %v714_v17 = vadd.f32 1e-05, %v698_v29  ;;  %v699_v33 = vmul.f32 0.03125, %v679_v30  ;;  %v682_v44 = vpop.xlane.xlu0 %681 }
 0x16e   : > { %856 = vrot.lane.b32.xlu1 %v7081_v4, %s6682_s23  ;;  %v759_v23 = vmul.f32 %v7062_v39, %v739_v16  ;;  %6323 = vrsqrt.f32 %v713_v26  ;;  %v700_v51 = vmul.f32 0.03125, %v682_v44 }
 0x16f   : > { %812 = vrot.lane.b32.xlu0 %v7094_v62, %s6683_s12  ;;  %v6316_v8 = vpop.eup %6315  ;;  %v760_v35 = vmul.f32 %v7062_v39, %v740_v25  ;;  %6325 = vrsqrt.f32 %v714_v17  ;;  %v6291_v25 = vld [vmem:[%s6775_s22 + $0x20] sm:$0xff]  }
 0x170   : > { %v7112_v31 = vadd.f32 %v7066_v49, %v759_v23  ;;  %v741_v36 = vmul.f32 %v6316_v8, %v6994_v18  ;;  %v6318_v43 = vpop.eup %6317  ;;  %v715_v18 = vadd.f32 1e-05, %v699_v33  ;;  %v685_v55 = vpop.xlane.xlu1 %684  ;;  %v716_v60 = vadd.f32 1e-05, %v700_v51  ;;  %v6290_v23 = vld [vmem:[%s6775_s22 + $0x18] sm:$0xff]   ;;  %v6292_v8 = vld [vmem:[%s6775_s22 + $0x28] sm:$0xff]  }
 0x171   : > { %v7121_v47 = vadd.f32 %v7066_v49, %v760_v35  ;;  %v742_v37 = vmul.f32 %v6318_v43, %v7003_v27  ;;  %v701_v53 = vmul.f32 0.03125, %v685_v55  ;;  %v1007_v51 = vld [vmem:[#allocation3 + $0x1] sm:$0xff] }
 0x172   : > { %858 = vrot.lane.b32.xlu1 %v7085_v45, %s6682_s23  ;;  %v761_v48 = vmul.f32 %v7062_v39, %v741_v36  ;;  %6327 = vrsqrt.f32 %v715_v18  ;;  %v7222_v36 = vld [vmem:[%s6766_s16] sm:$0xff] }
 0x173   : > { %814 = vrot.lane.b32.xlu0 %v7103_v22, %s6683_s12  ;;  %v6320_v50 = vpop.eup %6319  ;;  %v762_v63 = vmul.f32 %v7062_v39, %v742_v37  ;;  %6329 = vrsqrt.f32 %v716_v60  ;;  %v7226_v43 = vrot.slane %v7222_v36, %v7055_v24  ;;  %v7230_v44 = vrot.slane %v7222_v36, %v7059_v32  ;;  %v955_v18 = vld [vmem:[#allocation3] sm:$0xff] }
 0x174   : > { %v7130_v56 = vadd.f32 %v7066_v49, %v761_v48  ;;  %v743_v57 = vmul.f32 %v6320_v50, %v7006_v28  ;;  %v717_v28 = vadd.f32 1e-05, %v701_v53  ;;  %v7233_v48 = vsub.s32 2, %v7052_v15 }
 0x175   : > { %v6322_v59 = vpop.eup %6321  ;;  %v7145_v2 = vadd.f32 %v7066_v49, %v762_v63  ;;  %v975_v60 = vmul.f32 %v7226_v43, %v955_v18  ;;  %v1027_v53 = vmul.f32 %v7230_v44, %v1007_v51 }
 0x176   : > { %860 = vrot.lane.b32.xlu1 %v7094_v62, %s6682_s23  ;;  %v763_v27 = vmul.f32 %v7062_v39, %v743_v57  ;;  %v744_v41 = vmul.f32 %v6322_v59, %v7015_v40  ;;  %6331 = vrsqrt.f32 %v717_v28  ;;  %9706 = vst [vmem:[#allocation5_spill] sm:$0xff] %v7233_v48  ;;  %v7241_v57 = vrot.slane %v7222_v36, %v7233_v48 }
 0x177   : > { %816 = vrot.lane.b32.xlu0 %v7112_v31, %s6683_s12  ;;  %v7244_v59 = vsub.s32 3, %v7052_v15 }
 0x178   : > { %v6324_v1 = vpop.eup %6323  ;;  %v7148_v3 = vadd.f32 %v7066_v49, %v763_v27  ;;  %v764_v61 = vmul.f32 %v7062_v39, %v744_v41  ;;  %v1059_v27 = vld [vmem:[#allocation3 + $0x2] sm:$0xff] }
 0x179   : > { %v745_v54 = vmul.f32 %v6324_v1, %v7018_v34  ;;  %v6326_v40 = vpop.eup %6325  ;;  %9707 = vst [vmem:[#allocation6_spill] sm:$0xff] %v7244_v59  ;;  %v7254_v28 = vrot.slane %v7222_v36, %v7244_v59 }
 0x17a   : > { %862 = vrot.lane.b32.xlu1 %v7103_v22, %s6682_s23  ;;  %v7157_v5 = vadd.f32 %v7066_v49, %v764_v61  ;;  %v746_v6 = vmul.f32 %v6326_v40, %v7027_v52  ;;  %v963_v61 = vld [vmem:[#allocation3 + $0xa0] sm:$0xff]  ;;  %v1043_v40 = vadd.f32 %v1027_v53, %v975_v60  ;;  %v7303_v53 = vld [vmem:[%s6766_s16 + $0x8] sm:$0xf]  ;;  %s6694_s16 = smov 8  }
 0x17b   : > { %818 = vrot.lane.b32.xlu0 %v7121_v47, %s6683_s12  ;;  %v765_v46 = vmul.f32 %v7062_v39, %v745_v54  ;;  %v1015_v54 = vld [vmem:[#allocation3 + $0xa1] sm:$0xff]  ;;  %9708 = vst [vmem:[#allocation7_spill] sm:$0xff] %v7303_v53 }
 0x17c   : > { %v6328_v9 = vpop.eup %6327  ;;  %v766_v10 = vmul.f32 %v7062_v39, %v746_v6 }
 0x17d   : > { %v7166_v34 = vadd.f32 %v7066_v49, %v765_v46  ;;  %v747_v11 = vmul.f32 %v6328_v9, %v7030_v38  ;;  %v6330_v12 = vpop.eup %6329  ;;  %v1079_v46 = vmul.f32 %v7241_v57, %v1059_v27  ;;  %v9686_v9 = vsub.s32 4, %v7052_v15 }
 0x17e   : > { %864 = vrot.lane.b32.xlu1 %v7112_v31, %s6682_s23  ;;  %v7175_v52 = vadd.f32 %v7066_v49, %v766_v10  ;;  %v748_v14 = vmul.f32 %v6330_v12, %v7039_v0 }
 0x17f   : > { %820 = vrot.lane.b32.xlu0 %v7130_v56, %s6683_s12  ;;  %v767_v13 = vmul.f32 %v7062_v39, %v747_v11 }
 0x180   : > { %v6332_v16 = vpop.eup %6331  ;;  %v768_v19 = vmul.f32 %v7062_v39, %v748_v14 }
 0x181   : > { %v7184_v38 = vadd.f32 %v7066_v49, %v767_v13  ;;  %v749_v7 = vmul.f32 %v6332_v16, %v7042_v42  ;;  %v983_v16 = vmul.f32 %v7226_v43, %v963_v61 }
 0x182   : > { %866 = vrot.lane.b32.xlu1 %v7121_v47, %s6682_s23  ;;  %v7193_v0 = vadd.f32 %v7066_v49, %v768_v19  ;;  %v1035_v19 = vmul.f32 %v7230_v44, %v1015_v54 }
 0x183   : > { %868 = vrot.lane.b32.xlu0 %v7130_v56, %s6682_s23  ;;  %v769_v20 = vmul.f32 %v7062_v39, %v749_v7  ;;  %v6287_v39 = vld [vmem:[%s6775_s22] sm:$0xff]  }
 0x184   : > { %5762 = vmatprep.subr.bf16.mxu0 %v6287_v39  ;;  %v1051_v18 = vadd.f32 %v1035_v19, %v983_v16 }
 0x185   : > { %v7201_v42 = vadd.f32 %v7066_v49, %v769_v20  ;;  %5763 = vmatpush3.bf16.msra.mxu0 %v6287_v39  ;;  %v6289_v49 = vld [vmem:[%s6775_s22 + $0x10] sm:$0xff]   ;;  %v1067_v20 = vld [vmem:[#allocation3 + $0xa2] sm:$0xff]  ;;  %v1286_v39 = vsub.s32 6, %v7052_v15  ;;  %s6695_s22 = smov 16  }
 0x186   : > { %822 = vrot.lane.b32.xlu1 %v7145_v2, %s6683_s12  ;;  %5764 = vmatprep.subr.bf16.mxu0 %v6288_v21  ;;  %v1087_v51 = vmul.f32 %v7241_v57, %v1067_v20 }
 0x187   : > { %824 = vrot.lane.b32.xlu0 %v7148_v3, %s6683_s12  ;;  %v7300_v60 = vrot.slane %v7222_v36, %v1286_v39 }
 0x188   : > { %v7321_v19 = vadd.f32 %v1087_v51, %v1051_v18  ;;  %v1283_v51 = vld [vmem:[#allocation3 + $0x130] sm:$0xff] }
 0x189   : > { %5765 = vmatpush3.bf16.msra.mxu0 %v6288_v21  ;;  %v1095_v21 = vadd.f32 %v1079_v46, %v1043_v40 }
 0x18a   : > { %870 = vrot.lane.b32.xlu1 %v7145_v2, %s6682_s23  ;;  %5766 = vmatprep.subr.bf16.mxu0 %v6289_v49 }
 0x18b   : > { %826 = vrot.lane.b32.xlu0 %v7157_v5, %s6683_s12 }
 0x18d   : > { %5767 = vmatpush3.bf16.msra.mxu0 %v6289_v49 }
 0x18e   : > { %872 = vrot.lane.b32.xlu1 %v7148_v3, %s6682_s23  ;;  %5768 = vmatprep.subr.bf16.mxu0 %v6290_v23 }
 0x18f   : > { %828 = vrot.lane.b32.xlu0 %v7166_v34, %s6683_s12 }
 0x191   : > { %5769 = vmatpush3.bf16.msra.mxu0 %v6290_v23 }
 0x192   : > { %874 = vrot.lane.b32.xlu1 %v7157_v5, %s6682_s23  ;;  %5770 = vmatprep.subr.bf16.mxu0 %v6291_v25 }
 0x193   : > { %830 = vrot.lane.b32.xlu0 %v7175_v52, %s6683_s12 }
 0x195   : > { %5771 = vmatpush3.bf16.msra.mxu0 %v6291_v25 }
 0x196   : > { %876 = vrot.lane.b32.xlu1 %v7166_v34, %s6682_s23  ;;  %5772 = vmatprep.subr.bf16.mxu0 %v6292_v8 }
 0x197   : > { %832 = vrot.lane.b32.xlu0 %v7184_v38, %s6683_s12 }
 0x199   : > { %5773 = vmatpush3.bf16.msra.mxu0 %v6292_v8 }
 0x19a   : > { %878 = vrot.lane.b32.xlu1 %v7175_v52, %s6682_s23 }
 0x19b   : > { %834 = vrot.lane.b32.xlu0 %v7193_v0, %s6683_s12 }
 0x19e   : > { %880 = vrot.lane.b32.xlu1 %v7184_v38, %s6682_s23 }
 0x19f   : > { %836 = vrot.lane.b32.xlu0 %v7201_v42, %s6683_s12  ;;  %s6693_s12 = smov 40  }
 0x1a2   : > { %882 = vrot.lane.b32.xlu1 %v7193_v0, %s6682_s23 }
 0x1a6   : > { %884 = vrot.lane.b32.xlu1 %v7201_v42, %s6682_s23 }
 0x1d8   : > { %v855_v26 = vpop.permute.xlu1 %854  ;;  %v807_v29 = vpop.permute.xlu0 %806 }
 0x1d9   : > { %v902_v30 = vsel %vm540_vm3, %v7070_v58, %v807_v29  ;;  %v7280_v29 = vrot.slane %v7222_v36, %v9686_v9 }
 0x1da   : > { %v919_v35 = vsel %vm918_vm4, %v902_v30, %v855_v26 }
 0x1db   : > { %937 = vst.msk [vmem:[#allocation3 + $0x11] sm:$0xff] %vm936_vm5, %v919_v35 }
 0x1dc   : > { %v809_v17 = vpop.permute.xlu1 %808 }
 0x1dd   : > { %v811_v33 = vpop.permute.xlu0 %810  ;;  %v903_v58 = vsel %vm540_vm3, %v7081_v4, %v809_v17 }
 0x1de   : > { %v904_v4 = vsel %vm540_vm3, %v7085_v45, %v811_v33 }
 0x1e0   : > { %v857_v50 = vpop.permute.xlu1 %856 }
 0x1e1   : > { %v920_v37 = vsel %vm918_vm4, %v903_v58, %v857_v50  ;;  %v813_v55 = vpop.permute.xlu0 %812  ;;  %v1338_v58 = vsub.s32 7, %v7052_v15 }
 0x1e2   : > { %938 = vst.msk [vmem:[#allocation3 + $0x21] sm:$0xff] %vm936_vm5, %v920_v37  ;;  %v905_v6 = vsel %vm540_vm3, %v7094_v62, %v813_v55  ;;  %v956_v10 = vld [vmem:[#allocation3 + $0x10] sm:$0xff]  ;;  %v9685_v62 = vsub.s32 5, %v7052_v15 }
 0x1e3   : > { %v1008_v7 = vld [vmem:[#allocation3 + $0x11] sm:$0xff]  ;;  %v1131_v49 = vmul.f32 %v7254_v28, %v956_v10  ;;  %v976_v50 = vmul.f32 %v7226_v43, %v956_v10 }
 0x1e4   : > { %v859_v63 = vpop.permute.xlu1 %858  ;;  %v7297_v55 = vrot.slane %v7222_v36, %v9685_v62  ;;  %v1060_v54 = vld [vmem:[#allocation3 + $0x12] sm:$0xff]  ;;  %v1183_v10 = vmul.f32 %v7280_v29, %v1008_v7 }
 0x1e5   : > { %v921_v41 = vsel %vm918_vm4, %v904_v4, %v859_v63  ;;  %v815_v1 = vpop.permute.xlu0 %814  ;;  %v1147_v4 = vadd.f32 %v1131_v49, %v1095_v21  ;;  %v1080_v20 = vmul.f32 %v7241_v57, %v1060_v54 }
 0x1e6   : > { %939 = vst.msk [vmem:[#allocation3 + $0x31] sm:$0xff] %vm936_vm5, %v921_v41  ;;  %v906_v8 = vsel %vm540_vm3, %v7103_v22, %v815_v1  ;;  %v1028_v22 = vmul.f32 %v7230_v44, %v1008_v7  ;;  %v1235_v49 = vmul.f32 %v7297_v55, %v1060_v54 }
 0x1e7   : > { %v1199_v21 = vadd.f32 %v1183_v10, %v1147_v4 }
 0x1e8   : > { %v861_v45 = vpop.permute.xlu1 %860 }
 0x1e9   : > { %v7260_v11 = vld [vmem:[#allocation3 + $0x20] sm:$0xff]  ;;  %v922_v13 = vsel %vm918_vm4, %v905_v6, %v861_v45  ;;  %v817_v14 = vpop.permute.xlu0 %816  ;;  %v7313_v6 = vrot.slane %v7222_v36, %v1338_v58  ;;  %v1044_v45 = vadd.f32 %v1028_v22, %v976_v50  ;;  %v1251_v10 = vadd.f32 %v1235_v49, %v1199_v21 }
 0x1ea   : > { %v7262_v12 = vld [vmem:[#allocation3 + $0x21] sm:$0xff]  ;;  %940 = vst.msk [vmem:[#allocation3 + $0x41] sm:$0xff] %vm936_vm5, %v922_v13  ;;  %v977_v23 = vmul.f32 %v7226_v43, %v7260_v11  ;;  %v907_v41 = vsel %vm540_vm3, %v7112_v31, %v817_v14  ;;  %v7325_v31 = vrot.slane %v7303_v53, %v7055_v24  ;;  %v7329_v14 = vrot.slane %v7303_v53, %v7059_v32  ;;  %v1327_v24 = vld [vmem:[#allocation3 + $0x91] sm:$0xff] }
 0x1eb   : > { %v1029_v25 = vmul.f32 %v7230_v44, %v7262_v12  ;;  %v7292_v37 = vld [vmem:[#allocation3 + $0x22] sm:$0xff]  ;;  %v1132_v39 = vmul.f32 %v7254_v28, %v7260_v11  ;;  %v1096_v4 = vadd.f32 %v1080_v20, %v1044_v45  ;;  %v7370_v20 = vmul.f32 %v7300_v60, %v1283_v51 }
 0x1ec   : > { %v863_v26 = vpop.permute.xlu1 %862  ;;  %9709 = vst [vmem:[#allocation8_spill] sm:$0xff] %v7329_v14  ;;  %v1081_v36 = vmul.f32 %v7241_v57, %v7292_v37 }
 0x1ed   : > { %v7282_v30 = vld [vmem:[#allocation3 + $0x30] sm:$0xff]  ;;  %v923_v17 = vsel %vm918_vm4, %v906_v8, %v863_v26  ;;  %v819_v33 = vpop.permute.xlu0 %818  ;;  %v1045_v61 = vadd.f32 %v1029_v25, %v977_v23  ;;  %v1148_v45 = vadd.f32 %v1132_v39, %v1096_v4  ;;  %9711 = vst [vmem:[#allocation10_spill] sm:$0xff] %v7370_v20 }
 0x1ee   : > { %v7284_v35 = vld [vmem:[#allocation3 + $0x31] sm:$0xff]  ;;  %941 = vst.msk [vmem:[#allocation3 + $0x51] sm:$0xff] %vm936_vm5, %v923_v17  ;;  %v978_v63 = vmul.f32 %v7226_v43, %v7282_v30  ;;  %v908_v25 = vsel %vm540_vm3, %v7121_v47, %v819_v33  ;;  %v1133_v17 = vmul.f32 %v7254_v28, %v7282_v30 }
 0x1ef   : > { %v1030_v27 = vmul.f32 %v7230_v44, %v7284_v35  ;;  %v7333_v7 = vld [vmem:[#allocation3 + $0x32] sm:$0xff]  ;;  %v1097_v26 = vadd.f32 %v1081_v36, %v1045_v61 }
 0x1f0   : > { %v865_v1 = vpop.permute.xlu1 %864  ;;  %v1275_v23 = vld [vmem:[#allocation3 + $0x90] sm:$0xff]  ;;  %v1082_v47 = vmul.f32 %v7241_v57, %v7333_v7 }
 0x1f1   : > { %v924_v40 = vsel %vm918_vm4, %v907_v41, %v865_v1  ;;  %v821_v46 = vpop.permute.xlu0 %820  ;;  %v7316_v13 = vld [vmem:[#allocation3 + $0x40] sm:$0xff]  ;;  %v1046_v8 = vadd.f32 %v1030_v27, %v978_v63  ;;  %v1335_v63 = vld [vmem:[#allocation3 + $0x131] sm:$0xff]  ;;  %v7354_v27 = vmul.f32 %v7300_v60, %v1275_v23  ;;  %v7357_v41 = vmul.f32 %v7313_v6, %v1327_v24 }
 0x1f2   : > { %v7318_v16 = vld [vmem:[#allocation3 + $0x41] sm:$0xff]  ;;  %942 = vst.msk [vmem:[#allocation3 + $0x61] sm:$0xff] %vm936_vm5, %v924_v40  ;;  %v979_v58 = vmul.f32 %v7226_v43, %v7316_v13  ;;  %v909_v33 = vsel %vm540_vm3, %v7130_v56, %v821_v46  ;;  %v1379_v1 = vld [vmem:[#allocation3 + $0x92] sm:$0xff]  ;;  %v1288_v56 = vmul.f32 %v7300_v60, %v7260_v11  ;;  %v1134_v24 = vmul.f32 %v7254_v28, %v7316_v13 }
 0x1f3   : > { %v1031_v50 = vmul.f32 %v7230_v44, %v7318_v16  ;;  %9710 = vst [vmem:[#allocation9_spill] sm:$0xff] %v7357_v41  ;;  %v7366_v46 = vld [vmem:[#allocation3 + $0x42] sm:$0xff]  ;;  %v1098_v23 = vadd.f32 %v1082_v47, %v1046_v8  ;;  %v7375_v39 = vmul.f32 %v7313_v6, %v1335_v63  ;;  %v1184_v11 = vmul.f32 %v7280_v29, %v7262_v12 }
 0x1f4   : > { %v867_v32 = vpop.permute.xlu1 %866  ;;  %v7380_v21 = vmul.f32 %v7325_v31, %v1379_v1  ;;  %v1304_v4 = vadd.f32 %v1288_v56, %v1251_v10  ;;  %v1340_v47 = vmul.f32 %v7313_v6, %v7262_v12 }
 0x1f5   : > { %v925_v22 = vsel %vm918_vm4, %v908_v25, %v867_v32  ;;  %v869_v18 = vpop.permute.xlu0 %868  ;;  %v7359_v61 = vld [vmem:[#allocation3 + $0x50] sm:$0xff]  ;;  %v1149_v25 = vadd.f32 %v1133_v17, %v1097_v26  ;;  %v1047_v32 = vadd.f32 %v1031_v50, %v979_v58  ;;  %9712 = vst [vmem:[#allocation11_spill] sm:$0xff] %v7375_v39  ;;  %v1185_v17 = vmul.f32 %v7280_v29, %v7284_v35 }
 0x1f6   : > { %943 = vst.msk [vmem:[#allocation3 + $0x71] sm:$0xff] %vm936_vm5, %v925_v22  ;;  %v7361_v54 = vld [vmem:[#allocation3 + $0x51] sm:$0xff]  ;;  %v926_v40 = vsel %vm918_vm4, %v909_v33, %v869_v18  ;;  %9713 = vst [vmem:[#allocation12_spill] sm:$0xff] %v7380_v21  ;;  %v980_v49 = vmul.f32 %v7226_v43, %v7359_v61  ;;  %v1236_v58 = vmul.f32 %v7297_v55, %v7292_v37 }
 0x1f7   : > { %944 = vst.msk [vmem:[#allocation3 + $0x81] sm:$0xff] %vm936_vm5, %v926_v40  ;;  %v1032_v8 = vmul.f32 %v7230_v44, %v7361_v54  ;;  %v1083_v50 = vmul.f32 %v7241_v57, %v7366_v46  ;;  %v1200_v51 = vadd.f32 %v1184_v11, %v1148_v45  ;;  %v1135_v33 = vmul.f32 %v7254_v28, %v7359_v61  ;;  %v7402_v9 = vld [vmem:[#allocation3 + $0x52] sm:$0xff] }
 0x1f8   : > { %v823_v36 = vpop.permute.xlu1 %822  ;;  %v1150_v40 = vadd.f32 %v1134_v24, %v1098_v23  ;;  %v1201_v62 = vadd.f32 %v1185_v17, %v1149_v25  ;;  %v7416_v23 = vmul.f32 %v7325_v31, %v7292_v37 }
 0x1f9   : > { %v825_v22 = vpop.permute.xlu0 %824  ;;  %v7386_v18 = vld [vmem:[#allocation3 + $0x60] sm:$0xff]  ;;  %v910_v63 = vsel %vm540_vm3, %v7145_v2, %v823_v36  ;;  %v1099_v56 = vadd.f32 %v1083_v50, %v1047_v32  ;;  %v1048_v11 = vadd.f32 %v1032_v8, %v980_v49  ;;  %v1186_v2 = vmul.f32 %v7280_v29, %v7318_v16 }
 0x1fa   : > { %v7388_v26 = vld [vmem:[#allocation3 + $0x61] sm:$0xff]  ;;  %v981_v15 = vmul.f32 %v7226_v43, %v7386_v18  ;;  %v1237_v36 = vmul.f32 %v7297_v55, %v7333_v7  ;;  %9714 = vst [vmem:[#allocation13_spill] sm:$0xff] %v7416_v23  ;;  %v1252_v17 = vadd.f32 %v1236_v58, %v1200_v51  ;;  %v1289_v32 = vmul.f32 %v7300_v60, %v7282_v30 }
 0x1fb   : > { %v1033_v45 = vmul.f32 %v7230_v44, %v7388_v26  ;;  %v7426_v49 = vmul.f32 %v7313_v6, %v7284_v35  ;;  %v7428_v8 = vadd.f32 %v1340_v47, %v1304_v4  ;;  %v1084_v50 = vmul.f32 %v7241_v57, %v7402_v9 }
 0x1fc   : > { %v871_v1 = vpop.permute.xlu1 %870  ;;  %v911_v37 = vsel %vm540_vm3, %v7148_v3, %v825_v22  ;;  %v1238_v58 = vmul.f32 %v7297_v55, %v7366_v46  ;;  %v1151_v59 = vadd.f32 %v1135_v33, %v1099_v56  ;;  %v1253_v4 = vadd.f32 %v1237_v36, %v1201_v62 }
 0x1fd   : > { %v927_v10 = vsel %vm918_vm4, %v910_v63, %v871_v1  ;;  %v827_v12 = vpop.permute.xlu0 %826  ;;  %v7418_v24 = vld [vmem:[#allocation3 + $0x70] sm:$0xff]  ;;  %9715 = vst [vmem:[#allocation14_spill] sm:$0xff] %v7428_v8  ;;  %v7432_v63 = vld [vmem:[#allocation3 + $0x62] sm:$0xff]  ;;  %v1049_v30 = vadd.f32 %v1033_v45, %v981_v15  ;;  %v1100_v47 = vadd.f32 %v1084_v50, %v1048_v11  ;;  %v1136_v53 = vmul.f32 %v7254_v28, %v7386_v18 }
 0x1fe   : > { %945 = vst.msk [vmem:[#allocation3 + $0xb1] sm:$0xff] %vm936_vm5, %v927_v10  ;;  %v7420_v25 = vld [vmem:[#allocation3 + $0x71] sm:$0xff]  ;;  %9716 = vst [vmem:[#allocation15_spill] sm:$0xff] %v7432_v63  ;;  %v1202_v10 = vadd.f32 %v1186_v2, %v1150_v40  ;;  %v982_v48 = vmul.f32 %v7226_v43, %v7418_v24  ;;  %v1085_v15 = vmul.f32 %v7241_v57, %v7432_v63 }
 0x1ff   : > { %v1034_v3 = vmul.f32 %v7230_v44, %v7420_v25  ;;  %v1187_v22 = vmul.f32 %v7280_v29, %v7361_v54  ;;  %v1290_v62 = vmul.f32 %v7300_v60, %v7316_v13  ;;  %v7452_v33 = vadd.f32 %v1289_v32, %v1252_v17  ;;  %v7462_v50 = vld [vmem:[#allocation3 + $0x72] sm:$0xff] }
 0x200   : > { %v873_v1 = vpop.permute.xlu1 %872  ;;  %v912_v40 = vsel %vm540_vm3, %v7157_v5, %v827_v12  ;;  %v1239_v56 = vmul.f32 %v7297_v55, %v7402_v9  ;;  %v1254_v11 = vadd.f32 %v1238_v58, %v1202_v10  ;;  %v7460_v2 = vmul.f32 %v7313_v6, %v7318_v16  ;;  %9717 = vst [vmem:[#allocation16_spill] sm:$0xff] %v7462_v50 }
 0x201   : > { %v928_v51 = vsel %vm918_vm4, %v911_v37, %v873_v1  ;;  %v829_v35 = vpop.permute.xlu0 %828  ;;  %v1101_v36 = vadd.f32 %v1085_v15, %v1049_v30  ;;  %v1137_v13 = vmul.f32 %v7254_v28, %v7418_v24  ;;  %v1203_v12 = vadd.f32 %v1187_v22, %v1151_v59 }
 0x202   : > { %946 = vst.msk [vmem:[#allocation3 + $0xc1] sm:$0xff] %vm936_vm5, %v928_v51  ;;  %v1050_v37 = vadd.f32 %v1034_v3, %v982_v48  ;;  %v1152_v1 = vadd.f32 %v1136_v53, %v1100_v47  ;;  %v1291_v16 = vmul.f32 %v7300_v60, %v7359_v61  ;;  %v7474_v10 = vadd.f32 %v1290_v62, %v1253_v4  ;;  %v1118_v53 = vld [vmem:[#allocation3 + $0x80] sm:$0xff] }
 0x203   : > { %v1188_v58 = vmul.f32 %v7280_v29, %v7388_v26  ;;  %v7484_v48 = vmul.f32 %v7313_v6, %v7361_v54  ;;  %v1086_v59 = vmul.f32 %v7241_v57, %v7462_v50  ;;  %v913_v61 = vsel %vm540_vm3, %v7166_v34, %v829_v35  ;;  %v1170_v62 = vld [vmem:[#allocation3 + $0x81] sm:$0xff] }
 0x204   : > { %v875_v45 = vpop.permute.xlu1 %874  ;;  %v1240_v47 = vmul.f32 %v7297_v55, %v7432_v63  ;;  %v1292_v3 = vmul.f32 %v7300_v60, %v7386_v18  ;;  %v1153_v22 = vadd.f32 %v1137_v13, %v1101_v36  ;;  %v7499_v39 = vadd.f32 %v1291_v16, %v1254_v11 }
 0x205   : > { %v7466_v17 = vld [vmem:[#allocation3 + $0xb0] sm:$0xff]  ;;  %v929_v5 = vsel %vm918_vm4, %v912_v40, %v875_v45  ;;  %v831_v15 = vpop.permute.xlu0 %830  ;;  %v1102_v20 = vadd.f32 %v1086_v59, %v1050_v37  ;;  %v1204_v13 = vadd.f32 %v1188_v58, %v1152_v1  ;;  %v1138_v37 = vmul.f32 %v7254_v28, %v1118_v53  ;;  %v7520_v1 = vld [vmem:[#allocation3 + $0x82] sm:$0xff] }
 0x206   : > { %v7468_v32 = vld [vmem:[#allocation3 + $0xb1] sm:$0xff]  ;;  %947 = vst.msk [vmem:[#allocation3 + $0xd1] sm:$0xff] %vm936_vm5, %v929_v5  ;;  %v984_v30 = vmul.f32 %v7226_v43, %v7466_v17  ;;  %v1255_v5 = vadd.f32 %v1239_v56, %v1203_v12  ;;  %v1241_v56 = vmul.f32 %v7297_v55, %v7462_v50  ;;  %v1344_v12 = vmul.f32 %v7313_v6, %v7388_v26 }
 0x207   : > { %v1036_v51 = vmul.f32 %v7230_v44, %v7468_v32  ;;  %v7501_v34 = vld [vmem:[#allocation3 + $0xb2] sm:$0xff]  ;;  %v1190_v16 = vmul.f32 %v7280_v29, %v1170_v62  ;;  %9718 = vst [vmem:[#allocation17_spill] sm:$0xff] %v7520_v1  ;;  %v1256_v14 = vadd.f32 %v1240_v47, %v1204_v13  ;;  %v1139_v47 = vmul.f32 %v7254_v28, %v7466_v17 }
 0x208   : > { %v877_v4 = vpop.permute.xlu1 %876  ;;  %v1088_v58 = vmul.f32 %v7241_v57, %v7501_v34 }
 0x209   : > { %v7494_v40 = vld [vmem:[#allocation3 + $0xc0] sm:$0xff]  ;;  %v930_v45 = vsel %vm918_vm4, %v913_v61, %v877_v4  ;;  %v1189_v61 = vmul.f32 %v7280_v29, %v7420_v25  ;;  %v1052_v11 = vadd.f32 %v1036_v51, %v984_v30  ;;  %v914_v4 = vsel %vm540_vm3, %v7175_v52, %v831_v15  ;;  %v833_v21 = vpop.permute.xlu0 %832 }
 0x20a   : > { %v7496_v54 = vld [vmem:[#allocation3 + $0xc1] sm:$0xff]  ;;  %v985_v35 = vmul.f32 %v7226_v43, %v7494_v40  ;;  %948 = vst.msk [vmem:[#allocation3 + $0xe1] sm:$0xff] %vm936_vm5, %v930_v45  ;;  %v1140_v23 = vmul.f32 %v7254_v28, %v7494_v40 }
 0x20b   : > { %v1037_v18 = vmul.f32 %v7230_v44, %v7496_v54  ;;  %v7507_v36 = vld [vmem:[#allocation3 + $0xc2] sm:$0xff]  ;;  %v1104_v50 = vadd.f32 %v1088_v58, %v1052_v11  ;;  %v1308_v58 = vadd.f32 %v1292_v3, %v1255_v5 }
 0x20c   : > { %v879_v45 = vpop.permute.xlu1 %878  ;;  %v1089_v30 = vmul.f32 %v7241_v57, %v7507_v36 }
 0x20d   : > { %v1053_v59 = vadd.f32 %v1037_v18, %v985_v35  ;;  %v7526_v51 = vld [vmem:[#allocation3 + $0xd0] sm:$0xff]  ;;  %v931_v41 = vsel %vm918_vm4, %v914_v4, %v879_v45  ;;  %v1205_v35 = vadd.f32 %v1189_v61, %v1153_v22  ;;  %v1154_v18 = vadd.f32 %v1138_v37, %v1102_v20 }
 0x20e   : > { %v7528_v26 = vld [vmem:[#allocation3 + $0xd1] sm:$0xff]  ;;  %v986_v52 = vmul.f32 %v7226_v43, %v7526_v51  ;;  %949 = vst.msk [vmem:[#allocation3 + $0xf1] sm:$0xff] %vm936_vm5, %v931_v41  ;;  %v1141_v22 = vmul.f32 %v7254_v28, %v7526_v51  ;;  %v1242_v20 = vmul.f32 %v7297_v55, %v7520_v1  ;;  %v915_v37 = vsel %vm540_vm3, %v7184_v38, %v833_v21 }
 0x20f   : > { %v1038_v15 = vmul.f32 %v7230_v44, %v7528_v26  ;;  %v1105_v63 = vadd.f32 %v1089_v30, %v1053_v59  ;;  %v7538_v8 = vld [vmem:[#allocation3 + $0xd2] sm:$0xff]  ;;  %v1293_v41 = vmul.f32 %v7300_v60, %v7418_v24  ;;  %v1294_v45 = vmul.f32 %v7300_v60, %v1118_v53 }
 0x210   : > { %v881_v4 = vpop.permute.xlu1 %880  ;;  %v1090_v30 = vmul.f32 %v7241_v57, %v7538_v8  ;;  %v1257_v38 = vadd.f32 %v1241_v56, %v1205_v35  ;;  %v1345_v21 = vmul.f32 %v7313_v6, %v7420_v25  ;;  %v7560_v24 = vmul.f32 %v7313_v6, %v1170_v62 }
 0x211   : > { %v1054_v61 = vadd.f32 %v1038_v15, %v986_v52  ;;  %v967_v13 = vld [vmem:[#allocation3 + $0xe0] sm:$0xff]  ;;  %v932_v59 = vsel %vm918_vm4, %v915_v37, %v881_v4  ;;  %v1206_v17 = vadd.f32 %v1190_v16, %v1154_v18  ;;  %v1156_v52 = vadd.f32 %v1140_v23, %v1104_v50  ;;  %v835_v4 = vpop.permute.xlu0 %834 }
 0x212   : > { %v7550_v11 = vld [vmem:[#allocation3 + $0xe1] sm:$0xff]  ;;  %950 = vst.msk [vmem:[#allocation3 + $0x101] sm:$0xff] %vm936_vm5, %v932_v59  ;;  %v1157_v15 = vadd.f32 %v1141_v22, %v1105_v63  ;;  %v1309_v1 = vadd.f32 %v1293_v41, %v1256_v14  ;;  %v987_v53 = vmul.f32 %v7226_v43, %v967_v13  ;;  %v1142_v5 = vmul.f32 %v7254_v28, %v967_v13 }
 0x213   : > { %v1106_v37 = vadd.f32 %v1090_v30, %v1054_v61  ;;  %v1039_v3 = vmul.f32 %v7230_v44, %v7550_v11  ;;  %v1155_v56 = vadd.f32 %v1139_v47, %v7321_v19  ;;  %v1193_v25 = vmul.f32 %v7280_v29, %v7528_v26  ;;  %v1071_v35 = vld [vmem:[#allocation3 + $0xe2] sm:$0xff] }
 0x214   : > { %v883_v62 = vpop.permute.xlu1 %882  ;;  %v7571_v23 = vadd.f32 %v7426_v49, %v7452_v33  ;;  %v7575_v14 = vadd.f32 %v7460_v2, %v7474_v10  ;;  %v1191_v63 = vmul.f32 %v7280_v29, %v7468_v32  ;;  %v1192_v50 = vmul.f32 %v7280_v29, %v7496_v54 }
 0x215   : > { %v7583_v19 = vadd.f32 %v7484_v48, %v7499_v39  ;;  %v7585_v16 = vadd.f32 %v1344_v12, %v1308_v58  ;;  %v1243_v49 = vmul.f32 %v7297_v55, %v7501_v34  ;;  %v1209_v33 = vadd.f32 %v1193_v25, %v1157_v15  ;;  %v968_v61 = vld [vmem:[#allocation3 + $0xf0] sm:$0xff]  ;;  %v837_v58 = vpop.permute.xlu0 %836 }
 0x216   : > { %v1258_v18 = vadd.f32 %v1242_v20, %v1206_v17  ;;  %v7589_v2 = vadd.f32 %v1294_v45, %v1257_v38  ;;  %v1208_v10 = vadd.f32 %v1192_v50, %v1156_v52  ;;  %v1055_v22 = vadd.f32 %v1039_v3, %v987_v53  ;;  %v1020_v41 = vld [vmem:[#allocation3 + $0xf1] sm:$0xff] }
 0x217   : > { %v1158_v32 = vadd.f32 %v1142_v5, %v1106_v37  ;;  %v7591_v47 = vadd.f32 %v1345_v21, %v1309_v1  ;;  %v1207_v59 = vadd.f32 %v1191_v63, %v1155_v56  ;;  %v1245_v39 = vmul.f32 %v7297_v55, %v7538_v8  ;;  %v7625_v25 = vld [vmem:[#allocation3 + $0xf2] sm:$0xff] }
 0x218   : > { %v7597_v48 = vmul.f32 %v7325_v31, %v7333_v7  ;;  %v7601_v34 = vmul.f32 %v7325_v31, %v7366_v46  ;;  %v1244_v12 = vmul.f32 %v7297_v55, %v7507_v36  ;;  %v7607_v20 = vmul.f32 %v7300_v60, %v7494_v40  ;;  %v885_v52 = vpop.permute.xlu1 %884 }
 0x219   : > { %v1091_v1 = vmul.f32 %v7241_v57, %v1071_v35  ;;  %v1194_v45 = vmul.f32 %v7280_v29, %v7550_v11  ;;  %v7614_v7 = vmul.f32 %v7313_v6, %v7496_v54  ;;  %v1261_v30 = vadd.f32 %v1245_v39, %v1209_v33  ;;  %v969_v21 = vld [vmem:[#allocation3 + $0x100] sm:$0xff] }
 0x21a   : > { %v988_v46 = vmul.f32 %v7226_v43, %v968_v61  ;;  %v1040_v38 = vmul.f32 %v7230_v44, %v1020_v41  ;;  %v1021_v17 = vld [vmem:[#allocation3 + $0x101] sm:$0xff]  ;;  %v1260_v40 = vadd.f32 %v1244_v12, %v1208_v10  ;;  %v1143_v53 = vmul.f32 %v7254_v28, %v968_v61 }
 0x21b   : > { %v1107_v15 = vadd.f32 %v1091_v1, %v1055_v22  ;;  %v1210_v37 = vadd.f32 %v1194_v45, %v1158_v32  ;;  %v1246_v3 = vmul.f32 %v7297_v55, %v1071_v35  ;;  %v1298_v5 = vmul.f32 %v7300_v60, %v967_v13  ;;  %v7648_v1 = vld [vmem:[#allocation3 + $0x102] sm:$0xff] }
 0x21c   : > { %v916_v54 = vsel %vm540_vm3, %v7193_v0, %v835_v4  ;;  %v917_v56 = vsel %vm540_vm3, %v7201_v42, %v837_v58  ;;  %v989_v63 = vmul.f32 %v7226_v43, %v969_v21  ;;  %v1041_v50 = vmul.f32 %v7230_v44, %v1021_v17 }
 0x21d   : > { %v933_v33 = vsel %vm918_vm4, %v916_v54, %v883_v62  ;;  %v934_v10 = vsel %vm918_vm4, %v917_v56, %v885_v52  ;;  %v1259_v22 = vadd.f32 %v1243_v49, %v1207_v59  ;;  %v1297_v13 = vmul.f32 %v7300_v60, %v7526_v51  ;;  %v9719_v56 = vld [vmem:[#allocation14_spill] sm:$0xff] }
 0x21e   : > { %v1314_v32 = vadd.f32 %v1298_v5, %v1261_v30  ;;  %v1056_v39 = vadd.f32 %v1040_v38, %v988_v46  ;;  %951 = vst.msk [vmem:[#allocation3 + $0x111] sm:$0xff] %vm936_vm5, %v933_v33  ;;  %952 = vst.msk [vmem:[#allocation3 + $0x121] sm:$0xff] %vm936_vm5, %v934_v10  ;;  %v7637_v0 = vmul.f32 %v7313_v6, %v7528_v26 }
 0x21f   : > { %v1262_v42 = vadd.f32 %v1246_v3, %v1210_v37  ;;  %v1159_v4 = vadd.f32 %v1143_v53, %v1107_v15  ;;  %v1311_v62 = vadd.f32 %v7354_v27, %v1258_v18  ;;  %v1313_v12 = vadd.f32 %v1297_v13, %v1260_v40 }
 0x220   : > { %v7642_v49 = vmul.f32 %v7325_v31, %v7538_v8  ;;  %v1350_v51 = vmul.f32 %v7313_v6, %v7550_v11  ;;  %v1092_v59 = vmul.f32 %v7241_v57, %v7625_v25  ;;  %v7651_v26 = vmul.f32 %v7325_v31, %v1071_v35 }
 0x221   : > { %v1195_v45 = vmul.f32 %v7280_v29, %v1020_v41  ;;  %v1299_v27 = vmul.f32 %v7300_v60, %v968_v61  ;;  %v1057_v18 = vadd.f32 %v1041_v50, %v989_v63  ;;  %v1247_v30 = vmul.f32 %v7297_v55, %v7625_v25  ;;  %v9720_v63 = vld [vmem:[#allocation13_spill] sm:$0xff] }
 0x222   : > { %v7655_v58 = vadd.f32 %v1350_v51, %v1314_v32  ;;  %v1108_v8 = vadd.f32 %v1092_v59, %v1056_v39  ;;  %v7660_v11 = vmul.f32 %v7313_v6, %v1020_v41  ;;  %v1093_v35 = vmul.f32 %v7241_v57, %v7648_v1 }
 0x223   : > { %v1211_v46 = vadd.f32 %v1195_v45, %v1159_v4  ;;  %v7662_v38 = vadd.f32 %v1299_v27, %v1262_v42  ;;  %v1144_v52 = vmul.f32 %v7254_v28, %v969_v21  ;;  %v1196_v61 = vmul.f32 %v7280_v29, %v1021_v17  ;;  %v9721_v4 = vld [vmem:[#allocation15_spill] sm:$0xff]  ;;  %v9722_v45 = vld [vmem:[#allocation16_spill] sm:$0xff] }
 0x224   : > { %v1248_v40 = vmul.f32 %v7297_v55, %v7648_v1  ;;  %v1300_v15 = vmul.f32 %v7300_v60, %v969_v21  ;;  %v7672_v37 = vmul.f32 %v7313_v6, %v1021_v17  ;;  %v1109_v41 = vadd.f32 %v1093_v35, %v1057_v18 }
 0x225   : > { %v970_v53 = vld [vmem:[#allocation3 + $0x110] sm:$0xff]  ;;  %v1395_v54 = vmul.f32 %v7325_v31, %v7402_v9  ;;  %v1408_v50 = vadd.f32 %v9720_v63, %v9719_v56  ;;  %v1409_v33 = vadd.f32 %v7597_v48, %v7571_v23  ;;  %v1126_v13 = vld [vmem:[#allocation3 + $0x120] sm:$0xff]  ;;  %v1410_v32 = vadd.f32 %v7601_v34, %v7575_v14 }
 0x226   : > { %v7674_v3 = vld [vmem:[#allocation3 + $0x111] sm:$0xff]  ;;  %v990_v21 = vmul.f32 %v7226_v43, %v970_v53  ;;  %v1145_v10 = vmul.f32 %v7254_v28, %v970_v53  ;;  %v1263_v39 = vadd.f32 %v1247_v30, %v1211_v46  ;;  %v1160_v42 = vadd.f32 %v1144_v52, %v1108_v8  ;;  %v1178_v8 = vld [vmem:[#allocation3 + $0x121] sm:$0xff] }
 0x227   : > { %v7676_v5 = vld [vmem:[#allocation3 + $0x112] sm:$0xff]  ;;  %v1042_v17 = vmul.f32 %v7230_v44, %v7674_v3  ;;  %v1312_v9 = vadd.f32 %v7607_v20, %v1259_v22  ;;  %v1396_v51 = vmul.f32 %v7325_v31, %v9721_v4  ;;  %v1146_v23 = vmul.f32 %v7254_v28, %v1126_v13  ;;  %v9723_v20 = vld [vmem:[#allocation8_spill] sm:$0xff]  ;;  %v9724_v30 = vld [vmem:[#allocation9_spill] sm:$0xff] }
 0x228   : > { %v1094_v43 = vmul.f32 %v7241_v57, %v7676_v5  ;;  %v1411_v44 = vadd.f32 %v1395_v54, %v7583_v19  ;;  %v1362_v48 = vadd.f32 %v7560_v24, %v7589_v2  ;;  %v1397_v14 = vmul.f32 %v7325_v31, %v9722_v45  ;;  %v9725_v46 = vld [vmem:[#allocation17_spill] sm:$0xff] }
 0x229   : > { %v1058_v59 = vadd.f32 %v1042_v17, %v990_v21  ;;  %v1412_v34 = vadd.f32 %v1396_v51, %v7585_v16  ;;  %v7703_v22 = vadd.f32 %v9723_v20, %v1408_v50  ;;  %v1161_v18 = vadd.f32 %v1145_v10, %v1109_v41  ;;  %v1230_v17 = vld [vmem:[#allocation3 + $0x122] sm:$0xff] }
 0x22a   : > { %v7706_v57 = vadd.f32 %v9723_v20, %v1409_v33  ;;  %v7709_v28 = vadd.f32 %v9723_v20, %v1410_v32  ;;  %v1212_v19 = vadd.f32 %v1196_v61, %v1160_v42  ;;  %v1363_v24 = vadd.f32 %v9724_v30, %v1311_v62 }
 0x22b   : > { %v1110_v27 = vadd.f32 %v1094_v43, %v1058_v59  ;;  %v1364_v2 = vadd.f32 %v7614_v7, %v1312_v9  ;;  %v1398_v16 = vmul.f32 %v7325_v31, %v9725_v46  ;;  %v1197_v35 = vmul.f32 %v7280_v29, %v7674_v3 }
 0x22c   : > { %v1413_v41 = vadd.f32 %v1397_v14, %v7591_v47  ;;  %v7719_v54 = vadd.f32 %v9723_v20, %v1411_v44  ;;  %v1198_v56 = vmul.f32 %v7280_v29, %v1178_v8  ;;  %v1365_v61 = vadd.f32 %v7637_v0, %v1313_v12  ;;  %v9726_v0 = vld [vmem:[#allocation12_spill] sm:$0xff] }
 0x22d   : > { %v1162_v52 = vadd.f32 %v1146_v23, %v1110_v27  ;;  %v1414_v63 = vadd.f32 %v1398_v16, %v1362_v48  ;;  %v7724_v62 = vadd.f32 %v9723_v20, %v1412_v34  ;;  %v1213_v7 = vadd.f32 %v1197_v35, %v1161_v18 }
 0x22e   : > { %v1444_v50 = vsel %vm936_vm5, %v7703_v22, 0.0  ;;  %v1445_v33 = vsel %vm936_vm5, %v7706_v57, 0.0  ;;  %v1447_v47 = vsel %vm936_vm5, %v7709_v28, 0.0  ;;  %v1264_v21 = vadd.f32 %v1248_v40, %v1212_v19 }
 0x22f   : > { %v1400_v29 = vmul.f32 %v7325_v31, %v7507_v36  ;;  %v1415_v12 = vadd.f32 %v9726_v0, %v1363_v24  ;;  %v1446_v10 = vadd.f32 %v1445_v33, %v1444_v50  ;;  %v1249_v32 = vmul.f32 %v7297_v55, %v7676_v5  ;;  %v9728_v33 = vld [vmem:[#allocation11_spill] sm:$0xff] }
 0x230   : > { %v1214_v42 = vadd.f32 %v1198_v56, %v1162_v52  ;;  %v7738_v9 = vadd.f32 %v9723_v20, %v1413_v41  ;;  %v1449_v4 = vsel %vm936_vm5, %v7719_v54, 0.0  ;;  %v1316_v51 = vadd.f32 %v1300_v15, %v1263_v39 }
 0x231   : > { %v1301_v40 = vmul.f32 %v7300_v60, %v970_v53  ;;  %v1416_v59 = vadd.f32 %v1400_v29, %v1364_v2  ;;  %v1448_v43 = vadd.f32 %v1447_v47, %v1446_v10  ;;  %v1265_v23 = vadd.f32 %v1249_v32, %v1213_v7 }
 0x232   : > { %v1250_v36 = vmul.f32 %v7297_v55, %v1230_v17  ;;  %v7745_v44 = vadd.f32 %v9723_v20, %v1414_v63  ;;  %v1451_v48 = vsel %vm936_vm5, %v7724_v62, 0.0  ;;  %v1367_v45 = vadd.f32 %v7660_v11, %v7662_v38 }
 0x233   : > { %v1317_v14 = vadd.f32 %v1301_v40, %v1264_v21  ;;  %v1417_v34 = vadd.f32 %v7642_v49, %v1365_v61  ;;  %v1450_v15 = vadd.f32 %v1449_v4, %v1448_v43  ;;  %v1302_v53 = vmul.f32 %v7300_v60, %v1126_v13 }
 0x234   : > { %v1266_v39 = vadd.f32 %v1250_v36, %v1214_v42  ;;  %v7754_v27 = vadd.f32 %v9723_v20, %v1415_v12  ;;  %v1453_v55 = vsel %vm936_vm5, %v7738_v9, 0.0  ;;  %v1403_v18 = vmul.f32 %v7325_v31, %v7625_v25 }
 0x235   : > { %v1368_v19 = vadd.f32 %v7672_v37, %v1316_v51  ;;  %v1418_v11 = vadd.f32 %v7651_v26, %v7655_v58  ;;  %v1452_v38 = vadd.f32 %v1451_v48, %v1450_v15  ;;  %v1353_v49 = vmul.f32 %v7313_v6, %v7674_v3  ;;  %v1387_v26 = vld [vmem:[#allocation3 + $0x132] sm:$0xff] }
 0x236   : > { %v1318_v30 = vadd.f32 %v1302_v53, %v1265_v23  ;;  %v7766_v60 = vadd.f32 %v9723_v20, %v1416_v59  ;;  %v1455_v13 = vsel %vm936_vm5, %v7745_v44, 0.0  ;;  %v1419_v24 = vadd.f32 %v1403_v18, %v1367_v45  ;;  %v9727_v58 = vld [vmem:[#allocation10_spill] sm:$0xff] }
 0x237   : > { %v1404_v25 = vmul.f32 %v7325_v31, %v7648_v1  ;;  %v1354_v37 = vmul.f32 %v7313_v6, %v1178_v8  ;;  %v1454_v2 = vadd.f32 %v1453_v55, %v1452_v38  ;;  %v1369_v46 = vadd.f32 %v1353_v49, %v1317_v14 }
 0x238   : > { %v1319_v16 = vadd.f32 %v9727_v58, %v1266_v39  ;;  %v7775_v3 = vadd.f32 %v9723_v20, %v1417_v34  ;;  %v1457_v35 = vsel %vm936_vm5, %v7754_v27, 0.0  ;;  %v1405_v56 = vmul.f32 %v7325_v31, %v7676_v5 }
 0x239   : > { %v1420_v52 = vadd.f32 %v1404_v25, %v1368_v19  ;;  %v1456_v41 = vadd.f32 %v1455_v13, %v1454_v2  ;;  %v1370_v61 = vadd.f32 %v1354_v37, %v1318_v30  ;;  %v7782_v1 = vadd.f32 %v9723_v20, %v1418_v11 }
 0x23a   : > { %v1459_v6 = vsel %vm936_vm5, %v7766_v60, 0.0  ;;  %v1407_v8 = vmul.f32 %v7325_v31, %v1387_v26  ;;  %v1406_v63 = vmul.f32 %v7325_v31, %v1230_v17  ;;  %v1421_v50 = vadd.f32 %v1405_v56, %v1369_v46 }
 0x23b   : > { %v1458_v7 = vadd.f32 %v1457_v35, %v1456_v41  ;;  %v1371_v47 = vadd.f32 %v9728_v33, %v1319_v16  ;;  %v1439_v21 = vadd.f32 %v9723_v20, %v1419_v24  ;;  %v1461_v5 = vsel %vm936_vm5, %v7775_v3, 0.0 }
 0x23c   : > { %v1422_v0 = vadd.f32 %v1406_v63, %v1370_v61  ;;  %v1440_v12 = vadd.f32 %v9723_v20, %v1420_v52  ;;  %v1463_v10 = vsel %vm936_vm5, %v7782_v1, 0.0  ;;  %v7796_v42 = vadd.f32 %v9723_v20, %v1421_v50 }
 0x23d   : > { %v1460_v29 = vadd.f32 %v1459_v6, %v1458_v7  ;;  %v1423_v31 = vadd.f32 %v1407_v8, %v1371_v47  ;;  %v1465_v17 = vsel %vm936_vm5, %v1439_v21, 0.0 }
 0x23e   : > { %v7800_v51 = vadd.f32 %v9723_v20, %v1422_v0  ;;  %v1467_v40 = vsel %vm936_vm5, %v1440_v12, 0.0  ;;  %v1469_v23 = vsel %vm936_vm5, %v7796_v42, 0.0 }
 0x23f   : > { %v1462_v32 = vadd.f32 %v1461_v5, %v1460_v29  ;;  %v7804_v43 = vadd.f32 %v9723_v20, %v1423_v31 }
 0x240   : > { %v1471_v48 = vsel %vm936_vm5, %v7800_v51, 0.0 }
 0x241   : > { %v1464_v4 = vadd.f32 %v1463_v10, %v1462_v32  ;;  %v1473_v14 = vsel %vm936_vm5, %v7804_v43, 0.0 }
 0x243   : > { %v1466_v59 = vadd.f32 %v1465_v17, %v1464_v4 }
 0x245   : > { %v1468_v36 = vadd.f32 %v1467_v40, %v1466_v59 }
 0x247   : > { %v1470_v45 = vadd.f32 %v1469_v23, %v1468_v36 }
 0x249   : > { %v1472_v34 = vadd.f32 %v1471_v48, %v1470_v45 }
 0x24b   : > { %v1474_v15 = vadd.f32 %v1473_v14, %v1472_v34 }
 0x24d   : > { %v1475_v39 = vrot.slane %v1474_v15, 4 }
 0x24f   : > { %v1476_v53 = vadd.f32 %v1475_v39, %v1474_v15 }
 0x251   : > { %v1477_v55 = vrot.slane %v1476_v53, 2 }
 0x253   : > { %v1478_v18 = vadd.f32 %v1477_v55, %v1476_v53 }
 0x255   : > { %v1479_v19 = vrot.slane %v1478_v18, 1 }
 0x257   : > { %v1480_v20 = vadd.f32 %v1479_v19, %v1478_v18 }
 0x259   : > { %v1482_v11 = vmul.f32 0.0078125, %v1480_v20 }
 0x25b   : > { %v7813_v38 = vsub.f32 %v7703_v22, %v1482_v11  ;;  %v7816_v49 = vsub.f32 %v7706_v57, %v1482_v11  ;;  %v7819_v30 = vsub.f32 %v7709_v28, %v1482_v11  ;;  %v7822_v13 = vsub.f32 %v7719_v54, %v1482_v11 }
 0x25c   : > { %v7829_v37 = vsub.f32 %v7724_v62, %v1482_v11  ;;  %v7834_v57 = vsub.f32 %v7738_v9, %v1482_v11  ;;  %v7841_v26 = vsub.f32 %v7745_v44, %v1482_v11  ;;  %v7847_v9 = vsub.f32 %v7754_v27, %v1482_v11 }
 0x25d   : > { %v1499_v24 = vmul.f32 %v7813_v38, %v7813_v38  ;;  %v1500_v25 = vmul.f32 %v7816_v49, %v7816_v49  ;;  %v1501_v22 = vmul.f32 %v7819_v30, %v7819_v30  ;;  %v1502_v28 = vmul.f32 %v7822_v13, %v7822_v13 }
 0x25e   : > { %v1503_v62 = vmul.f32 %v7829_v37, %v7829_v37  ;;  %v1504_v35 = vmul.f32 %v7834_v57, %v7834_v57  ;;  %v7853_v56 = vsub.f32 %v7766_v60, %v1482_v11  ;;  %v1505_v44 = vmul.f32 %v7841_v26, %v7841_v26 }
 0x25f   : > { %v1515_v54 = vsel %vm936_vm5, %v1499_v24, 0.0  ;;  %v1516_v2 = vsel %vm936_vm5, %v1500_v25, 0.0  ;;  %v1518_v58 = vsel %vm936_vm5, %v1501_v22, 0.0  ;;  %v1520_v52 = vsel %vm936_vm5, %v1502_v28, 0.0 }
 0x260   : > { %v1517_v46 = vadd.f32 %v1516_v2, %v1515_v54  ;;  %v1522_v61 = vsel %vm936_vm5, %v1503_v62, 0.0  ;;  %v7859_v8 = vsub.f32 %v7775_v3, %v1482_v11  ;;  %v1506_v27 = vmul.f32 %v7847_v9, %v7847_v9  ;;  %v9729_v62 = vld [vmem:[#allocation5_spill] sm:$0xff] }
 0x261   : > { %v1524_v63 = vsel %vm936_vm5, %v1504_v35, 0.0  ;;  %v7865_v50 = vsub.f32 %v7782_v1, %v1482_v11  ;;  %v1507_v60 = vmul.f32 %v7853_v56, %v7853_v56  ;;  %v1526_v33 = vsel %vm936_vm5, %v1505_v44, 0.0 }
 0x262   : > { %v1519_v16 = vadd.f32 %v1518_v58, %v1517_v46  ;;  %v7870_v5 = vsub.f32 %v1439_v21, %v1482_v11  ;;  %v1508_v3 = vmul.f32 %v7859_v8, %v7859_v8  ;;  %v1528_v29 = vsel %vm936_vm5, %v1506_v27, 0.0  ;;  %v9730_v58 = vld [vmem:[#allocation7_spill] sm:$0xff] }
 0x263   : > { %v7875_v10 = vsub.f32 %v1440_v12, %v1482_v11  ;;  %v1509_v1 = vmul.f32 %v7865_v50, %v7865_v50  ;;  %v1530_v32 = vsel %vm936_vm5, %v1507_v60, 0.0  ;;  %v7881_v17 = vsub.f32 %v7796_v42, %v1482_v11 }
 0x264   : > { %v1521_v41 = vadd.f32 %v1520_v52, %v1519_v16  ;;  %v1510_v21 = vmul.f32 %v7870_v5, %v7870_v5  ;;  %v1532_v4 = vsel %vm936_vm5, %v1508_v3, 0.0  ;;  %v7887_v59 = vsub.f32 %v7800_v51, %v1482_v11  ;;  %v9731_v52 = vld [vmem:[#allocation6_spill] sm:$0xff] }
 0x265   : > { %v1511_v12 = vmul.f32 %v7875_v10, %v7875_v10  ;;  %v1534_v23 = vsel %vm936_vm5, %v1509_v1, 0.0  ;;  %v7893_v48 = vsub.f32 %v7804_v43, %v1482_v11  ;;  %v1512_v42 = vmul.f32 %v7881_v17, %v7881_v17 }
 0x266   : > { %v1523_v6 = vadd.f32 %v1522_v61, %v1521_v41  ;;  %v1536_v45 = vsel %vm936_vm5, %v1510_v21, 0.0  ;;  %v1513_v34 = vmul.f32 %v7887_v59, %v7887_v59  ;;  %v1574_v16 = vrot.slane %v9730_v58, %v9729_v62 }
 0x267   : > { %v1538_v51 = vsel %vm936_vm5, %v1511_v12, 0.0  ;;  %v1514_v39 = vmul.f32 %v7893_v48, %v7893_v48  ;;  %v1540_v53 = vsel %vm936_vm5, %v1512_v42, 0.0  ;;  %v1594_v41 = vrot.slane %v9730_v58, %v9731_v52 }
 0x268   : > { %v1525_v7 = vadd.f32 %v1524_v63, %v1523_v6  ;;  %v1542_v43 = vsel %vm936_vm5, %v1513_v34, 0.0 }
 0x269   : > { %v1544_v19 = vsel %vm936_vm5, %v1514_v39, 0.0 }
 0x26a   : > { %v1527_v47 = vadd.f32 %v1526_v33, %v1525_v7 }
 0x26c   : > { %v1529_v0 = vadd.f32 %v1528_v29, %v1527_v47 }
 0x26e   : > { %v1531_v31 = vadd.f32 %v1530_v32, %v1529_v0 }
 0x270   : > { %v1533_v40 = vadd.f32 %v1532_v4, %v1531_v31 }
 0x272   : > { %v1535_v36 = vadd.f32 %v1534_v23, %v1533_v40 }
 0x274   : > { %v1537_v14 = vadd.f32 %v1536_v45, %v1535_v36 }
 0x276   : > { %v1539_v15 = vadd.f32 %v1538_v51, %v1537_v14 }
 0x278   : > { %v1541_v55 = vadd.f32 %v1540_v53, %v1539_v15 }
 0x27a   : > { %v1543_v18 = vadd.f32 %v1542_v43, %v1541_v55 }
 0x27c   : > { %v1545_v20 = vadd.f32 %v1544_v19, %v1543_v18 }
 0x27e   : > { %v1546_v11 = vrot.slane %v1545_v20, 4 }
 0x280   : > { %v1547_v24 = vadd.f32 %v1546_v11, %v1545_v20 }
 0x282   : > { %v1548_v25 = vrot.slane %v1547_v24, 2 }
 0x284   : > { %v1549_v22 = vadd.f32 %v1548_v25, %v1547_v24 }
 0x286   : > { %v1550_v28 = vrot.slane %v1549_v22, 1 }
 0x288   : > { %v1551_v54 = vadd.f32 %v1550_v28, %v1549_v22 }
 0x28a   : > { %v1552_v2 = vmul.f32 0.0078125, %v1551_v54 }
 0x28c   : > { %v1553_v46 = vadd.f32 1e-05, %v1552_v2 }
 0x28e   : > { %6333 = vrsqrt.f32 %v1553_v46 }
 0x298   : > { %v6334_v35 = vpop.eup %6333 }
 0x299   : > { %v1555_v44 = vmul.f32 %v6334_v35, %v7813_v38  ;;  %v1556_v61 = vmul.f32 %v6334_v35, %v7816_v49  ;;  %v1557_v6 = vmul.f32 %v6334_v35, %v7819_v30  ;;  %v1558_v27 = vmul.f32 %v6334_v35, %v7822_v13 }
 0x29a   : > { %v1559_v63 = vmul.f32 %v6334_v35, %v7829_v37  ;;  %v1560_v7 = vmul.f32 %v6334_v35, %v7834_v57  ;;  %v1561_v1 = vmul.f32 %v6334_v35, %v7841_v26  ;;  %v1562_v38 = vmul.f32 %v6334_v35, %v7847_v9 }
 0x29b   : > { %v1575_v60 = vmul.f32 %v1574_v16, %v1555_v44  ;;  %v1576_v33 = vmul.f32 %v1574_v16, %v1556_v61  ;;  %v1577_v47 = vmul.f32 %v1574_v16, %v1557_v6  ;;  %v1578_v3 = vmul.f32 %v1574_v16, %v1558_v27 }
 0x29c   : > { %v1579_v29 = vmul.f32 %v1574_v16, %v1559_v63  ;;  %v1580_v0 = vmul.f32 %v1574_v16, %v1560_v7  ;;  %v1563_v57 = vmul.f32 %v6334_v35, %v7853_v56  ;;  %v1564_v40 = vmul.f32 %v6334_v35, %v7859_v8 }
 0x29d   : > { %v1595_v32 = vadd.f32 %v1594_v41, %v1575_v60  ;;  %v1596_v49 = vadd.f32 %v1594_v41, %v1576_v33  ;;  %v1597_v31 = vadd.f32 %v1594_v41, %v1577_v47  ;;  %v1598_v30 = vadd.f32 %v1594_v41, %v1578_v3 }
 0x29e   : > { %v1599_v21 = vadd.f32 %v1594_v41, %v1579_v29  ;;  %v1600_v13 = vadd.f32 %v1594_v41, %v1580_v0  ;;  %v1581_v12 = vmul.f32 %v1574_v16, %v1561_v1  ;;  %v1582_v23 = vmul.f32 %v1574_v16, %v1562_v38 }
 0x29f   : > { %v1611_v4 = vpack.c.bf16 %v1596_v49, %v1595_v32  ;;  %v1612_v37 = vpack.c.bf16 %v1598_v30, %v1597_v31  ;;  %v1583_v26 = vmul.f32 %v1574_v16, %v1563_v57  ;;  %v1584_v42 = vmul.f32 %v1574_v16, %v1564_v40 }
 0x2a0   : > { %v1613_v36 = vpack.c.bf16 %v1600_v13, %v1599_v21  ;;  %v1601_v9 = vadd.f32 %v1594_v41, %v1581_v12  ;;  %v1602_v45 = vadd.f32 %v1594_v41, %v1582_v23  ;;  %v1565_v14 = vmul.f32 %v6334_v35, %v7865_v50 }
 0x2a1   : > { %5774 = vmatprep.mubr.msk.bf16.mxu0 %vm936_vm5, %v1611_v4  ;;  %v1566_v34 = vmul.f32 %v6334_v35, %v7870_v5  ;;  %v1603_v56 = vadd.f32 %v1594_v41, %v1583_v26  ;;  %v1604_v51 = vadd.f32 %v1594_v41, %v1584_v42  ;;  %v1567_v8 = vmul.f32 %v6334_v35, %v7875_v10 }
 0x2a2   : > { %5775 = vmatmul.mubr.msk.bf16.vlgmr.msra.gmra.mrb[0].mxu0 %vm936_vm5, %v1612_v37  ;;  %v1568_v15 = vmul.f32 %v6334_v35, %v7881_v17  ;;  %v1614_v39 = vpack.c.bf16 %v1602_v45, %v1601_v9  ;;  %v1585_v53 = vmul.f32 %v1574_v16, %v1565_v14  ;;  %v1569_v5 = vmul.f32 %v6334_v35, %v7887_v59  ;;  %v7939_v59 = vld [vmem:[%s9732_s27] ss:$0 sm:$0xff]  ;;  %s6696_s27 = smov 24  }
 0x2a3   : > { %5778 = vmatprep.mubr.msk.bf16.mxu0 %vm936_vm5, %v1613_v36  ;;  %v1586_v55 = vmul.f32 %v1574_v16, %v1566_v34  ;;  %v1615_v43 = vpack.c.bf16 %v1604_v51, %v1603_v56  ;;  %v1587_v18 = vmul.f32 %v1574_v16, %v1567_v8  ;;  %v1570_v11 = vmul.f32 %v6334_v35, %v7893_v48 }
 0x2a4   : > { %v1588_v19 = vmul.f32 %v1574_v16, %v1568_v15  ;;  %v1605_v20 = vadd.f32 %v1594_v41, %v1585_v53  ;;  %v1589_v25 = vmul.f32 %v1574_v16, %v1569_v5 }
 0x2a5   : > { %v1606_v50 = vadd.f32 %v1594_v41, %v1586_v55  ;;  %v1607_v10 = vadd.f32 %v1594_v41, %v1587_v18  ;;  %v1590_v22 = vmul.f32 %v1574_v16, %v1570_v11 }
 0x2a6   : > { %v1608_v24 = vadd.f32 %v1594_v41, %v1588_v19  ;;  %v1609_v54 = vadd.f32 %v1594_v41, %v1589_v25 }
 0x2a7   : > { %v1616_v17 = vpack.c.bf16 %v1606_v50, %v1605_v20  ;;  %v1610_v2 = vadd.f32 %v1594_v41, %v1590_v22 }
 0x2a8   : > { %v1617_v28 = vpack.c.bf16 %v1608_v24, %v1607_v10 }
 0x2a9   : > { %v1618_v46 = vpack.c.bf16 %v1610_v2, %v1609_v54 }
 0x2aa   : > { %5779 = vmatmul.mubr.msk.bf16.gmra.mrb[4].mxu0 %vm936_vm5, %v1614_v39 }
 0x2ab   : > { %5782 = vmatprep.mubr.msk.bf16.mxu0 %vm936_vm5, %v1615_v43 }
 0x2b2   : > { %5783 = vmatmul.mubr.msk.bf16.gmra.mrb[8].mxu0 %vm936_vm5, %v1616_v17 }
 0x2b3   : > { %5786 = vmatprep.mubr.msk.bf16.mxu0 %vm936_vm5, %v1617_v28 }
 0x2ba   : > { %5787 = vmatmul.mubr.msk.bf16.gmra.mrb[12].mxu0 %vm936_vm5, %v1618_v46 }
 0x375   : > { %v5776_v48 = vpop.f32.mrb[0].mxu0 }
 0x376   : > { %v1741_v58 = vadd.f32 %v5776_v48, %v7939_v59  ;;  %v1732_v16 = vpop.f32.mrb[1].mxu0 }
 0x377   : > { %v1733_v35 = vadd.f32 %v7939_v59, %v1732_v16  ;;  %v5777_v44 = vpop.f32.mrb[2].mxu0 }
 0x378   : > { %v1744_v61 = vadd.f32 %v5777_v44, %v7939_v59  ;;  %v1735_v6 = vpop.f32.mrb[3].mxu0  ;;  %v1797_v27 = vmul.f32 0.35355338, %v1741_v58 }
 0x379   : > { %v1736_v41 = vadd.f32 %v7939_v59, %v1735_v6  ;;  %v1795_v60 = vmul.f32 0.35355338, %v1733_v35 }
 0x37a   : > { %v1798_v63 = vmul.f32 0.35355338, %v1744_v61  ;;  %v7945_v7 = vpack.c.bf16 %v1744_v61, %v1741_v58 }
 0x37b   : > { %v1796_v33 = vmul.f32 0.35355338, %v1736_v41  ;;  %v7947_v47 = vpack.c.bf16 %v1736_v41, %v1733_v35 }
 0x37c   : > { %v7949_v3 = vpack.c.bf16 %v1798_v63, %v1797_v27  ;;  %1833 = vrot.lane.b32.xlu1 %v7945_v7, %s6684_s26 }
 0x37d   : > { %v7953_v29 = vpack.c.bf16 %v1796_v33, %v1795_v60  ;;  %v5780_v0 = vpop.f32.mrb[4].mxu0  ;;  %1831 = vrot.lane.b32.xlu0 %v7947_v47, %s6684_s26 }
 0x37e   : > { %v1757_v1 = vadd.f32 %v5780_v0, %v7939_v59  ;;  %v1748_v38 = vpop.f32.mrb[5].mxu0 }
 0x37f   : > { %v1749_v32 = vadd.f32 %v7939_v59, %v1748_v38  ;;  %v5781_v49 = vpop.f32.mrb[6].mxu0  ;;  %5798 = vmatprep.mubr.msk.bf16.mxu1 %vm1839_vm6, %v7953_v29 }
 0x380   : > { %v1760_v31 = vadd.f32 %v5781_v49, %v7939_v59  ;;  %v1751_v30 = vpop.f32.mrb[7].mxu0  ;;  %v1801_v13 = vmul.f32 0.35355338, %v1757_v1 }
 0x381   : > { %v1752_v21 = vadd.f32 %v7939_v59, %v1751_v30  ;;  %v1799_v57 = vmul.f32 0.35355338, %v1749_v32 }
 0x382   : > { %v1802_v4 = vmul.f32 0.35355338, %v1760_v31  ;;  %v7963_v37 = vpack.c.bf16 %v1760_v31, %v1757_v1 }
 0x383   : > { %v1800_v40 = vmul.f32 0.35355338, %v1752_v21  ;;  %v7965_v12 = vpack.c.bf16 %v1752_v21, %v1749_v32 }
 0x384   : > { %v7967_v23 = vpack.c.bf16 %v1802_v4, %v1801_v13 }
 0x385   : > { %v7969_v36 = vpack.c.bf16 %v1800_v40, %v1799_v57  ;;  %v5784_v26 = vpop.f32.mrb[8].mxu0  ;;  %1835 = vrot.lane.b32.xlu0 %v7965_v12, %s6684_s26 }
 0x386   : > { %v1773_v42 = vadd.f32 %v5784_v26, %v7939_v59  ;;  %v1764_v9 = vpop.f32.mrb[9].mxu0 }
 0x387   : > { %v1765_v45 = vadd.f32 %v7939_v59, %v1764_v9  ;;  %v5785_v14 = vpop.f32.mrb[10].mxu0 }
 0x388   : > { %v1776_v34 = vadd.f32 %v5785_v14, %v7939_v59  ;;  %v1767_v56 = vpop.f32.mrb[11].mxu0  ;;  %v1805_v8 = vmul.f32 0.35355338, %v1773_v42 }
 0x389   : > { %v1768_v51 = vadd.f32 %v7939_v59, %v1767_v56  ;;  %1837 = vrot.lane.b32.xlu0 %v7963_v37, %s6684_s26  ;;  %v1803_v53 = vmul.f32 0.35355338, %v1765_v45 }
 0x38a   : > { %v1806_v15 = vmul.f32 0.35355338, %v1776_v34  ;;  %v7979_v39 = vpack.c.bf16 %v1776_v34, %v1773_v42 }
 0x38b   : > { %v1804_v55 = vmul.f32 0.35355338, %v1768_v51  ;;  %v7981_v43 = vpack.c.bf16 %v1768_v51, %v1765_v45 }
 0x38c   : > { %v7983_v18 = vpack.c.bf16 %v1806_v15, %v1805_v8 }
 0x38d   : > { %v7985_v19 = vpack.c.bf16 %v1804_v55, %v1803_v53  ;;  %v5788_v20 = vpop.f32.mrb[12].mxu0  ;;  %1933 = vrot.lane.b32.xlu1 %v7981_v43, %s6684_s26 }
 0x38e   : > { %v1789_v50 = vadd.f32 %v5788_v20, %v7939_v59  ;;  %v1780_v5 = vpop.f32.mrb[13].mxu0 }
 0x38f   : > { %v1781_v11 = vadd.f32 %v7939_v59, %v1780_v5  ;;  %v5789_v10 = vpop.f32.mrb[14].mxu0  ;;  %5814 = vmatprep.mubr.msk.bf16.mxu0 %vm1839_vm6, %v7985_v19 }
 0x390   : > { %v1792_v24 = vadd.f32 %v5789_v10, %v7939_v59  ;;  %v1783_v17 = vpop.f32.mrb[15].mxu0  ;;  %v1809_v22 = vmul.f32 0.35355338, %v1789_v50 }
 0x391   : > { %v1784_v25 = vadd.f32 %v7939_v59, %v1783_v17  ;;  %1935 = vrot.lane.b32.xlu1 %v7979_v39, %s6684_s26  ;;  %v1807_v2 = vmul.f32 0.35355338, %v1781_v11 }
 0x392   : > { %v1810_v28 = vmul.f32 0.35355338, %v1792_v24  ;;  %v7997_v54 = vpack.c.bf16 %v1792_v24, %v1789_v50 }
 0x393   : > { %v1808_v46 = vmul.f32 0.35355338, %v1784_v25  ;;  %v7999_v48 = vpack.c.bf16 %v1784_v25, %v1781_v11 }
 0x394   : > { %v8001_v58 = vpack.c.bf16 %v1810_v28, %v1809_v22 }
 0x395   : > { %v8003_v16 = vpack.c.bf16 %v1808_v46, %v1807_v2  ;;  %1939 = vrot.lane.b32.xlu1 %v7997_v54, %s6684_s26  ;;  %1937 = vrot.lane.b32.xlu0 %v7999_v48, %s6684_s26 }
 0x399   : > { %2232 = vrot.lane.b32.xlu1 %v7945_v7, %s6682_s23  ;;  %2230 = vrot.lane.b32.xlu0 %v7947_v47, %s6682_s23 }
 0x39d   : > { %2236 = vrot.lane.b32.xlu1 %v7963_v37, %s6682_s23  ;;  %2234 = vrot.lane.b32.xlu0 %v7965_v12, %s6682_s23 }
 0x3a1   : > { %2325 = vrot.lane.b32.xlu1 %v7997_v54, %s6682_s23  ;;  %2319 = vrot.lane.b32.xlu0 %v7981_v43, %s6682_s23 }
 0x3a5   : > { %2529 = vrot.lane.b32.xlu1 %v7981_v43, %s6685_s28  ;;  %2420 = vrot.lane.b32.xlu0 %v7947_v47, %s6685_s28 }
 0x3a9   : > { %2426 = vrot.lane.b32.xlu1 %v7963_v37, %s6685_s28  ;;  %2321 = vrot.lane.b32.xlu0 %v7979_v39, %s6682_s23 }
 0x3ad   : > { %2531 = vrot.lane.b32.xlu1 %v7979_v39, %s6685_s28  ;;  %2422 = vrot.lane.b32.xlu0 %v7945_v7, %s6685_s28 }
 0x3b1   : > { %2323 = vrot.lane.b32.xlu1 %v7999_v48, %s6682_s23  ;;  %2424 = vrot.lane.b32.xlu0 %v7965_v12, %s6685_s28  ;;  %s6692_s23 = smov 104  }
 0x3ee   : > { %v1834_v44 = vpop.permute.xlu1 %1833 }
 0x3ef   : > { %v1832_v59 = vpop.permute.xlu0 %1831  ;;  %v1856_v61 = vsel %vm1839_vm6, %v1834_v44, 0 }
 0x3f0   : > { %6110 = vmatprep.subr.msk.bf16.mxu1 %vm1839_vm6, %v1832_v59  ;;  %v1853_v35 = vsel %vm1839_vm6, %v1832_v59, 0 }
 0x3f1   : > { %5791 = vmatpush3.bf16.xpose.msra.mxu1 %v1853_v35 }
 0x3f2   : > { %6111 = vmatprep.subr.msk.bf16.mxu1 %vm1839_vm6, %v1834_v44 }
 0x3f7   : > { %v1836_v6 = vpop.permute.xlu0 %1835 }
 0x3f8   : > { %v1859_v27 = vsel %vm1839_vm6, %v1836_v6, 0 }
 0x3f9   : > { %5793 = vmatpush3.bf16.xpose.msra.mxu1 %v1856_v61 }
 0x3fa   : > { %6112 = vmatprep.subr.msk.bf16.mxu1 %vm1839_vm6, %v1836_v6 }
 0x3fb   : > { %v1838_v60 = vpop.permute.xlu0 %1837 }
 0x3fc   : > { %v1862_v1 = vsel %vm1839_vm6, %v1838_v60, 0 }
 0x3ff   : > { %v1934_v41 = vpop.permute.xlu1 %1933 }
 0x400   : > { %6114 = vmatprep.subr.msk.bf16.mxu0 %vm1839_vm6, %v1934_v41  ;;  %v1954_v63 = vsel %vm1839_vm6, %v1934_v41, 0 }
 0x401   : > { %5795 = vmatpush3.bf16.xpose.msra.mxu1 %v1859_v27  ;;  %5807 = vmatpush3.bf16.xpose.msra.mxu0 %v1954_v63 }
 0x402   : > { %6113 = vmatprep.subr.msk.bf16.mxu1 %vm1839_vm6, %v1838_v60 }
 0x403   : > { %v1936_v33 = vpop.permute.xlu1 %1935 }
 0x404   : > { %6115 = vmatprep.subr.msk.bf16.mxu0 %vm1839_vm6, %v1936_v33  ;;  %v1957_v38 = vsel %vm1839_vm6, %v1936_v33, 0 }
 0x407   : > { %v1938_v0 = vpop.permute.xlu0 %1937  ;;  %v1940_v49 = vpop.permute.xlu1 %1939 }
 0x408   : > { %v1960_v30 = vsel %vm1839_vm6, %v1938_v0, 0  ;;  %v1963_v57 = vsel %vm1839_vm6, %v1940_v49, 0 }
 0x409   : > { %5797 = vmatpush3.bf16.xpose.msra.mxu1 %v1862_v1  ;;  %5809 = vmatpush3.bf16.xpose.msra.mxu0 %v1957_v38 }
 0x40a   : > { %6116 = vmatprep.subr.msk.bf16.mxu0 %vm1839_vm6, %v1938_v0 }
 0x40b   : > { %v2231_v32 = vpop.permute.xlu0 %2230  ;;  %v2233_v21 = vpop.permute.xlu1 %2232 }
 0x40c   : > { %5822 = vmatprep.subr.bf16.mxu1 %v2231_v32 }
 0x40f   : > { %v2235_v31 = vpop.permute.xlu0 %2234  ;;  %v2237_v40 = vpop.permute.xlu1 %2236 }
 0x410   : > { %5799 = vmatmul.mubr.msk.bf16.vlgmr.msra.gmra.mrb[0].mxu1 %vm1839_vm6, %v7949_v3 }
 0x411   : > { %5802 = vmatprep.mubr.msk.bf16.mxu1 %vm1839_vm6, %v7969_v36  ;;  %5811 = vmatpush3.bf16.xpose.msra.mxu0 %v1960_v30 }
 0x412   : > { %5823 = vmatpush3.bf16.msra.mxu1 %v2231_v32  ;;  %6117 = vmatprep.subr.msk.bf16.mxu0 %vm1839_vm6, %v1940_v49 }
 0x413   : > { %5824 = vmatprep.subr.bf16.mxu1 %v2233_v21  ;;  %v8056_v13 = vpop.permute.xlu0 %2319  ;;  %v8071_v45 = vpop.permute.xlu1 %2325 }
 0x416   : > { %5825 = vmatpush3.bf16.msra.mxu1 %v2233_v21 }
 0x417   : > { %5826 = vmatprep.subr.bf16.mxu1 %v2235_v31  ;;  %v2421_v4 = vpop.permute.xlu0 %2420  ;;  %v8077_v56 = vpop.permute.xlu1 %2529 }
 0x418   : > { %5803 = vmatmul.mubr.msk.bf16.gmra.mrb[4].mxu1 %vm1839_vm6, %v7967_v23  ;;  %v2441_v42 = vsel %vm1839_vm6, %v2421_v4, 0 }
 0x419   : > { %5813 = vmatpush3.bf16.xpose.msra.mxu0 %v1963_v57 }
 0x41a   : > { %5827 = vmatpush3.bf16.msra.mxu1 %v2235_v31  ;;  %6118 = vmatprep.subr.msk.bf16.mxu0 %vm1839_vm6, %v2421_v4 }
 0x41b   : > { %5828 = vmatprep.subr.bf16.mxu1 %v2237_v40  ;;  %v8062_v26 = vpop.permute.xlu0 %2321  ;;  %v2427_v8 = vpop.permute.xlu1 %2426 }
 0x41c   : > { %v2450_v15 = vsel %vm1839_vm6, %v2427_v8, 0 }
 0x41e   : > { %5829 = vmatpush3.bf16.msra.mxu1 %v2237_v40 }
 0x41f   : > { %5838 = vmatprep.subr.bf16.mxu1 %v8056_v13  ;;  %v2423_v9 = vpop.permute.xlu0 %2422  ;;  %v8141_v4 = vpop.permute.xlu1 %2531 }
 0x420   : > { %5815 = vmatmul.mubr.msk.bf16.vlgmr.msra.gmra.mrb[16].mxu0 %vm1839_vm6, %v7983_v18  ;;  %v2444_v14 = vsel %vm1839_vm6, %v2423_v9, 0 }
 0x421   : > { %5818 = vmatprep.mubr.msk.bf16.mxu0 %vm1839_vm6, %v8003_v16  ;;  %5855 = vmatpush3.bf16.xpose.msra.mxu0 %v2441_v42 }
 0x422   : > { %6119 = vmatprep.subr.msk.bf16.mxu0 %vm1839_vm6, %v2423_v9 }
 0x423   : > { %v2425_v34 = vpop.permute.xlu0 %2424  ;;  %v8143_v57 = vpop.permute.xlu1 %2323 }
 0x424   : > { %v2447_v51 = vsel %vm1839_vm6, %v2425_v34, 0 }
 0x428   : > { %5819 = vmatmul.mubr.msk.bf16.gmra.mrb[20].mxu0 %vm1839_vm6, %v8001_v58 }
 0x429   : > { %5857 = vmatpush3.bf16.xpose.msra.mxu0 %v2444_v14 }
 0x42a   : > { %6120 = vmatprep.subr.msk.bf16.mxu0 %vm1839_vm6, %v2425_v34 }
 0x431   : > { %5859 = vmatpush3.bf16.xpose.msra.mxu0 %v2447_v51 }
 0x432   : > { %6121 = vmatprep.subr.msk.bf16.mxu0 %vm1839_vm6, %v2427_v8 }
 0x439   : > { %5861 = vmatpush3.bf16.xpose.msra.mxu0 %v2450_v15 }
 0x4e3   : > { %v5800_v53 = vpop.f32.mrb[0].mxu1 }
 0x4e4   : > { %v1898_v55 = vpop.f32.mrb[1].mxu1  ;;  %v2036_v20 = vsel %vm918_vm4, %v5800_v53, -inf }
 0x4e5   : > { %2037 = vmax.xlane.f32.xlu0 %v2036_v20  ;;  %v8083_v50 = vpop.f32.mrb[2].mxu1  ;;  %v2030_v10 = vsel %vm918_vm4, %v1898_v55, -inf }
 0x4e6   : > { %v1901_v5 = vpop.f32.mrb[3].mxu1  ;;  %v2039_v25 = vsel %vm918_vm4, %v8083_v50, -inf }
 0x4e7   : > { %v2033_v11 = vsel %vm918_vm4, %v1901_v5, -inf }
 0x4e8   : > { %2034 = vmax.xlane.f32.xlu1 %v2033_v11 }
 0x4e9   : > { %2031 = vmax.xlane.f32.xlu0 %v2030_v10 }
 0x4eb   : > { %v8087_v24 = vpop.f32.mrb[4].mxu1 }
 0x4ec   : > { %v8089_v17 = vpop.f32.mrb[5].mxu1  ;;  %v2048_v46 = vsel %vm918_vm4, %v8087_v24, -inf }
 0x4ed   : > { %2040 = vmax.xlane.f32.xlu0 %v2039_v25  ;;  %v8093_v22 = vpop.f32.mrb[6].mxu1  ;;  %v2042_v61 = vsel %vm918_vm4, %v8089_v17, -inf }
 0x4ee   : > { %v8095_v28 = vpop.f32.mrb[7].mxu1  ;;  %v2051_v2 = vsel %vm918_vm4, %v8093_v22, -inf }
 0x4ef   : > { %2052 = vmax.xlane.f32.xlu1 %v2051_v2  ;;  %v2045_v59 = vsel %vm918_vm4, %v8095_v28, -inf }
 0x4f1   : > { %2049 = vmax.xlane.f32.xlu0 %v2048_v46 }
 0x4f3   : > { %v8103_v35 = vpop.f32.mrb[16].mxu0  ;;  %2046 = vmax.xlane.f32.xlu1 %v2045_v59 }
 0x4f4   : > { %v8105_v44 = vpop.f32.mrb[17].mxu0  ;;  %v2060_v63 = vsel %vm918_vm4, %v8103_v35, -inf }
 0x4f5   : > { %v8109_v6 = vpop.f32.mrb[18].mxu0  ;;  %2043 = vmax.xlane.f32.xlu0 %v2042_v61  ;;  %v2054_v1 = vsel %vm918_vm4, %v8105_v44, -inf }
 0x4f6   : > { %v8111_v41 = vpop.f32.mrb[19].mxu0  ;;  %v2063_v27 = vsel %vm918_vm4, %v8109_v6, -inf }
 0x4f7   : > { %2064 = vmax.xlane.f32.xlu1 %v2063_v27  ;;  %v2057_v60 = vsel %vm918_vm4, %v8111_v41, -inf }
 0x4f9   : > { %2061 = vmax.xlane.f32.xlu0 %v2060_v63 }
 0x4fb   : > { %v8119_v33 = vpop.f32.mrb[20].mxu0  ;;  %2058 = vmax.xlane.f32.xlu1 %v2057_v60 }
 0x4fc   : > { %v8121_v0 = vpop.f32.mrb[21].mxu0  ;;  %v2072_v49 = vsel %vm918_vm4, %v8119_v33, -inf }
 0x4fd   : > { %v8125_v38 = vpop.f32.mrb[22].mxu0  ;;  %2055 = vmax.xlane.f32.xlu0 %v2054_v1  ;;  %v2066_v31 = vsel %vm918_vm4, %v8121_v0, -inf }
 0x4fe   : > { %v8127_v32 = vpop.f32.mrb[23].mxu0  ;;  %v2075_v30 = vsel %vm918_vm4, %v8125_v38, -inf }
 0x4ff   : > { %v2069_v21 = vsel %vm918_vm4, %v8127_v32, -inf }
 0x501   : > { %2073 = vmax.xlane.f32.xlu0 %v2072_v49 }
 0x505   : > { %2067 = vmax.xlane.f32.xlu0 %v2066_v31 }
 0x50c   : > { %2414 = vrot.lane.b32.xlu1 %v7949_v3, %s6686_s14 }
 0x51b   : > { %2412 = vrot.lane.b32.xlu0 %v7953_v29, %s6686_s14 }
 0x530   : > { %2076 = vmax.xlane.f32.xlu1 %v2075_v30 }
 0x534   : > { %2070 = vmax.xlane.f32.xlu1 %v2069_v21 }
 0x572   : > { %v2038_v40 = vpop.xlane.xlu0 %2037 }
 0x573   : > { %v2080_v42 = vsub.f32 %v5800_v53, %v2038_v40 }
 0x575   : > { %v2098_v9 = vmul.f32 1.442695, %v2080_v42  ;;  %v2035_v14 = vpop.xlane.xlu1 %2034 }
 0x576   : > { %v2032_v34 = vpop.xlane.xlu0 %2031  ;;  %v2079_v8 = vsub.f32 %v1901_v5, %v2035_v14 }
 0x577   : > { %6335 = vpow2.f32 %v2098_v9  ;;  %v2078_v51 = vsub.f32 %v1898_v55, %v2032_v34 }
 0x578   : > { %v2096_v25 = vmul.f32 1.442695, %v2079_v8 }
 0x579   : > { %v2094_v15 = vmul.f32 1.442695, %v2078_v51 }
 0x57a   : > { %v2041_v20 = vpop.xlane.xlu0 %2040 }
 0x57b   : > { %6337 = vpow2.f32 %v2094_v15  ;;  %v2081_v11 = vsub.f32 %v8083_v50, %v2041_v20 }
 0x57c   : > { %v2053_v10 = vpop.xlane.xlu1 %2052 }
 0x57d   : > { %v2100_v2 = vmul.f32 1.442695, %v2081_v11  ;;  %v2085_v53 = vsub.f32 %v8093_v22, %v2053_v10 }
 0x57e   : > { %v2050_v46 = vpop.xlane.xlu0 %2049 }
 0x57f   : > { %6339 = vpow2.f32 %v2100_v2  ;;  %v2084_v59 = vsub.f32 %v8087_v24, %v2050_v46  ;;  %v2108_v1 = vmul.f32 1.442695, %v2085_v53 }
 0x580   : > { %6341 = vpow2.f32 %v2096_v25  ;;  %v2047_v55 = vpop.xlane.xlu1 %2046 }
 0x581   : > { %v8147_v61 = vpop.eup %6335  ;;  %v2106_v27 = vmul.f32 1.442695, %v2084_v59  ;;  %v2083_v24 = vsub.f32 %v8095_v28, %v2047_v55 }
 0x582   : > { %v2044_v5 = vpop.xlane.xlu0 %2043  ;;  %v2132_v63 = vsel %vm918_vm4, %v8147_v61, 0.0 }
 0x583   : > { %v2082_v50 = vsub.f32 %v8089_v17, %v2044_v5  ;;  %2133 = vadd.xlane.f32.xlu0 %v2132_v63  ;;  %6343 = vpow2.f32 %v2106_v27  ;;  %v2104_v40 = vmul.f32 1.442695, %v2083_v24 }
 0x584   : > { %v2065_v30 = vpop.xlane.xlu1 %2064 }
 0x585   : > { %v8153_v60 = vpop.eup %6337  ;;  %v2102_v49 = vmul.f32 1.442695, %v2082_v50  ;;  %v2089_v34 = vsub.f32 %v8109_v6, %v2065_v30 }
 0x586   : > { %v2062_v31 = vpop.xlane.xlu0 %2061  ;;  %v2126_v22 = vsel %vm918_vm4, %v8153_v60, 0.0 }
 0x587   : > { %6345 = vpow2.f32 %v2102_v49  ;;  %2127 = vadd.xlane.f32.xlu0 %v2126_v22  ;;  %v2088_v17 = vsub.f32 %v8103_v35, %v2062_v31  ;;  %v2116_v25 = vmul.f32 1.442695, %v2089_v34 }
 0x588   : > { %6347 = vpow2.f32 %v2108_v1  ;;  %v2059_v15 = vpop.xlane.xlu1 %2058 }
 0x589   : > { %v8158_v21 = vpop.eup %6339  ;;  %6349 = vpow2.f32 %v2104_v40  ;;  %v2114_v51 = vmul.f32 1.442695, %v2088_v17 }
 0x58a   : > { %v2056_v42 = vpop.xlane.xlu0 %2055  ;;  %v2135_v9 = vsel %vm918_vm4, %v8158_v21, 0.0  ;;  %v8163_v14 = vpop.eup %6341 }
 0x58b   : > { %v2086_v28 = vsub.f32 %v8105_v44, %v2056_v42  ;;  %2136 = vadd.xlane.f32.xlu1 %v2135_v9  ;;  %v2129_v11 = vsel %vm918_vm4, %v8163_v14, 0.0  ;;  %v2087_v44 = vsub.f32 %v8111_v41, %v2059_v15 }
 0x58c   : > { %v2415_v41 = vpop.permute.xlu1 %2414 }
 0x58d   : > { %v2110_v8 = vmul.f32 1.442695, %v2086_v28  ;;  %v8169_v35 = vpop.eup %6343  ;;  %v2112_v53 = vmul.f32 1.442695, %v2087_v44 }
 0x58e   : > { %v2074_v20 = vpop.xlane.xlu0 %2073  ;;  %v2144_v46 = vsel %vm918_vm4, %v8169_v35, 0.0 }
 0x58f   : > { %6351 = vpow2.f32 %v2110_v8  ;;  %2130 = vadd.xlane.f32.xlu1 %v2129_v11  ;;  %v2092_v17 = vsub.f32 %v8119_v33, %v2074_v20 }
 0x590   : > { %6353 = vpow2.f32 %v2114_v51 }
 0x591   : > { %v8171_v10 = vpop.eup %6345  ;;  %6355 = vpow2.f32 %v2116_v25  ;;  %v2122_v9 = vmul.f32 1.442695, %v2092_v17 }
 0x592   : > { %v2068_v2 = vpop.xlane.xlu0 %2067  ;;  %v2138_v6 = vsel %vm918_vm4, %v8171_v10, 0.0  ;;  %v8178_v59 = vpop.eup %6347  ;;  %6357 = vpow2.f32 %v2112_v53 }
 0x593   : > { %2139 = vadd.xlane.f32.xlu0 %v2138_v6  ;;  %2145 = vadd.xlane.f32.xlu1 %v2144_v46  ;;  %v2147_v55 = vsel %vm918_vm4, %v8178_v59, 0.0  ;;  %v8182_v5 = vpop.eup %6349  ;;  %v2090_v28 = vsub.f32 %v8121_v0, %v2068_v2  ;;  %6359 = vpow2.f32 %v2122_v9 }
 0x594   : > { %v2141_v1 = vsel %vm918_vm4, %v8182_v5, 0.0 }
 0x595   : > { %v2118_v34 = vmul.f32 1.442695, %v2090_v28 }
 0x596   : > { %v2413_v27 = vpop.permute.xlu0 %2412 }
 0x597   : > { %5862 = vmatprep.mubr.msk.bf16.mxu0 %vm1839_vm6, %v2413_v27  ;;  %2148 = vadd.xlane.f32.xlu1 %v2147_v55  ;;  %6361 = vpow2.f32 %v2118_v34 }
 0x598   : > { %5863 = vmatmul.mubr.msk.bf16.vlgmr.msra.gmra.mrb[24].mxu0 %vm1839_vm6, %v2415_v41 }
 0x599   : > { %v8186_v63 = vpop.eup %6351 }
 0x59a   : > { %v2150_v50 = vsel %vm918_vm4, %v8186_v63, 0.0  ;;  %v8192_v24 = vpop.eup %6353 }
 0x59b   : > { %2151 = vadd.xlane.f32.xlu0 %v2150_v50  ;;  %2142 = vadd.xlane.f32.xlu1 %v2141_v1  ;;  %v2156_v49 = vsel %vm918_vm4, %v8192_v24, 0.0  ;;  %v8196_v31 = vpop.eup %6355 }
 0x59c   : > { %v2159_v22 = vsel %vm918_vm4, %v8196_v31, 0.0  ;;  %v8200_v30 = vpop.eup %6357 }
 0x59d   : > { %v2153_v40 = vsel %vm918_vm4, %v8200_v30, 0.0  ;;  %v8212_v44 = vpop.eup %6359 }
 0x59e   : > { %v2168_v33 = vsel %vm918_vm4, %v8212_v44, 0.0 }
 0x59f   : > { %2157 = vadd.xlane.f32.xlu1 %v2156_v49 }
 0x5a1   : > { %v8216_v20 = vpop.eup %6361 }
 0x5a2   : > { %v2162_v0 = vsel %vm918_vm4, %v8216_v20, 0.0 }
 0x5a3   : > { %2160 = vadd.xlane.f32.xlu1 %v2159_v22 }
 0x5a7   : > { %2154 = vadd.xlane.f32.xlu1 %v2153_v40 }
 0x5b1   : > { %2533 = vrot.lane.b32.xlu0 %v7999_v48, %s6685_s28 }
 0x5b8   : > { %2416 = vrot.lane.b32.xlu1 %v7969_v36, %s6686_s14 }
 0x5bd   : > { %v2077_v42 = vpop.xlane.xlu1 %2076 }
 0x5be   : > { %v2093_v51 = vsub.f32 %v8125_v38, %v2077_v42 }
 0x5c0   : > { %v2124_v15 = vmul.f32 1.442695, %v2093_v51 }
 0x5c1   : > { %v2071_v8 = vpop.xlane.xlu1 %2070 }
 0x5c2   : > { %v2091_v11 = vsub.f32 %v8127_v32, %v2071_v8  ;;  %6363 = vpow2.f32 %v2124_v15 }
 0x5c4   : > { %v2120_v25 = vmul.f32 1.442695, %v2091_v11 }
 0x5c6   : > { %6365 = vpow2.f32 %v2120_v25 }
 0x5cc   : > { %v8220_v38 = vpop.eup %6363 }
 0x5cd   : > { %v2171_v32 = vsel %vm918_vm4, %v8220_v38, 0.0 }
 0x5d0   : > { %2169 = vadd.xlane.f32.xlu0 %v2168_v33  ;;  %v8224_v2 = vpop.eup %6365 }
 0x5d1   : > { %v2165_v6 = vsel %vm918_vm4, %v8224_v2, 0.0 }
 0x5d4   : > { %2163 = vadd.xlane.f32.xlu0 %v2162_v0 }
 0x5d8   : > { %2172 = vadd.xlane.f32.xlu0 %v2171_v32 }
 0x5dc   : > { %2166 = vadd.xlane.f32.xlu1 %v2165_v6 }
 0x5ed   : > { %2535 = vrot.lane.b32.xlu1 %v7997_v54, %s6685_s28 }
 0x5ee   : > { %2418 = vrot.lane.b32.xlu0 %v7967_v23, %s6686_s14 }
 0x5f1   : > { %2523 = vrot.lane.b32.xlu1 %v7983_v18, %s6686_s14 }
 0x5f2   : > { %2521 = vrot.lane.b32.xlu0 %v7985_v19, %s6686_s14 }
 0x5f5   : > { %2527 = vrot.lane.b32.xlu1 %v8001_v58, %s6686_s14 }
 0x5f6   : > { %2525 = vrot.lane.b32.xlu0 %v8003_v16, %s6686_s14 }
 0x610   : > { %v2134_v46 = vpop.xlane.xlu0 %2133 }
 0x614   : > { %v2128_v53 = vpop.xlane.xlu0 %2127 }
 0x618   : > { %v2137_v27 = vpop.xlane.xlu1 %2136 }
 0x619   : > { %6367 = vrcp.f32 %v2137_v27 }
 0x61a   : > { %6369 = vrcp.f32 %v2128_v53 }
 0x61b   : > { %6371 = vrcp.f32 %v2134_v46 }
 0x61c   : > { %v2131_v55 = vpop.xlane.xlu1 %2130 }
 0x61d   : > { %6373 = vrcp.f32 %v2131_v55 }
 0x620   : > { %v2146_v41 = vpop.xlane.xlu1 %2145  ;;  %v2140_v22 = vpop.xlane.xlu0 %2139 }
 0x623   : > { %v6368_v50 = vpop.eup %6367 }
 0x624   : > { %v2149_v1 = vpop.xlane.xlu1 %2148  ;;  %v6370_v49 = vpop.eup %6369  ;;  %v2209_v42 = vmul.f32 %v6368_v50, %v8158_v21 }
 0x625   : > { %v6372_v40 = vpop.eup %6371  ;;  %6375 = vrcp.f32 %v2149_v1  ;;  %v2206_v28 = vmul.f32 %v6370_v49, %v8153_v60 }
 0x626   : > { %6377 = vrcp.f32 %v2140_v22  ;;  %v2208_v51 = vmul.f32 %v6372_v40, %v8147_v61 }
 0x627   : > { %v6374_v17 = vpop.eup %6373  ;;  %6379 = vrcp.f32 %v2146_v41 }
 0x628   : > { %v2143_v9 = vpop.xlane.xlu1 %2142  ;;  %v2207_v34 = vmul.f32 %v6374_v17, %v8163_v14  ;;  %v2223_v15 = vpack.c.bf16 %v2209_v42, %v2208_v51  ;;  %v2152_v21 = vpop.xlane.xlu0 %2151 }
 0x629   : > { %6381 = vrcp.f32 %v2143_v9 }
 0x62a   : > { %v2222_v8 = vpack.c.bf16 %v2207_v34, %v2206_v28 }
 0x62c   : > { %5830 = vmatprep.mubr.msk.bf16.mxu1 %vm918_vm4, %v2222_v8  ;;  %v2158_v11 = vpop.xlane.xlu1 %2157 }
 0x62d   : > { %5831 = vmatmul.mubr.msk.bf16.vlgmr.msra.gmra.mrb[8].mxu1 %vm918_vm4, %v2223_v15 }
 0x62e   : > { %5839 = vmatpush3.bf16.msra.mxu1 %v8056_v13 }
 0x62f   : > { %5840 = vmatprep.subr.bf16.mxu1 %v8062_v26  ;;  %v6376_v60 = vpop.eup %6375 }
 0x630   : > { %v2161_v25 = vpop.xlane.xlu1 %2160  ;;  %v6378_v33 = vpop.eup %6377  ;;  %v2213_v32 = vmul.f32 %v6376_v60, %v8178_v59 }
 0x631   : > { %6383 = vrcp.f32 %v2161_v25  ;;  %v6380_v61 = vpop.eup %6379  ;;  %v2210_v13 = vmul.f32 %v6378_v33, %v8171_v10 }
 0x632   : > { %5841 = vmatpush3.bf16.msra.mxu1 %v8062_v26  ;;  %6385 = vrcp.f32 %v2152_v21  ;;  %v2212_v46 = vmul.f32 %v6380_v61, %v8169_v35 }
 0x633   : > { %5842 = vmatprep.subr.bf16.mxu1 %v8143_v57  ;;  %v6382_v14 = vpop.eup %6381  ;;  %6387 = vrcp.f32 %v2158_v11 }
 0x634   : > { %v2155_v0 = vpop.xlane.xlu1 %2154  ;;  %v2211_v6 = vmul.f32 %v6382_v14, %v8182_v5  ;;  %v2225_v27 = vpack.c.bf16 %v2213_v32, %v2212_v46 }
 0x635   : > { %6389 = vrcp.f32 %v2155_v0 }
 0x636   : > { %5843 = vmatpush3.bf16.msra.mxu1 %v8143_v57  ;;  %v2224_v26 = vpack.c.bf16 %v2211_v6, %v2210_v13 }
 0x637   : > { %5844 = vmatprep.subr.bf16.mxu1 %v8071_v45 }
 0x638   : > { %v2417_v53 = vpop.permute.xlu1 %2416  ;;  %5834 = vmatprep.mubr.msk.bf16.mxu1 %vm918_vm4, %v2224_v26 }
 0x639   : > { %5866 = vmatprep.mubr.msk.bf16.mxu0 %vm1839_vm6, %v2417_v53  ;;  %5835 = vmatmul.mubr.msk.bf16.gmra.mrb[12].mxu1 %vm918_vm4, %v2225_v27 }
 0x63a   : > { %5845 = vmatpush3.bf16.msra.mxu1 %v8071_v45  ;;  %v2550_v45 = vsel %vm1839_vm6, %v8077_v56, 0 }
 0x63b   : > { %v6384_v10 = vpop.eup %6383  ;;  %6122 = vmatprep.subr.msk.bf16.mxu1 %vm1839_vm6, %v8077_v56 }
 0x63c   : > { %v6386_v57 = vpop.eup %6385  ;;  %v2217_v5 = vmul.f32 %v6384_v10, %v8196_v31  ;;  %v2534_v31 = vpop.permute.xlu0 %2533 }
 0x63d   : > { %v6388_v59 = vpop.eup %6387  ;;  %v2214_v55 = vmul.f32 %v6386_v57, %v8186_v63  ;;  %v2553_v63 = vsel %vm1839_vm6, %v8141_v4, 0 }
 0x63e   : > { %v2216_v50 = vmul.f32 %v6388_v59, %v8192_v24  ;;  %v2556_v24 = vsel %vm1839_vm6, %v2534_v31, 0 }
 0x63f   : > { %v6390_v35 = vpop.eup %6389 }
 0x640   : > { %v2215_v41 = vmul.f32 %v6390_v35, %v8200_v30  ;;  %v2227_v49 = vpack.c.bf16 %v2217_v5, %v2216_v50 }
 0x642   : > { %v2226_v1 = vpack.c.bf16 %v2215_v41, %v2214_v55 }
 0x644   : > { %5846 = vmatprep.mubr.msk.bf16.mxu1 %vm918_vm4, %v2226_v1 }
 0x645   : > { %5847 = vmatmul.mubr.msk.bf16.vlgmr.msra.gmra.mrb[16].mxu1 %vm918_vm4, %v2227_v49 }
 0x646   : > { %5871 = vmatpush3.bf16.xpose.msra.mxu1 %v2550_v45 }
 0x647   : > { %6123 = vmatprep.subr.msk.bf16.mxu1 %vm1839_vm6, %v8141_v4 }
 0x64e   : > { %5873 = vmatpush3.bf16.xpose.msra.mxu1 %v2553_v63 }
 0x64f   : > { %6124 = vmatprep.subr.msk.bf16.mxu1 %vm1839_vm6, %v2534_v31 }
 0x656   : > { %5875 = vmatpush3.bf16.xpose.msra.mxu1 %v2556_v24 }
 0x65d   : > { %v2170_v30 = vpop.xlane.xlu0 %2169 }
 0x661   : > { %v2164_v22 = vpop.xlane.xlu0 %2163 }
 0x665   : > { %v2173_v40 = vpop.xlane.xlu0 %2172 }
 0x666   : > { %6391 = vrcp.f32 %v2173_v40 }
 0x667   : > { %6393 = vrcp.f32 %v2164_v22 }
 0x668   : > { %6395 = vrcp.f32 %v2170_v30 }
 0x669   : > { %v2419_v56 = vpop.permute.xlu0 %2418  ;;  %v2167_v17 = vpop.xlane.xlu1 %2166 }
 0x66a   : > { %6397 = vrcp.f32 %v2167_v17  ;;  %5867 = vmatmul.mubr.msk.bf16.gmra.mrb[28].mxu0 %vm1839_vm6, %v2419_v56 }
 0x66b   : > { %v8277_v42 = vpop.f32.mrb[24].mxu0 }
 0x66c   : > { %v8279_v4 = vpop.f32.mrb[25].mxu0  ;;  %v2632_v21 = vsel %vm918_vm4, %v8277_v42, -inf }
 0x66d   : > { %v8281_v9 = vpop.f32.mrb[26].mxu0  ;;  %v2626_v28 = vsel %vm918_vm4, %v8279_v4, -inf  ;;  %v2536_v34 = vpop.permute.xlu1 %2535 }
 0x66e   : > { %v8285_v51 = vpop.f32.mrb[27].mxu0  ;;  %2627 = vmax.xlane.f32.xlu0 %v2626_v28  ;;  %6125 = vmatprep.subr.msk.bf16.mxu1 %vm1839_vm6, %v2536_v34  ;;  %v2559_v8 = vsel %vm1839_vm6, %v2536_v34, 0  ;;  %v2635_v14 = vsel %vm918_vm4, %v8281_v9, -inf  ;;  %v2522_v26 = vpop.permute.xlu0 %2521 }
 0x66f   : > { %v2629_v15 = vsel %vm918_vm4, %v8285_v51, -inf  ;;  %5877 = vmatpush3.bf16.xpose.msra.mxu1 %v2559_v8 }
 0x670   : > { %2630 = vmax.xlane.f32.xlu1 %v2629_v15  ;;  %v6392_v11 = vpop.eup %6391 }
 0x671   : > { %v6394_v25 = vpop.eup %6393  ;;  %v2221_v61 = vmul.f32 %v6392_v11, %v8220_v38  ;;  %v2524_v38 = vpop.permute.xlu1 %2523 }
 0x672   : > { %2633 = vmax.xlane.f32.xlu0 %v2632_v21  ;;  %v6396_v60 = vpop.eup %6395  ;;  %v2218_v0 = vmul.f32 %v6394_v25, %v8216_v20  ;;  %v2526_v53 = vpop.permute.xlu0 %2525 }
 0x673   : > { %v2220_v13 = vmul.f32 %v6396_v60, %v8212_v44 }
 0x674   : > { %v6398_v33 = vpop.eup %6397 }
 0x675   : > { %v2219_v32 = vmul.f32 %v6398_v33, %v8224_v2  ;;  %v2229_v46 = vpack.c.bf16 %v2221_v61, %v2220_v13  ;;  %v2528_v20 = vpop.permute.xlu1 %2527 }
 0x676   : > { %2636 = vmax.xlane.f32.xlu0 %v2635_v14 }
 0x677   : > { %v2228_v6 = vpack.c.bf16 %v2219_v32, %v2218_v0 }
 0x679   : > { %5850 = vmatprep.mubr.msk.bf16.mxu1 %vm918_vm4, %v2228_v6 }
 0x67a   : > { %5851 = vmatmul.mubr.msk.bf16.gmra.mrb[20].mxu1 %vm918_vm4, %v2229_v46 }
 0x67b   : > { %5878 = vmatprep.mubr.msk.bf16.mxu1 %vm1839_vm6, %v2522_v26 }
 0x682   : > { %5879 = vmatmul.mubr.msk.bf16.vlgmr.msra.gmra.mrb[24].mxu1 %vm1839_vm6, %v2524_v38 }
 0x683   : > { %5882 = vmatprep.mubr.msk.bf16.mxu1 %vm1839_vm6, %v2526_v53 }
 0x68a   : > { %5883 = vmatmul.mubr.msk.bf16.gmra.mrb[28].mxu1 %vm1839_vm6, %v2528_v20 }
 0x6fb   : > { %v2628_v14 = vpop.xlane.xlu0 %2627 }
 0x6fc   : > { %v2674_v20 = vsub.f32 %v8279_v4, %v2628_v14 }
 0x6fd   : > { %v2631_v6 = vpop.xlane.xlu1 %2630 }
 0x6fe   : > { %v2675_v46 = vsub.f32 %v8285_v51, %v2631_v6 }
 0x6ff   : > { %v2634_v0 = vpop.xlane.xlu0 %2633 }
 0x700   : > { %v8305_v2 = vpop.f32.mrb[8].mxu1  ;;  %v2676_v38 = vsub.f32 %v8277_v42, %v2634_v0  ;;  %v2692_v53 = vmul.f32 1.442695, %v2675_v46 }
 0x701   : > { %9733 = vst [vmem:[#allocation14_spill] sm:$0xff] %v8305_v2  ;;  %v8307_v44 = vpop.f32.mrb[9].mxu1 }
 0x702   : > { %9734 = vst [vmem:[#allocation13_spill] sm:$0xff] %v8307_v44  ;;  %v8309_v27 = vpop.f32.mrb[10].mxu1 }
 0x703   : > { %9735 = vst [vmem:[#allocation15_spill] sm:$0xff] %v8309_v27  ;;  %v8311_v10 = vpop.f32.mrb[11].mxu1  ;;  %v2637_v32 = vpop.xlane.xlu0 %2636 }
 0x704   : > { %9736 = vst [vmem:[#allocation16_spill] sm:$0xff] %v8311_v10  ;;  %v2677_v13 = vsub.f32 %v8281_v9, %v2637_v32 }
 0x706   : > { %v2696_v26 = vmul.f32 1.442695, %v2677_v13 }
 0x708   : > { %6399 = vpow2.f32 %v2696_v26 }
 0x709   : > { %6401 = vpow2.f32 %v2692_v53 }
 0x70c   : > { %v8313_v57 = vpop.f32.mrb[12].mxu1 }
 0x70d   : > { %9737 = vst [vmem:[#allocation8_spill] sm:$0xff] %v8313_v57  ;;  %v8315_v59 = vpop.f32.mrb[13].mxu1 }
 0x70e   : > { %9738 = vst [vmem:[#allocation9_spill] sm:$0xff] %v8315_v59  ;;  %v8317_v35 = vpop.f32.mrb[14].mxu1 }
 0x70f   : > { %9739 = vst [vmem:[#allocation17_spill] sm:$0xff] %v8317_v35  ;;  %v8319_v5 = vpop.f32.mrb[15].mxu1 }
 0x710   : > { %9740 = vst [vmem:[#allocation12_spill] sm:$0xff] %v8319_v5 }
 0x718   : > { %v8321_v55 = vpop.f32.mrb[16].mxu1 }
 0x719   : > { %9741 = vst [vmem:[#allocation10_spill] sm:$0xff] %v8321_v55  ;;  %v8323_v41 = vpop.f32.mrb[17].mxu1 }
 0x71a   : > { %9742 = vst [vmem:[#allocation11_spill] sm:$0xff] %v8323_v41  ;;  %v8325_v50 = vpop.f32.mrb[18].mxu1 }
 0x71b   : > { %9743 = vst [vmem:[#allocation7_spill] sm:$0xff] %v8325_v50  ;;  %v8327_v1 = vpop.f32.mrb[19].mxu1 }
 0x71c   : > { %9744 = vst [vmem:[#allocation18_spill] sm:$0xff] %v8327_v1 }
 0x73d   : > { %v8329_v49 = vpop.f32.mrb[28].mxu0 }
 0x73e   : > { %v8331_v45 = vpop.f32.mrb[29].mxu0  ;;  %v2644_v22 = vsel %vm918_vm4, %v8329_v49, -inf }
 0x73f   : > { %v8333_v63 = vpop.f32.mrb[30].mxu0  ;;  %v2638_v31 = vsel %vm918_vm4, %v8331_v45, -inf }
 0x740   : > { %2639 = vmax.xlane.f32.xlu0 %v2638_v31  ;;  %v8337_v24 = vpop.f32.mrb[31].mxu0  ;;  %v2647_v40 = vsel %vm918_vm4, %v8333_v63, -inf  ;;  %v2694_v31 = vmul.f32 1.442695, %v2676_v38 }
 0x741   : > { %v2641_v30 = vsel %vm918_vm4, %v8337_v24, -inf }
 0x742   : > { %2642 = vmax.xlane.f32.xlu1 %v2641_v30  ;;  %v2690_v30 = vmul.f32 1.442695, %v2674_v20  ;;  %6403 = vpow2.f32 %v2694_v31 }
 0x744   : > { %2645 = vmax.xlane.f32.xlu0 %v2644_v22  ;;  %v8385_v22 = vpop.eup %6399  ;;  %6405 = vpow2.f32 %v2690_v30 }
 0x745   : > { %v2731_v9 = vsel %vm918_vm4, %v8385_v22, 0.0 }
 0x746   : > { %2648 = vmax.xlane.f32.xlu1 %v2647_v40  ;;  %v8389_v40 = vpop.eup %6401 }
 0x747   : > { %v2725_v42 = vsel %vm918_vm4, %v8389_v40, 0.0 }
 0x74c   : > { %v8391_v51 = vpop.eup %6403 }
 0x74d   : > { %v8345_v56 = vpop.f32.mrb[20].mxu1  ;;  %v2728_v4 = vsel %vm918_vm4, %v8391_v51, 0.0 }
 0x74e   : > { %9745 = vst [vmem:[#allocation19_spill] sm:$0xff] %v8345_v56  ;;  %v8347_v17 = vpop.f32.mrb[21].mxu1  ;;  %v8397_v14 = vpop.eup %6405 }
 0x74f   : > { %9746 = vst [vmem:[#allocation20_spill] sm:$0xff] %v8347_v17  ;;  %v8349_v28 = vpop.f32.mrb[22].mxu1  ;;  %v2722_v0 = vsel %vm918_vm4, %v8397_v14, 0.0 }
 0x750   : > { %9747 = vst [vmem:[#allocation21_spill] sm:$0xff] %v8349_v28  ;;  %v8351_v34 = vpop.f32.mrb[23].mxu1 }
 0x751   : > { %9748 = vst [vmem:[#allocation22_spill] sm:$0xff] %v8351_v34 }
 0x755   : > { %v8353_v8 = vpop.f32.mrb[24].mxu1 }
 0x756   : > { %v8355_v15 = vpop.f32.mrb[25].mxu1 }
 0x757   : > { %2828 = vrot.lane.b32.xlu1 %v7945_v7, %s6687_s15  ;;  %v8358_v11 = vpop.f32.mrb[26].mxu1 }
 0x758   : > { %v8360_v21 = vpop.f32.mrb[27].mxu1 }
 0x75a   : > { %2826 = vrot.lane.b32.xlu0 %v7947_v47, %s6687_s15 }
 0x75b   : > { %2832 = vrot.lane.b32.xlu1 %v7963_v37, %s6687_s15 }
 0x75d   : > { %v8364_v25 = vpop.f32.mrb[28].mxu1 }
 0x75e   : > { %2830 = vrot.lane.b32.xlu0 %v7965_v12, %s6687_s15  ;;  %v8367_v60 = vpop.f32.mrb[29].mxu1 }
 0x75f   : > { %2919 = vrot.lane.b32.xlu1 %v7999_v48, %s6687_s15  ;;  %v8370_v33 = vpop.f32.mrb[30].mxu1 }
 0x760   : > { %v8372_v61 = vpop.f32.mrb[31].mxu1  ;;  %v2671_v17 = vsel %vm918_vm4, %v8370_v33, -inf }
 0x762   : > { %2915 = vrot.lane.b32.xlu0 %v7981_v43, %s6687_s15 }
 0x763   : > { %3014 = vrot.lane.b32.xlu1 %v7945_v7, %s6688_s19 }
 0x766   : > { %2917 = vrot.lane.b32.xlu0 %v7979_v39, %s6687_s15 }
 0x76a   : > { %3012 = vrot.lane.b32.xlu0 %v7947_v47, %s6688_s19 }
 0x76e   : > { %2921 = vrot.lane.b32.xlu0 %v7997_v54, %s6687_s15 }
 0x787   : > { %2732 = vadd.xlane.f32.xlu1 %v2731_v9 }
 0x78b   : > { %2726 = vadd.xlane.f32.xlu1 %v2725_v42 }
 0x78d   : > { %2729 = vadd.xlane.f32.xlu0 %v2728_v4 }
 0x791   : > { %2723 = vadd.xlane.f32.xlu0 %v2722_v0 }
 0x7cd   : > { %v2640_v32 = vpop.xlane.xlu0 %2639 }
 0x7ce   : > { %v2678_v13 = vsub.f32 %v8331_v45, %v2640_v32 }
 0x7cf   : > { %v2643_v6 = vpop.xlane.xlu1 %2642 }
 0x7d0   : > { %v2698_v46 = vmul.f32 1.442695, %v2678_v13  ;;  %v2679_v30 = vsub.f32 %v8337_v24, %v2643_v6 }
 0x7d1   : > { %v2646_v26 = vpop.xlane.xlu0 %2645 }
 0x7d2   : > { %6407 = vpow2.f32 %v2698_v46  ;;  %v2680_v38 = vsub.f32 %v8329_v49, %v2646_v26  ;;  %v2700_v45 = vmul.f32 1.442695, %v2679_v30  ;;  %v2656_v26 = vsel %vm918_vm4, %v8353_v8, -inf }
 0x7d3   : > { %v2649_v53 = vpop.xlane.xlu1 %2648 }
 0x7d4   : > { %v2702_v20 = vmul.f32 1.442695, %v2680_v38  ;;  %v2681_v31 = vsub.f32 %v8333_v63, %v2649_v53 }
 0x7d5   : > { %v2827_v9 = vpop.permute.xlu0 %2826 }
 0x7d6   : > { %6409 = vpow2.f32 %v2702_v20  ;;  %v2704_v42 = vmul.f32 1.442695, %v2681_v31  ;;  %5886 = vmatprep.subr.bf16.mxu1 %v2827_v9  ;;  %v2650_v31 = vsel %vm918_vm4, %v8355_v15, -inf }
 0x7d7   : > { %5887 = vmatpush3.bf16.msra.mxu1 %v2827_v9  ;;  %v2829_v4 = vpop.permute.xlu1 %2828 }
 0x7d8   : > { %5888 = vmatprep.subr.bf16.mxu1 %v2829_v4  ;;  %6411 = vpow2.f32 %v2704_v42 }
 0x7d9   : > { %v2831_v0 = vpop.permute.xlu0 %2830  ;;  %6413 = vpow2.f32 %v2700_v45  ;;  %v2668_v45 = vsel %vm918_vm4, %v8364_v25, -inf }
 0x7db   : > { %5889 = vmatpush3.bf16.msra.mxu1 %v2829_v4  ;;  %v2833_v32 = vpop.permute.xlu1 %2832 }
 0x7dc   : > { %v8405_v13 = vpop.eup %6407  ;;  %5890 = vmatprep.subr.bf16.mxu1 %v2831_v0 }
 0x7dd   : > { %v8407_v49 = vpop.permute.xlu0 %2915  ;;  %v2734_v63 = vsel %vm918_vm4, %v8405_v13, 0.0 }
 0x7de   : > { %2735 = vadd.xlane.f32.xlu0 %v2734_v63  ;;  %v2659_v63 = vsel %vm918_vm4, %v8358_v11, -inf }
 0x7df   : > { %5891 = vmatpush3.bf16.msra.mxu1 %v2831_v0  ;;  %v8413_v6 = vpop.permute.xlu1 %2919 }
 0x7e0   : > { %v8411_v24 = vpop.eup %6409  ;;  %5892 = vmatprep.subr.bf16.mxu1 %v2833_v32 }
 0x7e1   : > { %v2918_v46 = vpop.permute.xlu0 %2917  ;;  %v2740_v38 = vsel %vm918_vm4, %v8411_v24, 0.0 }
 0x7e2   : > { %2657 = vmax.xlane.f32.xlu0 %v2656_v26  ;;  %2741 = vadd.xlane.f32.xlu1 %v2740_v38  ;;  %v8419_v53 = vpop.eup %6411  ;;  %v2653_v38 = vsel %vm918_vm4, %v8360_v21, -inf }
 0x7e3   : > { %5893 = vmatpush3.bf16.msra.mxu1 %v2833_v32  ;;  %v2743_v30 = vsel %vm918_vm4, %v8419_v53, 0.0  ;;  %v8428_v42 = vpop.eup %6413  ;;  %v3015_v4 = vpop.permute.xlu1 %3014  ;;  %v2662_v32 = vsel %vm918_vm4, %v8367_v60, -inf }
 0x7e4   : > { %5902 = vmatprep.subr.bf16.mxu1 %v8407_v49  ;;  %v2737_v0 = vsel %vm918_vm4, %v8428_v42, 0.0  ;;  %v3036_v26 = vsel %vm1839_vm6, %v3015_v4, 0 }
 0x7e5   : > { %v3013_v20 = vpop.permute.xlu0 %3012 }
 0x7e6   : > { %6126 = vmatprep.subr.msk.bf16.mxu0 %vm1839_vm6, %v3013_v20  ;;  %2651 = vmax.xlane.f32.xlu0 %v2650_v31  ;;  %v3033_v9 = vsel %vm1839_vm6, %v3013_v20, 0 }
 0x7e7   : > { %2744 = vadd.xlane.f32.xlu1 %v2743_v30  ;;  %5919 = vmatpush3.bf16.xpose.msra.mxu0 %v3033_v9 }
 0x7e8   : > { %6127 = vmatprep.subr.msk.bf16.mxu0 %vm1839_vm6, %v3015_v4 }
 0x7e9   : > { %v2922_v31 = vpop.permute.xlu0 %2921 }
 0x7ea   : > { %2669 = vmax.xlane.f32.xlu0 %v2668_v45 }
 0x7eb   : > { %2738 = vadd.xlane.f32.xlu1 %v2737_v0 }
 0x7ee   : > { %2663 = vmax.xlane.f32.xlu0 %v2662_v32 }
 0x7ef   : > { %2660 = vmax.xlane.f32.xlu1 %v2659_v63  ;;  %5921 = vmatpush3.bf16.xpose.msra.mxu0 %v3036_v26 }
 0x7f3   : > { %2654 = vmax.xlane.f32.xlu1 %v2653_v38 }
 0x804   : > { %3117 = vrot.lane.b32.xlu1 %v7981_v43, %s6688_s19  ;;  %3016 = vrot.lane.b32.xlu0 %v7965_v12, %s6688_s19 }
 0x808   : > { %3018 = vrot.lane.b32.xlu1 %v7963_v37, %s6688_s19 }
 0x814   : > { %v2733_v20 = vpop.xlane.xlu1 %2732 }
 0x818   : > { %v2727_v30 = vpop.xlane.xlu1 %2726 }
 0x81a   : > { %v2730_v9 = vpop.xlane.xlu0 %2729 }
 0x81b   : > { %6415 = vrcp.f32 %v2730_v9  ;;  %v2665_v9 = vsel %vm918_vm4, %v8372_v61, -inf }
 0x81c   : > { %6417 = vrcp.f32 %v2727_v30 }
 0x81d   : > { %6419 = vrcp.f32 %v2733_v20 }
 0x81e   : > { %v2724_v4 = vpop.xlane.xlu0 %2723 }
 0x81f   : > { %6421 = vrcp.f32 %v2724_v4 }
 0x825   : > { %v6416_v45 = vpop.eup %6415 }
 0x826   : > { %v6418_v0 = vpop.eup %6417  ;;  %v2804_v26 = vmul.f32 %v6416_v45, %v8391_v51 }
 0x827   : > { %v6420_v32 = vpop.eup %6419  ;;  %v2803_v52 = vmul.f32 %v6418_v0, %v8389_v40 }
 0x828   : > { %v2805_v62 = vmul.f32 %v6420_v32, %v8385_v22 }
 0x829   : > { %v6422_v63 = vpop.eup %6421 }
 0x82a   : > { %v2802_v38 = vmul.f32 %v6422_v63, %v8397_v14  ;;  %v2819_v20 = vpack.c.bf16 %v2805_v62, %v2804_v26 }
 0x82c   : > { %2672 = vmax.xlane.f32.xlu1 %v2671_v17  ;;  %v2818_v30 = vpack.c.bf16 %v2803_v52, %v2802_v38 }
 0x82e   : > { %5894 = vmatprep.mubr.msk.bf16.mxu1 %vm918_vm4, %v2818_v30 }
 0x82f   : > { %5895 = vmatmul.mubr.msk.bf16.vlgmr.msra.gmra.mrb[32].mxu1 %vm918_vm4, %v2819_v20 }
 0x830   : > { %2666 = vmax.xlane.f32.xlu1 %v2665_v9  ;;  %5903 = vmatpush3.bf16.msra.mxu1 %v8407_v49 }
 0x831   : > { %5904 = vmatprep.subr.bf16.mxu1 %v2918_v46 }
 0x834   : > { %5905 = vmatpush3.bf16.msra.mxu1 %v2918_v46 }
 0x835   : > { %5906 = vmatprep.subr.bf16.mxu1 %v8413_v6 }
 0x838   : > { %5907 = vmatpush3.bf16.msra.mxu1 %v8413_v6 }
 0x839   : > { %5908 = vmatprep.subr.bf16.mxu1 %v2922_v31 }
 0x83c   : > { %5909 = vmatpush3.bf16.msra.mxu1 %v2922_v31 }
 0x841   : > { %3119 = vrot.lane.b32.xlu1 %v7979_v39, %s6688_s19 }
 0x86b   : > { %v2736_v62 = vpop.xlane.xlu0 %2735 }
 0x86f   : > { %v2658_v52 = vpop.xlane.xlu0 %2657  ;;  %v2742_v17 = vpop.xlane.xlu1 %2741 }
 0x870   : > { %v2684_v22 = vsub.f32 %v8353_v8, %v2658_v52 }
 0x872   : > { %v2710_v40 = vmul.f32 1.442695, %v2684_v22 }
 0x873   : > { %v2652_v51 = vpop.xlane.xlu0 %2651 }
 0x874   : > { %6423 = vpow2.f32 %v2710_v40  ;;  %v2682_v14 = vsub.f32 %v8355_v15, %v2652_v51  ;;  %v2745_v49 = vpop.xlane.xlu1 %2744 }
 0x875   : > { %6425 = vrcp.f32 %v2736_v62 }
 0x876   : > { %v2706_v46 = vmul.f32 1.442695, %v2682_v14  ;;  %6427 = vrcp.f32 %v2745_v49 }
 0x877   : > { %6429 = vrcp.f32 %v2742_v17  ;;  %v2670_v6 = vpop.xlane.xlu0 %2669 }
 0x878   : > { %6431 = vpow2.f32 %v2706_v46  ;;  %v2739_v31 = vpop.xlane.xlu1 %2738 }
 0x879   : > { %6433 = vrcp.f32 %v2739_v31 }
 0x87b   : > { %v2664_v4 = vpop.xlane.xlu0 %2663 }
 0x87c   : > { %v2661_v45 = vpop.xlane.xlu1 %2660 }
 0x87d   : > { %v2685_v0 = vsub.f32 %v8358_v11, %v2661_v45 }
 0x87e   : > { %v8466_v32 = vpop.eup %6423 }
 0x87f   : > { %v6426_v8 = vpop.eup %6425  ;;  %v2712_v63 = vmul.f32 1.442695, %v2685_v0  ;;  %v3017_v26 = vpop.permute.xlu0 %3016  ;;  %v2752_v15 = vsel %vm918_vm4, %v8466_v32, 0.0 }
 0x880   : > { %v6428_v38 = vpop.eup %6427  ;;  %v2655_v30 = vpop.xlane.xlu1 %2654  ;;  %2753 = vadd.xlane.f32.xlu1 %v2752_v15  ;;  %6128 = vmatprep.subr.msk.bf16.mxu0 %vm1839_vm6, %v3017_v26  ;;  %v3039_v20 = vsel %vm1839_vm6, %v3017_v26, 0  ;;  %v2806_v14 = vmul.f32 %v6426_v8, %v8405_v13  ;;  %v2688_v8 = vsub.f32 %v8364_v25, %v2670_v6  ;;  %v2686_v26 = vsub.f32 %v8367_v60, %v2664_v4 }
 0x881   : > { %v6430_v9 = vpop.eup %6429  ;;  %6435 = vpow2.f32 %v2712_v63  ;;  %v2683_v62 = vsub.f32 %v8360_v21, %v2655_v30  ;;  %5923 = vmatpush3.bf16.xpose.msra.mxu0 %v3039_v20  ;;  %v2809_v40 = vmul.f32 %v6428_v38, %v8419_v53 }
 0x882   : > { %v8473_v11 = vpop.eup %6431  ;;  %v2808_v21 = vmul.f32 %v6430_v9, %v8411_v24  ;;  %v2718_v63 = vmul.f32 1.442695, %v2688_v8  ;;  %v2714_v15 = vmul.f32 1.442695, %v2686_v26 }
 0x883   : > { %v6434_v52 = vpop.eup %6433  ;;  %v2708_v17 = vmul.f32 1.442695, %v2683_v62  ;;  %v2746_v22 = vsel %vm918_vm4, %v8473_v11, 0.0 }
 0x884   : > { %v8478_v51 = vpop.permute.xlu1 %3117  ;;  %2747 = vadd.xlane.f32.xlu0 %v2746_v22  ;;  %v2807_v49 = vmul.f32 %v6434_v52, %v8428_v42  ;;  %v2821_v31 = vpack.c.bf16 %v2809_v40, %v2808_v21 }
 0x885   : > { %6437 = vpow2.f32 %v2708_v17  ;;  %6130 = vmatprep.subr.msk.bf16.mxu1 %vm1839_vm6, %v8478_v51 }
 0x886   : > { %v2820_v46 = vpack.c.bf16 %v2807_v49, %v2806_v14  ;;  %6439 = vpow2.f32 %v2718_v63 }
 0x887   : > { %6441 = vpow2.f32 %v2714_v15 }
 0x888   : > { %5898 = vmatprep.mubr.msk.bf16.mxu1 %vm918_vm4, %v2820_v46  ;;  %v3019_v45 = vpop.permute.xlu1 %3018 }
 0x889   : > { %5899 = vmatmul.mubr.msk.bf16.gmra.mrb[36].mxu1 %vm918_vm4, %v2821_v31  ;;  %6129 = vmatprep.subr.msk.bf16.mxu0 %vm1839_vm6, %v3019_v45  ;;  %v3042_v53 = vsel %vm1839_vm6, %v3019_v45, 0 }
 0x88a   : > { %5925 = vmatpush3.bf16.xpose.msra.mxu0 %v3042_v53 }
 0x88b   : > { %v8489_v13 = vpop.eup %6435 }
 0x88c   : > { %v2755_v42 = vsel %vm918_vm4, %v8489_v13, 0.0 }
 0x88d   : > { %2756 = vadd.xlane.f32.xlu1 %v2755_v42 }
 0x88f   : > { %v8493_v0 = vpop.eup %6437 }
 0x890   : > { %v2749_v24 = vsel %vm918_vm4, %v8493_v0, 0.0  ;;  %v8503_v38 = vpop.eup %6439 }
 0x891   : > { %2750 = vadd.xlane.f32.xlu1 %v2749_v24  ;;  %v2764_v30 = vsel %vm918_vm4, %v8503_v38, 0.0  ;;  %v8507_v20 = vpop.eup %6441 }
 0x892   : > { %v2758_v25 = vsel %vm918_vm4, %v8507_v20, 0.0 }
 0x89a   : > { %3004 = vrot.lane.b32.xlu0 %v7953_v29, %s6689_s18 }
 0x8a2   : > { %3006 = vrot.lane.b32.xlu1 %v7949_v3, %s6689_s18 }
 0x8b9   : > { %v2673_v9 = vpop.xlane.xlu1 %2672  ;;  %2765 = vadd.xlane.f32.xlu0 %v2764_v30 }
 0x8ba   : > { %v2689_v62 = vsub.f32 %v8370_v33, %v2673_v9 }
 0x8bc   : > { %v2720_v52 = vmul.f32 1.442695, %v2689_v62 }
 0x8bd   : > { %v2667_v6 = vpop.xlane.xlu1 %2666  ;;  %2759 = vadd.xlane.f32.xlu0 %v2758_v25 }
 0x8be   : > { %6443 = vpow2.f32 %v2720_v52  ;;  %v2687_v60 = vsub.f32 %v8372_v61, %v2667_v6 }
 0x8c0   : > { %v2716_v4 = vmul.f32 1.442695, %v2687_v60 }
 0x8c1   : > { %v3120_v53 = vpop.permute.xlu1 %3119 }
 0x8c2   : > { %6445 = vpow2.f32 %v2716_v4 }
 0x8c8   : > { %v8513_v17 = vpop.eup %6443 }
 0x8c9   : > { %v2767_v22 = vsel %vm918_vm4, %v8513_v17, 0.0 }
 0x8ca   : > { %2768 = vadd.xlane.f32.xlu0 %v2767_v22 }
 0x8cc   : > { %v8517_v40 = vpop.eup %6445 }
 0x8cd   : > { %v2761_v33 = vsel %vm918_vm4, %v8517_v40, 0.0 }
 0x8ce   : > { %2762 = vadd.xlane.f32.xlu1 %v2761_v33  ;;  %v3138_v33 = vsel %vm1839_vm6, %v8478_v51, 0 }
 0x8df   : > { %3123 = vrot.lane.b32.xlu1 %v7997_v54, %s6688_s19 }
 0x8e0   : > { %3121 = vrot.lane.b32.xlu0 %v7999_v48, %s6688_s19 }
 0x8e3   : > { %3111 = vrot.lane.b32.xlu1 %v7983_v18, %s6689_s18 }
 0x8e4   : > { %3109 = vrot.lane.b32.xlu0 %v7985_v19, %s6689_s18 }
 0x8e7   : > { %3010 = vrot.lane.b32.xlu1 %v7967_v23, %s6689_s18 }
 0x8e8   : > { %3008 = vrot.lane.b32.xlu0 %v7969_v36, %s6689_s18 }
 0x8eb   : > { %3115 = vrot.lane.b32.xlu1 %v8001_v58, %s6689_s18 }
 0x8ec   : > { %3113 = vrot.lane.b32.xlu0 %v8003_v16, %s6689_s18 }
 0x902   : > { %v8537_v61 = vpop.f32.mrb[32].mxu1 }
 0x903   : > { %v8539_v14 = vpop.f32.mrb[33].mxu1 }
 0x904   : > { %v8541_v49 = vpop.f32.mrb[34].mxu1 }
 0x905   : > { %v8545_v46 = vpop.f32.mrb[35].mxu1 }
 0x90d   : > { %v2754_v24 = vpop.xlane.xlu1 %2753 }
 0x911   : > { %v2748_v45 = vpop.xlane.xlu0 %2747 }
 0x915   : > { %v3005_v42 = vpop.permute.xlu0 %3004 }
 0x916   : > { %5926 = vmatprep.mubr.msk.bf16.mxu0 %vm1839_vm6, %v3005_v42 }
 0x91a   : > { %v2757_v8 = vpop.xlane.xlu1 %2756 }
 0x91b   : > { %6447 = vrcp.f32 %v2757_v8 }
 0x91c   : > { %6449 = vrcp.f32 %v2748_v45 }
 0x91d   : > { %6451 = vrcp.f32 %v2754_v24 }
 0x91e   : > { %v2751_v63 = vpop.xlane.xlu1 %2750 }
 0x91f   : > { %6453 = vrcp.f32 %v2751_v63 }
 0x922   : > { %v3007_v26 = vpop.permute.xlu1 %3006 }
 0x923   : > { %5927 = vmatmul.mubr.msk.bf16.vlgmr.msra.gmra.mrb[32].mxu0 %vm1839_vm6, %v3007_v26 }
 0x925   : > { %v6448_v15 = vpop.eup %6447 }
 0x926   : > { %v6450_v30 = vpop.eup %6449  ;;  %v2813_v52 = vmul.f32 %v6448_v15, %v8489_v13  ;;  %v3141_v13 = vsel %vm1839_vm6, %v3120_v53, 0 }
 0x927   : > { %v6452_v9 = vpop.eup %6451  ;;  %v2810_v25 = vmul.f32 %v6450_v30, %v8473_v11 }
 0x928   : > { %v2812_v60 = vmul.f32 %v6452_v9, %v8466_v32 }
 0x929   : > { %v6454_v62 = vpop.eup %6453 }
 0x92a   : > { %v2811_v6 = vmul.f32 %v6454_v62, %v8493_v0  ;;  %v2823_v22 = vpack.c.bf16 %v2813_v52, %v2812_v60 }
 0x92c   : > { %v2822_v4 = vpack.c.bf16 %v2811_v6, %v2810_v25 }
 0x92e   : > { %5910 = vmatprep.mubr.msk.bf16.mxu1 %vm918_vm4, %v2822_v4 }
 0x92f   : > { %5911 = vmatmul.mubr.msk.bf16.vlgmr.msra.gmra.mrb[40].mxu1 %vm918_vm4, %v2823_v22 }
 0x930   : > { %5935 = vmatpush3.bf16.xpose.msra.mxu1 %v3138_v33 }
 0x931   : > { %6131 = vmatprep.subr.msk.bf16.mxu1 %vm1839_vm6, %v3120_v53 }
 0x938   : > { %5937 = vmatpush3.bf16.xpose.msra.mxu1 %v3141_v13 }
 0x946   : > { %v2766_v11 = vpop.xlane.xlu0 %2765 }
 0x94a   : > { %v2760_v45 = vpop.xlane.xlu0 %2759 }
 0x957   : > { %v2769_v0 = vpop.xlane.xlu0 %2768 }
 0x958   : > { %6455 = vrcp.f32 %v2769_v0 }
 0x959   : > { %6457 = vrcp.f32 %v2760_v45 }
 0x95a   : > { %6459 = vrcp.f32 %v2766_v11 }
 0x95b   : > { %v3122_v32 = vpop.permute.xlu0 %3121  ;;  %v2763_v42 = vpop.xlane.xlu1 %2762 }
 0x95c   : > { %6461 = vrcp.f32 %v2763_v42  ;;  %v8561_v24 = vpop.f32.mrb[36].mxu1  ;;  %6132 = vmatprep.subr.msk.bf16.mxu1 %vm1839_vm6, %v3122_v32  ;;  %v3144_v51 = vsel %vm1839_vm6, %v3122_v32, 0 }
 0x95d   : > { %v8565_v8 = vpop.f32.mrb[37].mxu1  ;;  %5939 = vmatpush3.bf16.xpose.msra.mxu1 %v3144_v51 }
 0x95e   : > { %v8567_v53 = vpop.f32.mrb[38].mxu1 }
 0x95f   : > { %v8571_v26 = vpop.f32.mrb[39].mxu1  ;;  %v3110_v15 = vpop.permute.xlu0 %3109 }
 0x960   : > { %v3124_v9 = vpop.permute.xlu1 %3123 }
 0x961   : > { %6133 = vmatprep.subr.msk.bf16.mxu1 %vm1839_vm6, %v3124_v9  ;;  %v3147_v60 = vsel %vm1839_vm6, %v3124_v9, 0 }
 0x962   : > { %v6456_v62 = vpop.eup %6455 }
 0x963   : > { %v3009_v52 = vpop.permute.xlu0 %3008  ;;  %v6458_v25 = vpop.eup %6457  ;;  %v2817_v33 = vmul.f32 %v6456_v62, %v8513_v17 }
 0x964   : > { %v3112_v6 = vpop.permute.xlu1 %3111  ;;  %5930 = vmatprep.mubr.msk.bf16.mxu0 %vm1839_vm6, %v3009_v52  ;;  %v6460_v4 = vpop.eup %6459  ;;  %v2814_v13 = vmul.f32 %v6458_v25, %v8507_v20 }
 0x965   : > { %5941 = vmatpush3.bf16.xpose.msra.mxu1 %v3147_v60  ;;  %v2816_v0 = vmul.f32 %v6460_v4, %v8503_v38 }
 0x966   : > { %v6462_v22 = vpop.eup %6461 }
 0x967   : > { %v2815_v11 = vmul.f32 %v6462_v22, %v8517_v40  ;;  %v2825_v42 = vpack.c.bf16 %v2817_v33, %v2816_v0  ;;  %v3114_v51 = vpop.permute.xlu0 %3113 }
 0x968   : > { %v3011_v45 = vpop.permute.xlu1 %3010 }
 0x969   : > { %5931 = vmatmul.mubr.msk.bf16.gmra.mrb[36].mxu0 %vm1839_vm6, %v3011_v45  ;;  %v2824_v32 = vpack.c.bf16 %v2815_v11, %v2814_v13 }
 0x96b   : > { %5914 = vmatprep.mubr.msk.bf16.mxu1 %vm918_vm4, %v2824_v32 }
 0x96c   : > { %5915 = vmatmul.mubr.msk.bf16.gmra.mrb[44].mxu1 %vm918_vm4, %v2825_v42  ;;  %v3116_v20 = vpop.permute.xlu1 %3115 }
 0x96d   : > { %5942 = vmatprep.mubr.msk.bf16.mxu1 %vm1839_vm6, %v3110_v15 }
 0x974   : > { %5943 = vmatmul.mubr.msk.bf16.vlgmr.msra.gmra.mrb[48].mxu1 %vm1839_vm6, %v3112_v6 }
 0x975   : > { %5946 = vmatprep.mubr.msk.bf16.mxu1 %vm1839_vm6, %v3114_v51 }
 0x97c   : > { %5947 = vmatmul.mubr.msk.bf16.gmra.mrb[52].mxu1 %vm1839_vm6, %v3116_v20 }
 0x9f6   : > { %v5928_v17 = vpop.f32.mrb[32].mxu0 }
 0x9f7   : > { %v3078_v38 = vpop.f32.mrb[33].mxu0  ;;  %v3220_v15 = vsel %vm918_vm4, %v5928_v17, -inf }
 0x9f8   : > { %v5929_v40 = vpop.f32.mrb[34].mxu0  ;;  %v3214_v9 = vsel %vm918_vm4, %v3078_v38, -inf }
 0x9f9   : > { %3215 = vmax.xlane.f32.xlu0 %v3214_v9  ;;  %v3081_v62 = vpop.f32.mrb[35].mxu0  ;;  %v3223_v25 = vsel %vm918_vm4, %v5929_v40, -inf }
 0x9fa   : > { %v3217_v52 = vsel %vm918_vm4, %v3081_v62, -inf }
 0x9fb   : > { %3218 = vmax.xlane.f32.xlu1 %v3217_v52 }
 0x9fd   : > { %3221 = vmax.xlane.f32.xlu0 %v3220_v15 }
 0xa01   : > { %3224 = vmax.xlane.f32.xlu0 %v3223_v25 }
 0xa02   : > { %v8593_v6 = vpop.f32.mrb[40].mxu1 }
 0xa03   : > { %v8595_v60 = vpop.f32.mrb[41].mxu1 }
 0xa04   : > { %v8597_v4 = vpop.f32.mrb[42].mxu1 }
 0xa05   : > { %v8601_v33 = vpop.f32.mrb[43].mxu1 }
 0xa3c   : > { %v8605_v11 = vpop.f32.mrb[36].mxu0 }
 0xa3d   : > { %v3094_v45 = vpop.f32.mrb[37].mxu0  ;;  %v3232_v13 = vsel %vm918_vm4, %v8605_v11, -inf }
 0xa3e   : > { %v8607_v0 = vpop.f32.mrb[38].mxu0  ;;  %v3226_v32 = vsel %vm918_vm4, %v3094_v45, -inf }
 0xa3f   : > { %3227 = vmax.xlane.f32.xlu0 %v3226_v32  ;;  %v3097_v42 = vpop.f32.mrb[39].mxu0  ;;  %v8610_v51 = vpop.f32.mrb[44].mxu1  ;;  %v3235_v22 = vsel %vm918_vm4, %v8607_v0, -inf }
 0xa40   : > { %v8612_v20 = vpop.f32.mrb[45].mxu1  ;;  %v3229_v9 = vsel %vm918_vm4, %v3097_v42, -inf }
 0xa41   : > { %9749 = vst [vmem:[#allocation23_spill] sm:$0xff] %v8612_v20  ;;  %3230 = vmax.xlane.f32.xlu1 %v3229_v9  ;;  %v8615_v52 = vpop.f32.mrb[46].mxu1 }
 0xa42   : > { %v8619_v25 = vpop.f32.mrb[47].mxu1 }
 0xa43   : > { %9750 = vst [vmem:[#allocation24_spill] sm:$0xff] %v8619_v25  ;;  %3233 = vmax.xlane.f32.xlu0 %v3232_v13 }
 0xa45   : > { %3236 = vmax.xlane.f32.xlu1 %v3235_v22 }
 0xa47   : > { %v8627_v30 = vpop.f32.mrb[48].mxu1 }
 0xa48   : > { %v8629_v9 = vpop.f32.mrb[49].mxu1 }
 0xa49   : > { %v8631_v63 = vpop.f32.mrb[50].mxu1 }
 0xa4a   : > { %v8633_v15 = vpop.f32.mrb[51].mxu1 }
 0xa4f   : > { %v8635_v31 = vpop.f32.mrb[52].mxu1 }
 0xa50   : > { %v8637_v21 = vpop.f32.mrb[53].mxu1 }
 0xa51   : > { %v8639_v34 = vpop.f32.mrb[54].mxu1 }
 0xa52   : > { %v8641_v32 = vpop.f32.mrb[55].mxu1 }
 0xa86   : > { %v3216_v13 = vpop.xlane.xlu0 %3215 }
 0xa87   : > { %v3262_v56 = vsub.f32 %v3078_v38, %v3216_v13 }
 0xa88   : > { %v3219_v28 = vpop.xlane.xlu1 %3218 }
 0xa89   : > { %v3278_v22 = vmul.f32 1.442695, %v3262_v56  ;;  %v3263_v41 = vsub.f32 %v3081_v62, %v3219_v28 }
 0xa8a   : > { %v3222_v1 = vpop.xlane.xlu0 %3221 }
 0xa8b   : > { %6463 = vpow2.f32 %v3278_v22  ;;  %v3280_v55 = vmul.f32 1.442695, %v3263_v41  ;;  %v3264_v50 = vsub.f32 %v5928_v17, %v3222_v1 }
 0xa8d   : > { %6465 = vpow2.f32 %v3280_v55  ;;  %v3282_v59 = vmul.f32 1.442695, %v3264_v50 }
 0xa8e   : > { %v3225_v5 = vpop.xlane.xlu0 %3224 }
 0xa8f   : > { %6467 = vpow2.f32 %v3282_v59  ;;  %v3265_v57 = vsub.f32 %v5929_v40, %v3225_v5 }
 0xa91   : > { %v3284_v35 = vmul.f32 1.442695, %v3265_v57 }
 0xa93   : > { %6469 = vpow2.f32 %v3284_v35 }
 0xa95   : > { %v8643_v2 = vpop.eup %6463 }
 0xa96   : > { %v3310_v27 = vsel %vm918_vm4, %v8643_v2, 0.0 }
 0xa97   : > { %v8647_v38 = vpop.eup %6465  ;;  %3311 = vadd.xlane.f32.xlu0 %v3310_v27 }
 0xa98   : > { %v3313_v56 = vsel %vm918_vm4, %v8647_v38, 0.0 }
 0xa99   : > { %v8651_v41 = vpop.eup %6467  ;;  %3314 = vadd.xlane.f32.xlu1 %v3313_v56 }
 0xa9a   : > { %v3316_v59 = vsel %vm918_vm4, %v8651_v41, 0.0 }
 0xa9b   : > { %3317 = vadd.xlane.f32.xlu0 %v3316_v59 }
 0xa9d   : > { %v8655_v57 = vpop.eup %6469 }
 0xa9e   : > { %v3319_v35 = vsel %vm918_vm4, %v8655_v57, 0.0 }
 0xa9f   : > { %3320 = vadd.xlane.f32.xlu1 %v3319_v35 }
 0xab0   : > { %3416 = vrot.lane.b32.xlu1 %v7945_v7, %s6690_s20 }
 0xab1   : > { %3414 = vrot.lane.b32.xlu0 %v7947_v47, %s6690_s20 }
 0xab4   : > { %3420 = vrot.lane.b32.xlu1 %v7963_v37, %s6690_s20 }
 0xab5   : > { %3418 = vrot.lane.b32.xlu0 %v7965_v12, %s6690_s20 }
 0xacc   : > { %v3228_v27 = vpop.xlane.xlu0 %3227 }
 0xacd   : > { %v3266_v5 = vsub.f32 %v3094_v45, %v3228_v27 }
 0xace   : > { %v3231_v55 = vpop.xlane.xlu1 %3230 }
 0xacf   : > { %v3286_v50 = vmul.f32 1.442695, %v3266_v5  ;;  %v3267_v1 = vsub.f32 %v3097_v42, %v3231_v55  ;;  %v3244_v55 = vsel %vm918_vm4, %v8627_v30, -inf }
 0xad0   : > { %v3234_v28 = vpop.xlane.xlu0 %3233 }
 0xad1   : > { %6471 = vpow2.f32 %v3286_v50  ;;  %v3288_v17 = vmul.f32 1.442695, %v3267_v1  ;;  %v3268_v40 = vsub.f32 %v8605_v11, %v3234_v28  ;;  %v3238_v1 = vsel %vm918_vm4, %v8629_v9, -inf }
 0xad2   : > { %v3237_v62 = vpop.xlane.xlu1 %3236 }
 0xad3   : > { %6473 = vpow2.f32 %v3288_v17  ;;  %v3290_v13 = vmul.f32 1.442695, %v3268_v40  ;;  %v3269_v22 = vsub.f32 %v8607_v0, %v3237_v62  ;;  %v3256_v40 = vsel %vm918_vm4, %v8635_v31, -inf }
 0xad4   : > { %v3247_v62 = vsel %vm918_vm4, %v8631_v63, -inf }
 0xad5   : > { %6475 = vpow2.f32 %v3290_v13  ;;  %v3292_v56 = vmul.f32 1.442695, %v3269_v22 }
 0xad7   : > { %6477 = vpow2.f32 %v3292_v56  ;;  %v3250_v56 = vsel %vm918_vm4, %v8637_v21, -inf }
 0xadb   : > { %v8669_v59 = vpop.eup %6471 }
 0xadc   : > { %v3322_v45 = vsel %vm918_vm4, %v8669_v59, 0.0 }
 0xadd   : > { %v8673_v35 = vpop.eup %6473  ;;  %3323 = vadd.xlane.f32.xlu0 %v3322_v45 }
 0xade   : > { %v3325_v42 = vsel %vm918_vm4, %v8673_v35, 0.0 }
 0xadf   : > { %v8677_v11 = vpop.eup %6475  ;;  %3326 = vadd.xlane.f32.xlu1 %v3325_v42  ;;  %v3241_v42 = vsel %vm918_vm4, %v8633_v15, -inf }
 0xae0   : > { %v3328_v0 = vsel %vm918_vm4, %v8677_v11, 0.0 }
 0xae1   : > { %v8681_v27 = vpop.eup %6477  ;;  %3329 = vadd.xlane.f32.xlu0 %v3328_v0 }
 0xae2   : > { %v3331_v5 = vsel %vm918_vm4, %v8681_v27, 0.0 }
 0xae5   : > { %3332 = vadd.xlane.f32.xlu0 %v3331_v5 }
 0xaf0   : > { %3505 = vrot.lane.b32.xlu1 %v7979_v39, %s6690_s20 }
 0xaf4   : > { %3600 = vrot.lane.b32.xlu1 %v7947_v47, %s6691_s21 }
 0xaf8   : > { %3507 = vrot.lane.b32.xlu1 %v7999_v48, %s6690_s20 }
 0xafb   : > { %3503 = vrot.lane.b32.xlu0 %v7981_v43, %s6690_s20 }
 0xafc   : > { %3602 = vrot.lane.b32.xlu1 %v7945_v7, %s6691_s21 }
 0xaff   : > { %3509 = vrot.lane.b32.xlu0 %v7997_v54, %s6690_s20 }
 0xb00   : > { %3705 = vrot.lane.b32.xlu1 %v7981_v43, %s6691_s21 }
 0xb03   : > { %3604 = vrot.lane.b32.xlu0 %v7965_v12, %s6691_s21 }
 0xb04   : > { %3606 = vrot.lane.b32.xlu1 %v7963_v37, %s6691_s21 }
 0xb08   : > { %3707 = vrot.lane.b32.xlu1 %v7979_v39, %s6691_s21 }
 0xb22   : > { %3245 = vmax.xlane.f32.xlu0 %v3244_v55 }
 0xb24   : > { %v3312_v50 = vpop.xlane.xlu0 %3311 }
 0xb25   : > { %6479 = vrcp.f32 %v3312_v50 }
 0xb26   : > { %3239 = vmax.xlane.f32.xlu0 %v3238_v1  ;;  %v3315_v28 = vpop.xlane.xlu1 %3314 }
 0xb27   : > { %6481 = vrcp.f32 %v3315_v28  ;;  %v3259_v28 = vsel %vm918_vm4, %v8639_v34, -inf }
 0xb28   : > { %v3318_v17 = vpop.xlane.xlu0 %3317 }
 0xb29   : > { %6483 = vrcp.f32 %v3318_v17 }
 0xb2a   : > { %3257 = vmax.xlane.f32.xlu0 %v3256_v40 }
 0xb2c   : > { %3248 = vmax.xlane.f32.xlu1 %v3247_v62  ;;  %v3415_v13 = vpop.permute.xlu0 %3414  ;;  %v3321_v22 = vpop.xlane.xlu1 %3320 }
 0xb2d   : > { %6485 = vrcp.f32 %v3321_v22  ;;  %5950 = vmatprep.subr.bf16.mxu0 %v3415_v13  ;;  %v3253_v22 = vsel %vm918_vm4, %v8641_v32, -inf }
 0xb2e   : > { %3251 = vmax.xlane.f32.xlu0 %v3250_v56  ;;  %5951 = vmatpush3.bf16.msra.mxu0 %v3415_v13 }
 0xb2f   : > { %v6480_v45 = vpop.eup %6479 }
 0xb30   : > { %3242 = vmax.xlane.f32.xlu1 %v3241_v42  ;;  %v3417_v0 = vpop.permute.xlu1 %3416  ;;  %v3419_v55 = vpop.permute.xlu0 %3418  ;;  %v3390_v50 = vmul.f32 %v6480_v45, %v8643_v2 }
 0xb31   : > { %v6482_v5 = vpop.eup %6481  ;;  %5952 = vmatprep.subr.bf16.mxu0 %v3417_v0 }
 0xb32   : > { %5953 = vmatpush3.bf16.msra.mxu0 %v3417_v0  ;;  %v3391_v1 = vmul.f32 %v6482_v5, %v8647_v38 }
 0xb33   : > { %5954 = vmatprep.subr.bf16.mxu0 %v3419_v55  ;;  %v6484_v40 = vpop.eup %6483 }
 0xb34   : > { %3260 = vmax.xlane.f32.xlu1 %v3259_v28  ;;  %v3406_v17 = vpack.c.bf16 %v3391_v1, %v3390_v50  ;;  %v3421_v62 = vpop.permute.xlu1 %3420  ;;  %v3392_v2 = vmul.f32 %v6484_v40, %v8651_v41 }
 0xb36   : > { %5955 = vmatpush3.bf16.msra.mxu0 %v3419_v55  ;;  %5958 = vmatprep.mubr.msk.bf16.mxu0 %vm918_vm4, %v3406_v17 }
 0xb37   : > { %v6486_v13 = vpop.eup %6485  ;;  %5956 = vmatprep.subr.bf16.mxu0 %v3421_v62 }
 0xb38   : > { %v3393_v38 = vmul.f32 %v6486_v13, %v8655_v57  ;;  %3254 = vmax.xlane.f32.xlu1 %v3253_v22 }
 0xb3a   : > { %v3407_v56 = vpack.c.bf16 %v3393_v38, %v3392_v2  ;;  %5957 = vmatpush3.bf16.msra.mxu0 %v3421_v62 }
 0xb3d   : > { %5959 = vmatmul.mubr.msk.bf16.vlgmr.msra.gmra.mrb[40].mxu0 %vm918_vm4, %v3407_v56 }
 0xb44   : > { %3592 = vrot.lane.b32.xlu0 %v7953_v29, %s6692_s23 }
 0xb49   : > { %3594 = vrot.lane.b32.xlu1 %v7949_v3, %s6692_s23 }
 0xb6a   : > { %v3324_v45 = vpop.xlane.xlu0 %3323 }
 0xb6b   : > { %6487 = vrcp.f32 %v3324_v45 }
 0xb6c   : > { %v3327_v42 = vpop.xlane.xlu1 %3326 }
 0xb6d   : > { %6489 = vrcp.f32 %v3327_v42 }
 0xb6e   : > { %v3330_v0 = vpop.xlane.xlu0 %3329 }
 0xb6f   : > { %6491 = vrcp.f32 %v3330_v0 }
 0xb70   : > { %v3506_v41 = vpop.permute.xlu1 %3505 }
 0xb72   : > { %v3333_v57 = vpop.xlane.xlu0 %3332 }
 0xb73   : > { %6493 = vrcp.f32 %v3333_v57 }
 0xb74   : > { %v3601_v5 = vpop.permute.xlu1 %3600 }
 0xb75   : > { %v6488_v55 = vpop.eup %6487  ;;  %6134 = vmatprep.subr.msk.bf16.mxu0 %vm1839_vm6, %v3601_v5  ;;  %v3621_v50 = vsel %vm1839_vm6, %v3601_v5, 0 }
 0xb76   : > { %v3504_v1 = vpop.permute.xlu0 %3503  ;;  %5983 = vmatpush3.bf16.xpose.msra.mxu0 %v3621_v50  ;;  %v3394_v28 = vmul.f32 %v6488_v55, %v8669_v59 }
 0xb77   : > { %v6490_v29 = vpop.eup %6489  ;;  %5966 = vmatprep.subr.bf16.mxu1 %v3504_v1 }
 0xb78   : > { %5967 = vmatpush3.bf16.msra.mxu1 %v3504_v1  ;;  %v3508_v3 = vpop.permute.xlu1 %3507  ;;  %v3395_v17 = vmul.f32 %v6490_v29, %v8673_v35 }
 0xb79   : > { %5968 = vmatprep.subr.bf16.mxu1 %v3506_v41  ;;  %v6492_v13 = vpop.eup %6491 }
 0xb7a   : > { %v3510_v40 = vpop.permute.xlu0 %3509  ;;  %v3408_v62 = vpack.c.bf16 %v3395_v17, %v3394_v28  ;;  %v3396_v59 = vmul.f32 %v6492_v13, %v8677_v11 }
 0xb7c   : > { %5962 = vmatprep.mubr.msk.bf16.mxu0 %vm918_vm4, %v3408_v62  ;;  %5969 = vmatpush3.bf16.msra.mxu1 %v3506_v41  ;;  %v3603_v22 = vpop.permute.xlu1 %3602 }
 0xb7d   : > { %v6494_v2 = vpop.eup %6493  ;;  %5970 = vmatprep.subr.bf16.mxu1 %v3508_v3  ;;  %6135 = vmatprep.subr.msk.bf16.mxu0 %vm1839_vm6, %v3603_v22  ;;  %v3624_v38 = vsel %vm1839_vm6, %v3603_v22, 0 }
 0xb7e   : > { %v3605_v56 = vpop.permute.xlu0 %3604  ;;  %5985 = vmatpush3.bf16.xpose.msra.mxu0 %v3624_v38  ;;  %v3397_v35 = vmul.f32 %v6494_v2, %v8681_v27 }
 0xb7f   : > { %6136 = vmatprep.subr.msk.bf16.mxu0 %vm1839_vm6, %v3605_v56  ;;  %v3627_v0 = vsel %vm1839_vm6, %v3605_v56, 0 }
 0xb80   : > { %5971 = vmatpush3.bf16.msra.mxu1 %v3508_v3  ;;  %v8741_v45 = vpop.permute.xlu1 %3705  ;;  %v3409_v42 = vpack.c.bf16 %v3397_v35, %v3396_v59 }
 0xb81   : > { %5972 = vmatprep.subr.bf16.mxu1 %v3510_v40 }
 0xb82   : > { %5963 = vmatmul.mubr.msk.bf16.gmra.mrb[44].mxu0 %vm918_vm4, %v3409_v42 }
 0xb84   : > { %5973 = vmatpush3.bf16.msra.mxu1 %v3510_v40  ;;  %v3607_v41 = vpop.permute.xlu1 %3606 }
 0xb85   : > { %6138 = vmatprep.subr.msk.bf16.mxu1 %vm1839_vm6, %v8741_v45  ;;  %v3630_v11 = vsel %vm1839_vm6, %v3607_v41, 0 }
 0xb86   : > { %5987 = vmatpush3.bf16.xpose.msra.mxu0 %v3627_v0 }
 0xb87   : > { %6137 = vmatprep.subr.msk.bf16.mxu0 %vm1839_vm6, %v3607_v41 }
 0xb88   : > { %v8751_v1 = vpop.permute.xlu1 %3707 }
 0xb8e   : > { %5989 = vmatpush3.bf16.xpose.msra.mxu0 %v3630_v11 }
 0xbaf   : > { %v3246_v27 = vpop.xlane.xlu0 %3245 }
 0xbb0   : > { %v3272_v57 = vsub.f32 %v8627_v30, %v3246_v27 }
 0xbb2   : > { %v3298_v5 = vmul.f32 1.442695, %v3272_v57 }
 0xbb3   : > { %v3240_v55 = vpop.xlane.xlu0 %3239 }
 0xbb4   : > { %6495 = vpow2.f32 %v3298_v5  ;;  %v3270_v50 = vsub.f32 %v8629_v9, %v3240_v55 }
 0xbb6   : > { %v3294_v29 = vmul.f32 1.442695, %v3270_v50 }
 0xbb7   : > { %v3258_v3 = vpop.xlane.xlu0 %3257 }
 0xbb8   : > { %6497 = vpow2.f32 %v3294_v29  ;;  %v3276_v57 = vsub.f32 %v8635_v31, %v3258_v3 }
 0xbb9   : > { %v3249_v28 = vpop.xlane.xlu1 %3248 }
 0xbba   : > { %v3273_v17 = vsub.f32 %v8631_v63, %v3249_v28  ;;  %v3306_v55 = vmul.f32 1.442695, %v3276_v57 }
 0xbbb   : > { %v3252_v40 = vpop.xlane.xlu0 %3251 }
 0xbbc   : > { %v3300_v62 = vmul.f32 1.442695, %v3273_v17  ;;  %v3274_v50 = vsub.f32 %v8637_v21, %v3252_v40 }
 0xbbd   : > { %v3243_v13 = vpop.xlane.xlu1 %3242 }
 0xbbe   : > { %v8754_v22 = vpop.eup %6495  ;;  %6499 = vpow2.f32 %v3300_v62  ;;  %v3271_v30 = vsub.f32 %v8633_v15, %v3243_v13  ;;  %v3302_v29 = vmul.f32 1.442695, %v3274_v50 }
 0xbbf   : > { %v3593_v2 = vpop.permute.xlu0 %3592  ;;  %v3340_v9 = vsel %vm918_vm4, %v8754_v22, 0.0 }
 0xbc0   : > { %v3296_v38 = vmul.f32 1.442695, %v3271_v30  ;;  %3341 = vadd.xlane.f32.xlu1 %v3340_v9  ;;  %5990 = vmatprep.mubr.msk.bf16.mxu0 %vm1839_vm6, %v3593_v2 }
 0xbc1   : > { %v3261_v56 = vpop.xlane.xlu1 %3260 }
 0xbc2   : > { %v8760_v59 = vpop.eup %6497  ;;  %6501 = vpow2.f32 %v3296_v38  ;;  %v3277_v28 = vsub.f32 %v8639_v34, %v3261_v56 }
 0xbc3   : > { %v3334_v63 = vsel %vm918_vm4, %v8760_v59, 0.0 }
 0xbc4   : > { %3335 = vadd.xlane.f32.xlu1 %v3334_v63  ;;  %v3308_v17 = vmul.f32 1.442695, %v3277_v28 }
 0xbc5   : > { %v3255_v35 = vpop.xlane.xlu1 %3254 }
 0xbc6   : > { %v3275_v27 = vsub.f32 %v8641_v32, %v3255_v35 }
 0xbc8   : > { %v8764_v42 = vpop.eup %6499  ;;  %v3304_v5 = vmul.f32 1.442695, %v3275_v27 }
 0xbc9   : > { %v3595_v15 = vpop.permute.xlu1 %3594  ;;  %v3343_v0 = vsel %vm918_vm4, %v8764_v42, 0.0 }
 0xbca   : > { %3344 = vadd.xlane.f32.xlu1 %v3343_v0  ;;  %5991 = vmatmul.mubr.msk.bf16.vlgmr.msra.gmra.mrb[48].mxu0 %vm1839_vm6, %v3595_v15  ;;  %6503 = vpow2.f32 %v3304_v5 }
 0xbcb   : > { %6505 = vpow2.f32 %v3306_v55 }
 0xbcc   : > { %v8769_v41 = vpop.eup %6501  ;;  %6507 = vpow2.f32 %v3302_v29 }
 0xbcd   : > { %v3337_v11 = vsel %vm918_vm4, %v8769_v41, 0.0  ;;  %6509 = vpow2.f32 %v3308_v17 }
 0xbce   : > { %3338 = vadd.xlane.f32.xlu0 %v3337_v11 }
 0xbd4   : > { %v8781_v62 = vpop.eup %6503 }
 0xbd5   : > { %v8785_v32 = vpop.eup %6505 }
 0xbd6   : > { %v3352_v31 = vsel %vm918_vm4, %v8785_v32, 0.0  ;;  %v8789_v21 = vpop.eup %6507 }
 0xbd7   : > { %v3346_v34 = vsel %vm918_vm4, %v8789_v21, 0.0  ;;  %v8793_v3 = vpop.eup %6509 }
 0xbd8   : > { %v3355_v40 = vsel %vm918_vm4, %v8793_v3, 0.0 }
 0xbdb   : > { %3596 = vrot.lane.b32.xlu1 %v7969_v36, %s6692_s23  ;;  %v3349_v36 = vsel %vm918_vm4, %v8781_v62, 0.0 }
 0xbe4   : > { %3709 = vrot.lane.b32.xlu0 %v7999_v48, %s6691_s21 }
 0xbff   : > { %3350 = vadd.xlane.f32.xlu1 %v3349_v36 }
 0xc03   : > { %3353 = vadd.xlane.f32.xlu0 %v3352_v31 }
 0xc07   : > { %3347 = vadd.xlane.f32.xlu0 %v3346_v34 }
 0xc0b   : > { %3356 = vadd.xlane.f32.xlu0 %v3355_v40  ;;  %v3726_v40 = vsel %vm1839_vm6, %v8741_v45, 0 }
 0xc10   : > { %3711 = vrot.lane.b32.xlu1 %v7997_v54, %s6691_s21  ;;  %v8799_v13 = vpop.f32.mrb[40].mxu0 }
 0xc11   : > { %v8801_v30 = vpop.f32.mrb[41].mxu0 }
 0xc12   : > { %v8803_v2 = vpop.f32.mrb[42].mxu0 }
 0xc13   : > { %v8807_v38 = vpop.f32.mrb[43].mxu0 }
 0xc14   : > { %3699 = vrot.lane.b32.xlu1 %v7983_v18, %s6692_s23 }
 0xc18   : > { %3703 = vrot.lane.b32.xlu1 %v8001_v58, %s6692_s23 }
 0xc21   : > { %3598 = vrot.lane.b32.xlu0 %v7967_v23, %s6692_s23 }
 0xc25   : > { %3697 = vrot.lane.b32.xlu0 %v7985_v19, %s6692_s23 }
 0xc29   : > { %3701 = vrot.lane.b32.xlu0 %v8003_v16, %s6692_s23 }
 0xc4d   : > { %v3342_v63 = vpop.xlane.xlu1 %3341 }
 0xc51   : > { %v3336_v35 = vpop.xlane.xlu1 %3335 }
 0xc55   : > { %v8821_v15 = vpop.f32.mrb[44].mxu0 }
 0xc56   : > { %v8823_v0 = vpop.f32.mrb[45].mxu0 }
 0xc57   : > { %v8825_v11 = vpop.f32.mrb[46].mxu0  ;;  %v3345_v18 = vpop.xlane.xlu1 %3344 }
 0xc58   : > { %v8829_v27 = vpop.f32.mrb[47].mxu0  ;;  %6511 = vrcp.f32 %v3345_v18 }
 0xc59   : > { %6513 = vrcp.f32 %v3336_v35 }
 0xc5a   : > { %6515 = vrcp.f32 %v3342_v63 }
 0xc5b   : > { %v3339_v19 = vpop.xlane.xlu0 %3338  ;;  %v3597_v16 = vpop.permute.xlu1 %3596 }
 0xc5c   : > { %6517 = vrcp.f32 %v3339_v19  ;;  %5994 = vmatprep.mubr.msk.bf16.mxu0 %vm1839_vm6, %v3597_v16 }
 0xc62   : > { %v6512_v57 = vpop.eup %6511 }
 0xc63   : > { %v6514_v5 = vpop.eup %6513  ;;  %v3401_v29 = vmul.f32 %v6512_v57, %v8764_v42  ;;  %v3710_v42 = vpop.permute.xlu0 %3709 }
 0xc64   : > { %v6516_v55 = vpop.eup %6515  ;;  %v3398_v28 = vmul.f32 %v6514_v5, %v8760_v59  ;;  %v3729_v59 = vsel %vm1839_vm6, %v8751_v1, 0 }
 0xc65   : > { %v3400_v36 = vmul.f32 %v6516_v55, %v8754_v22  ;;  %v3732_v22 = vsel %vm1839_vm6, %v3710_v42, 0 }
 0xc66   : > { %v6518_v50 = vpop.eup %6517 }
 0xc67   : > { %v3399_v17 = vmul.f32 %v6518_v50, %v8769_v41  ;;  %v3411_v34 = vpack.c.bf16 %v3401_v29, %v3400_v36 }
 0xc69   : > { %v3410_v31 = vpack.c.bf16 %v3399_v17, %v3398_v28 }
 0xc6b   : > { %5974 = vmatprep.mubr.msk.bf16.mxu1 %vm918_vm4, %v3410_v31 }
 0xc6c   : > { %5975 = vmatmul.mubr.msk.bf16.vlgmr.msra.gmra.mrb[56].mxu1 %vm918_vm4, %v3411_v34 }
 0xc6d   : > { %5999 = vmatpush3.bf16.xpose.msra.mxu1 %v3726_v40 }
 0xc6e   : > { %6139 = vmatprep.subr.msk.bf16.mxu1 %vm1839_vm6, %v8751_v1 }
 0xc75   : > { %6001 = vmatpush3.bf16.xpose.msra.mxu1 %v3729_v59 }
 0xc76   : > { %6140 = vmatprep.subr.msk.bf16.mxu1 %vm1839_vm6, %v3710_v42 }
 0xc7d   : > { %6003 = vmatpush3.bf16.xpose.msra.mxu1 %v3732_v22 }
 0xc8c   : > { %v3351_v41 = vpop.xlane.xlu1 %3350 }
 0xc8d   : > { %6519 = vrcp.f32 %v3351_v41 }
 0xc90   : > { %v3354_v63 = vpop.xlane.xlu0 %3353  ;;  %v3712_v35 = vpop.permute.xlu1 %3711 }
 0xc91   : > { %6141 = vmatprep.subr.msk.bf16.mxu1 %vm1839_vm6, %v3712_v35  ;;  %v3735_v45 = vsel %vm1839_vm6, %v3712_v35, 0 }
 0xc92   : > { %6005 = vmatpush3.bf16.xpose.msra.mxu1 %v3735_v45 }
 0xc94   : > { %v3348_v18 = vpop.xlane.xlu0 %3347 }
 0xc95   : > { %6521 = vrcp.f32 %v3348_v18 }
 0xc96   : > { %6523 = vrcp.f32 %v3354_v63 }
 0xc97   : > { %v6520_v16 = vpop.eup %6519 }
 0xc98   : > { %v3357_v1 = vpop.xlane.xlu0 %3356  ;;  %v3403_v36 = vmul.f32 %v6520_v16, %v8781_v62  ;;  %v3700_v62 = vpop.permute.xlu1 %3699 }
 0xc99   : > { %6525 = vrcp.f32 %v3357_v1 }
 0xc9c   : > { %v3599_v19 = vpop.permute.xlu0 %3598  ;;  %v3704_v18 = vpop.permute.xlu1 %3703 }
 0xc9d   : > { %v5992_v57 = vpop.f32.mrb[48].mxu0  ;;  %5995 = vmatmul.mubr.msk.bf16.gmra.mrb[52].mxu0 %vm1839_vm6, %v3599_v19 }
 0xc9e   : > { %v3666_v5 = vpop.f32.mrb[49].mxu0  ;;  %v3808_v42 = vsel %vm918_vm4, %v5992_v57, -inf }
 0xc9f   : > { %v6522_v55 = vpop.eup %6521  ;;  %v5993_v50 = vpop.f32.mrb[50].mxu0  ;;  %v3802_v29 = vsel %vm918_vm4, %v3666_v5, -inf }
 0xca0   : > { %3803 = vmax.xlane.f32.xlu0 %v3802_v29  ;;  %v3669_v28 = vpop.f32.mrb[51].mxu0  ;;  %v3402_v17 = vmul.f32 %v6522_v55, %v8789_v21  ;;  %v6524_v31 = vpop.eup %6523  ;;  %v3811_v21 = vsel %vm918_vm4, %v5993_v50, -inf }
 0xca1   : > { %v3805_v34 = vsel %vm918_vm4, %v3669_v28, -inf  ;;  %v3404_v22 = vmul.f32 %v6524_v31, %v8785_v32  ;;  %v3698_v35 = vpop.permute.xlu0 %3697 }
 0xca2   : > { %3806 = vmax.xlane.f32.xlu1 %v3805_v34  ;;  %v3412_v40 = vpack.c.bf16 %v3403_v36, %v3402_v17 }
 0xca3   : > { %v6526_v59 = vpop.eup %6525 }
 0xca4   : > { %3809 = vmax.xlane.f32.xlu0 %v3808_v42  ;;  %5978 = vmatprep.mubr.msk.bf16.mxu1 %vm918_vm4, %v3412_v40  ;;  %v3405_v41 = vmul.f32 %v6526_v59, %v8793_v3 }
 0xca5   : > { %v3702_v45 = vpop.permute.xlu0 %3701 }
 0xca6   : > { %v3413_v63 = vpack.c.bf16 %v3405_v41, %v3404_v22 }
 0xca8   : > { %3812 = vmax.xlane.f32.xlu0 %v3811_v21  ;;  %5979 = vmatmul.mubr.msk.bf16.gmra.mrb[60].mxu1 %vm918_vm4, %v3413_v63 }
 0xca9   : > { %6006 = vmatprep.mubr.msk.bf16.mxu1 %vm1839_vm6, %v3698_v35 }
 0xcb0   : > { %6007 = vmatmul.mubr.msk.bf16.vlgmr.msra.gmra.mrb[64].mxu1 %vm1839_vm6, %v3700_v62 }
 0xcb1   : > { %6010 = vmatprep.mubr.msk.bf16.mxu1 %vm1839_vm6, %v3702_v45 }
 0xcb8   : > { %6011 = vmatmul.mubr.msk.bf16.gmra.mrb[68].mxu1 %vm1839_vm6, %v3704_v18 }
 0xd2d   : > { %v3804_v29 = vpop.xlane.xlu0 %3803 }
 0xd2e   : > { %v3850_v31 = vsub.f32 %v3666_v5, %v3804_v29 }
 0xd2f   : > { %v3807_v36 = vpop.xlane.xlu1 %3806 }
 0xd30   : > { %v3851_v34 = vsub.f32 %v3669_v28, %v3807_v36  ;;  %v3866_v59 = vmul.f32 1.442695, %v3850_v31 }
 0xd31   : > { %v3810_v17 = vpop.xlane.xlu0 %3809 }
 0xd32   : > { %v3852_v42 = vsub.f32 %v5992_v57, %v3810_v17  ;;  %v3868_v22 = vmul.f32 1.442695, %v3851_v34  ;;  %6527 = vpow2.f32 %v3866_v59 }
 0xd34   : > { %v3870_v63 = vmul.f32 1.442695, %v3852_v42  ;;  %6529 = vpow2.f32 %v3868_v22 }
 0xd35   : > { %v3813_v40 = vpop.xlane.xlu0 %3812 }
 0xd36   : > { %v3853_v41 = vsub.f32 %v5993_v50, %v3813_v40  ;;  %6531 = vpow2.f32 %v3870_v63 }
 0xd38   : > { %v3872_v21 = vmul.f32 1.442695, %v3853_v41 }
 0xd3a   : > { %6533 = vpow2.f32 %v3872_v21 }
 0xd3c   : > { %v6528_v50 = vpop.eup %6527 }
 0xd3d   : > { %v3898_v36 = vsel %vm918_vm4, %v6528_v50, 0.0 }
 0xd3e   : > { %v6530_v17 = vpop.eup %6529 }
 0xd3f   : > { %v8865_v32 = vpop.f32.mrb[56].mxu1  ;;  %v3901_v59 = vsel %vm918_vm4, %v6530_v17, 0.0 }
 0xd40   : > { %v8867_v3 = vpop.f32.mrb[57].mxu1  ;;  %v8885_v31 = vpop.eup %6531 }
 0xd41   : > { %v8869_v1 = vpop.f32.mrb[58].mxu1  ;;  %v3904_v21 = vsel %vm918_vm4, %v8885_v31, 0.0 }
 0xd42   : > { %v8873_v16 = vpop.f32.mrb[59].mxu1 }
 0xd44   : > { %v8892_v42 = vpop.eup %6533 }
 0xd70   : > { %v8877_v35 = vpop.f32.mrb[52].mxu0 }
 0xd71   : > { %v3682_v62 = vpop.f32.mrb[53].mxu0  ;;  %v3820_v57 = vsel %vm918_vm4, %v8877_v35, -inf }
 0xd72   : > { %v5997_v45 = vpop.f32.mrb[54].mxu0  ;;  %v3814_v18 = vsel %vm918_vm4, %v3682_v62, -inf }
 0xd73   : > { %3815 = vmax.xlane.f32.xlu0 %v3814_v18  ;;  %v3685_v5 = vpop.f32.mrb[55].mxu0  ;;  %v3823_v29 = vsel %vm918_vm4, %v5997_v45, -inf }
 0xd74   : > { %v3817_v28 = vsel %vm918_vm4, %v3685_v5, -inf }
 0xd75   : > { %3818 = vmax.xlane.f32.xlu1 %v3817_v28  ;;  %v3907_v28 = vsel %vm918_vm4, %v8892_v42, 0.0 }
 0xd77   : > { %3821 = vmax.xlane.f32.xlu0 %v3820_v57 }
 0xd79   : > { %3824 = vmax.xlane.f32.xlu1 %v3823_v29 }
 0xd7b   : > { %3899 = vadd.xlane.f32.xlu0 %v3898_v36  ;;  %v8887_v34 = vpop.f32.mrb[60].mxu1 }
 0xd7c   : > { %9751 = vst [vmem:[#allocation25_spill] sm:$0xff] %v8887_v34  ;;  %v8889_v40 = vpop.f32.mrb[61].mxu1 }
 0xd7d   : > { %9752 = vst [vmem:[#allocation26_spill] sm:$0xff] %v8889_v40  ;;  %v8894_v22 = vpop.f32.mrb[62].mxu1  ;;  %3902 = vadd.xlane.f32.xlu1 %v3901_v59 }
 0xd7e   : > { %9753 = vst [vmem:[#allocation27_spill] sm:$0xff] %v8894_v22  ;;  %v8898_v63 = vpop.f32.mrb[63].mxu1 }
 0xd7f   : > { %9754 = vst [vmem:[#allocation28_spill] sm:$0xff] %v8898_v63  ;;  %3905 = vadd.xlane.f32.xlu0 %v3904_v21 }
 0xd81   : > { %3908 = vadd.xlane.f32.xlu1 %v3907_v28 }
 0xd83   : > { %v8906_v57 = vpop.f32.mrb[64].mxu1 }
 0xd84   : > { %v8908_v29 = vpop.f32.mrb[65].mxu1 }
 0xd85   : > { %v8910_v36 = vpop.f32.mrb[66].mxu1 }
 0xd86   : > { %v8912_v59 = vpop.f32.mrb[67].mxu1 }
 0xd8b   : > { %v8914_v41 = vpop.f32.mrb[68].mxu1 }
 0xd8c   : > { %v8916_v55 = vpop.f32.mrb[69].mxu1 }
 0xd8d   : > { %v8918_v19 = vpop.f32.mrb[70].mxu1 }
 0xd8e   : > { %v8920_v18 = vpop.f32.mrb[71].mxu1 }
 0xe00   : > { %v3816_v21 = vpop.xlane.xlu0 %3815 }
 0xe01   : > { %v3854_v23 = vsub.f32 %v3682_v62, %v3816_v21 }
 0xe02   : > { %v3819_v58 = vpop.xlane.xlu1 %3818 }
 0xe03   : > { %v3874_v28 = vmul.f32 1.442695, %v3854_v23  ;;  %v3855_v56 = vsub.f32 %v3685_v5, %v3819_v58 }
 0xe04   : > { %v3822_v9 = vpop.xlane.xlu0 %3821 }
 0xe05   : > { %6535 = vpow2.f32 %v3874_v28  ;;  %v3876_v40 = vmul.f32 1.442695, %v3855_v56  ;;  %v3856_v25 = vsub.f32 %v8877_v35, %v3822_v9  ;;  %v3835_v9 = vsel %vm918_vm4, %v8910_v36, -inf }
 0xe06   : > { %v3825_v63 = vpop.xlane.xlu1 %3824 }
 0xe07   : > { %6537 = vpow2.f32 %v3876_v40  ;;  %v3857_v22 = vsub.f32 %v5997_v45, %v3825_v63  ;;  %v3878_v58 = vmul.f32 1.442695, %v3856_v25  ;;  %v3829_v25 = vsel %vm918_vm4, %v8912_v59, -inf }
 0xe08   : > { %v3900_v34 = vpop.xlane.xlu0 %3899  ;;  %v3844_v63 = vsel %vm918_vm4, %v8914_v41, -inf }
 0xe09   : > { %6539 = vrcp.f32 %v3900_v34  ;;  %v3880_v10 = vmul.f32 1.442695, %v3857_v22 }
 0xe0a   : > { %v3903_v44 = vpop.xlane.xlu1 %3902 }
 0xe0b   : > { %6541 = vrcp.f32 %v3903_v44  ;;  %v3832_v44 = vsel %vm918_vm4, %v8906_v57, -inf }
 0xe0c   : > { %6543 = vpow2.f32 %v3880_v10  ;;  %v3826_v10 = vsel %vm918_vm4, %v8908_v29, -inf }
 0xe0d   : > { %6545 = vpow2.f32 %v3878_v58 }
 0xe0f   : > { %v8922_v20 = vpop.eup %6535 }
 0xe10   : > { %v3910_v62 = vsel %vm918_vm4, %v8922_v20, 0.0 }
 0xe11   : > { %v8927_v23 = vpop.eup %6537  ;;  %3911 = vadd.xlane.f32.xlu0 %v3910_v62  ;;  %v3847_v62 = vsel %vm918_vm4, %v8918_v19, -inf }
 0xe12   : > { %v3913_v56 = vsel %vm918_vm4, %v8927_v23, 0.0 }
 0xe13   : > { %3914 = vadd.xlane.f32.xlu1 %v3913_v56  ;;  %v6540_v45 = vpop.eup %6539  ;;  %v3841_v56 = vsel %vm918_vm4, %v8920_v18, -inf }
 0xe14   : > { %v3978_v35 = vmul.f32 %v6540_v45, %v6528_v50 }
 0xe15   : > { %3833 = vmax.xlane.f32.xlu0 %v3832_v44  ;;  %v6542_v5 = vpop.eup %6541 }
 0xe16   : > { %v3979_v34 = vmul.f32 %v6542_v5, %v6530_v17  ;;  %v8939_v22 = vpop.eup %6543  ;;  %v3838_v17 = vsel %vm918_vm4, %v8916_v55, -inf }
 0xe17   : > { %3836 = vmax.xlane.f32.xlu1 %v3835_v9  ;;  %v3919_v50 = vsel %vm918_vm4, %v8939_v22, 0.0  ;;  %v8948_v21 = vpop.eup %6545 }
 0xe18   : > { %v3994_v40 = vpack.c.bf16 %v3979_v34, %v3978_v35  ;;  %v3916_v28 = vsel %vm918_vm4, %v8948_v21, 0.0 }
 0xe19   : > { %3827 = vmax.xlane.f32.xlu0 %v3826_v10 }
 0xe1a   : > { %6022 = vmatprep.mubr.msk.bf16.mxu0 %vm918_vm4, %v3994_v40 }
 0xe1b   : > { %3830 = vmax.xlane.f32.xlu1 %v3829_v25 }
 0xe1d   : > { %3845 = vmax.xlane.f32.xlu0 %v3844_v63 }
 0xe1f   : > { %3920 = vadd.xlane.f32.xlu1 %v3919_v50 }
 0xe21   : > { %3839 = vmax.xlane.f32.xlu0 %v3838_v17 }
 0xe25   : > { %3917 = vadd.xlane.f32.xlu0 %v3916_v28 }
 0xe30   : > { %4004 = vrot.lane.b32.xlu1 %v7945_v7, %s6693_s12  ;;  %v3906_v7 = vpop.xlane.xlu0 %3905 }
 0xe3b   : > { %4002 = vrot.lane.b32.xlu0 %v7947_v47, %s6693_s12  ;;  %v3909_v47 = vpop.xlane.xlu1 %3908 }
 0xe3f   : > { %4006 = vrot.lane.b32.xlu0 %v7965_v12, %s6693_s12 }
 0xe43   : > { %4008 = vrot.lane.b32.xlu0 %v7963_v37, %s6693_s12 }
 0xe54   : > { %3848 = vmax.xlane.f32.xlu1 %v3847_v62 }
 0xe58   : > { %3842 = vmax.xlane.f32.xlu1 %v3841_v56 }
 0xe69   : > { %4091 = vrot.lane.b32.xlu1 %v7981_v43, %s6693_s12 }
 0xe6d   : > { %4093 = vrot.lane.b32.xlu1 %v7979_v39, %s6693_s12 }
 0xe9e   : > { %v3912_v12 = vpop.xlane.xlu0 %3911 }
 0xea0   : > { %v3915_v58 = vpop.xlane.xlu1 %3914 }
 0xea2   : > { %v3834_v45 = vpop.xlane.xlu0 %3833 }
 0xea3   : > { %v3860_v37 = vsub.f32 %v8906_v57, %v3834_v45 }
 0xea4   : > { %v3837_v44 = vpop.xlane.xlu1 %3836 }
 0xea5   : > { %v3886_v5 = vmul.f32 1.442695, %v3860_v37  ;;  %v3861_v9 = vsub.f32 %v8910_v36, %v3837_v44 }
 0xea6   : > { %v3828_v35 = vpop.xlane.xlu0 %3827 }
 0xea7   : > { %6547 = vpow2.f32 %v3886_v5  ;;  %v3858_v34 = vsub.f32 %v8908_v29, %v3828_v35  ;;  %v3888_v43 = vmul.f32 1.442695, %v3861_v9 }
 0xea8   : > { %v3831_v10 = vpop.xlane.xlu1 %3830 }
 0xea9   : > { %v3882_v40 = vmul.f32 1.442695, %v3858_v34  ;;  %v3859_v39 = vsub.f32 %v8912_v59, %v3831_v10 }
 0xeaa   : > { %v3846_v25 = vpop.xlane.xlu0 %3845 }
 0xeab   : > { %6549 = vpow2.f32 %v3882_v40  ;;  %v3864_v63 = vsub.f32 %v8914_v41, %v3846_v25  ;;  %v3884_v50 = vmul.f32 1.442695, %v3859_v39 }
 0xeac   : > { %6551 = vpow2.f32 %v3888_v43  ;;  %v3921_v62 = vpop.xlane.xlu1 %3920 }
 0xead   : > { %v3894_v57 = vmul.f32 1.442695, %v3864_v63 }
 0xeae   : > { %v3840_v17 = vpop.xlane.xlu0 %3839 }
 0xeaf   : > { %6553 = vpow2.f32 %v3894_v57  ;;  %v3862_v36 = vsub.f32 %v8916_v55, %v3840_v17 }
 0xeb0   : > { %6555 = vpow2.f32 %v3884_v50  ;;  %v4005_v44 = vpop.permute.xlu1 %4004 }
 0xeb1   : > { %v8974_v28 = vpop.eup %6547  ;;  %v3890_v29 = vmul.f32 1.442695, %v3862_v36 }
 0xeb2   : > { %v3918_v56 = vpop.xlane.xlu0 %3917  ;;  %v3928_v59 = vsel %vm918_vm4, %v8974_v28, 0.0 }
 0xeb3   : > { %6557 = vpow2.f32 %v3890_v29  ;;  %3929 = vadd.xlane.f32.xlu1 %v3928_v59 }
 0xeb4   : > { %6559 = vrcp.f32 %v3909_v47 }
 0xeb5   : > { %v8978_v41 = vpop.eup %6549  ;;  %6561 = vrcp.f32 %v3915_v58 }
 0xeb6   : > { %6563 = vrcp.f32 %v3906_v7  ;;  %v4003_v45 = vpop.permute.xlu0 %4002  ;;  %v3922_v55 = vsel %vm918_vm4, %v8978_v41, 0.0  ;;  %v8982_v37 = vpop.eup %6551 }
 0xeb7   : > { %6565 = vrcp.f32 %v3912_v12  ;;  %6014 = vmatprep.subr.bf16.mxu0 %v4003_v45  ;;  %3923 = vadd.xlane.f32.xlu1 %v3922_v55  ;;  %v3931_v7 = vsel %vm918_vm4, %v8982_v37, 0.0 }
 0xeb8   : > { %6015 = vmatpush3.bf16.msra.mxu0 %v4003_v45  ;;  %6567 = vrcp.f32 %v3918_v56 }
 0xeb9   : > { %v8984_v5 = vpop.eup %6553  ;;  %6016 = vmatprep.subr.bf16.mxu0 %v4005_v44  ;;  %6569 = vrcp.f32 %v3921_v62 }
 0xeba   : > { %v4007_v9 = vpop.permute.xlu0 %4006  ;;  %v3940_v47 = vsel %vm918_vm4, %v8984_v5, 0.0  ;;  %v8990_v58 = vpop.eup %6555 }
 0xebb   : > { %3941 = vadd.xlane.f32.xlu0 %v3940_v47  ;;  %3932 = vadd.xlane.f32.xlu1 %v3931_v7  ;;  %v3925_v10 = vsel %vm918_vm4, %v8990_v58, 0.0 }
 0xebc   : > { %6017 = vmatpush3.bf16.msra.mxu0 %v4005_v44 }
 0xebd   : > { %v8992_v12 = vpop.eup %6557  ;;  %6018 = vmatprep.subr.bf16.mxu0 %v4007_v9 }
 0xebe   : > { %v6560_v35 = vpop.eup %6559  ;;  %v3934_v34 = vsel %vm918_vm4, %v8992_v12, 0.0  ;;  %v4009_v39 = vpop.permute.xlu0 %4008 }
 0xebf   : > { %v6562_v43 = vpop.eup %6561  ;;  %3935 = vadd.xlane.f32.xlu0 %v3934_v34  ;;  %3926 = vadd.xlane.f32.xlu1 %v3925_v10  ;;  %v3981_v63 = vmul.f32 %v6560_v35, %v8892_v42  ;;  %v9756_v34 = vpack.i.bf16 %v8545_v46, %v8539_v14  ;;  %v9757_v10 = vpack.i.bf16 %v8803_v2, %v8799_v13 }
 0xec0   : > { %v6564_v40 = vpop.eup %6563  ;;  %6019 = vmatpush3.bf16.msra.mxu0 %v4007_v9  ;;  %v3983_v50 = vmul.f32 %v6562_v43, %v8927_v23 }
 0xec1   : > { %v6566_v25 = vpop.eup %6565  ;;  %6020 = vmatprep.subr.bf16.mxu0 %v4009_v39  ;;  %v3980_v57 = vmul.f32 %v6564_v40, %v8885_v31 }
 0xec2   : > { %v3982_v17 = vmul.f32 %v6566_v25, %v8922_v20  ;;  %v6568_v29 = vpop.eup %6567 }
 0xec3   : > { %v3995_v36 = vpack.c.bf16 %v3981_v63, %v3980_v57  ;;  %v6570_v56 = vpop.eup %6569  ;;  %v3984_v59 = vmul.f32 %v6568_v29, %v8948_v21 }
 0xec4   : > { %6021 = vmatpush3.bf16.msra.mxu0 %v4009_v39  ;;  %v3996_v62 = vpack.c.bf16 %v3983_v50, %v3982_v17  ;;  %v3985_v42 = vmul.f32 %v6570_v56, %v8939_v22 }
 0xec6   : > { %v3997_v45 = vpack.c.bf16 %v3985_v42, %v3984_v59 }
 0xec7   : > { %6023 = vmatmul.mubr.msk.bf16.vlgmr.msra.gmra.mrb[56].mxu0 %vm918_vm4, %v3995_v36 }
 0xec8   : > { %6026 = vmatprep.mubr.msk.bf16.mxu0 %vm918_vm4, %v3996_v62 }
 0xecf   : > { %6027 = vmatmul.mubr.msk.bf16.gmra.mrb[60].mxu0 %vm918_vm4, %v3997_v45 }
 0xee1   : > { %v3849_v23 = vpop.xlane.xlu1 %3848 }
 0xee2   : > { %v3865_v31 = vsub.f32 %v8918_v19, %v3849_v23 }
 0xee4   : > { %v3896_v55 = vmul.f32 1.442695, %v3865_v31 }
 0xee5   : > { %v3843_v20 = vpop.xlane.xlu1 %3842 }
 0xee6   : > { %6571 = vpow2.f32 %v3896_v55  ;;  %v3863_v44 = vsub.f32 %v8920_v18, %v3843_v20  ;;  %v9755_v18 = vpack.i.bf16 %v8541_v49, %v8537_v61 }
 0xee8   : > { %v3892_v9 = vmul.f32 1.442695, %v3863_v44 }
 0xee9   : > { %v4092_v47 = vpop.permute.xlu1 %4091 }
 0xeea   : > { %6573 = vpow2.f32 %v3892_v9  ;;  %6030 = vmatprep.subr.bf16.mxu1 %v4092_v47 }
 0xeeb   : > { %6031 = vmatpush3.bf16.msra.mxu1 %v4092_v47 }
 0xeed   : > { %v4094_v7 = vpop.permute.xlu1 %4093 }
 0xeee   : > { %6032 = vmatprep.subr.bf16.mxu1 %v4094_v7 }
 0xeef   : > { %6033 = vmatpush3.bf16.msra.mxu1 %v4094_v7 }
 0xef0   : > { %v6572_v22 = vpop.eup %6571 }
 0xef1   : > { %v3943_v21 = vsel %vm918_vm4, %v6572_v22, 0.0 }
 0xef2   : > { %3944 = vadd.xlane.f32.xlu0 %v3943_v21 }
 0xef4   : > { %v6574_v35 = vpop.eup %6573 }
 0xef5   : > { %v3937_v19 = vsel %vm918_vm4, %v6574_v35, 0.0 }
 0xef6   : > { %3938 = vadd.xlane.f32.xlu1 %v3937_v19 }
 0xf07   : > { %4097 = vrot.lane.b32.xlu1 %v7997_v54, %s6693_s12  ;;  %v9758_v54 = vpack.i.bf16 %v8807_v38, %v8801_v30 }
 0xf08   : > { %4095 = vrot.lane.b32.xlu0 %v7999_v48, %s6693_s12  ;;  %v6293_v48 = vld [vmem:[%s6780_s25] sm:$0xff]  }
 0xf09   : > { %6046 = vmatprep.subr.bf16.mxu0 %v6293_v48 }
 0xf0a   : > { %6047 = vmatpush3.bf16.msra.mxu0 %v6293_v48  ;;  %v9761_v48 = vpack.i.bf16 %v8825_v11, %v8821_v15  ;;  %v9769_v15 = vld [vmem:[#allocation23_spill] sm:$0xff] }
 0xf0b   : > { %6173 = vrot.lane.b32.xlu1 %v9755_v18, %s6694_s16  ;;  %v9760_v18 = vpack.i.bf16 %v8571_v26, %v8565_v8  ;;  %v9764_v8 = vpack.i.bf16 %v8601_v33, %v8595_v60  ;;  %v9766_v26 = vpack.i.bf16 %v8873_v16, %v8867_v3 }
 0xf0c   : > { %6168 = vrot.lane.b32.xlu0 %v9756_v34, %s6694_s16 }
 0xf0f   : > { %6183 = vrot.lane.b32.xlu1 %v9757_v10, %s6695_s22 }
 0xf10   : > { %6178 = vrot.lane.b32.xlu0 %v9758_v54, %s6695_s22 }
 0xf40   : > { %v3930_v61 = vpop.xlane.xlu1 %3929 }
 0xf44   : > { %v3924_v49 = vpop.xlane.xlu1 %3923 }
 0xf45   : > { %6575 = vrcp.f32 %v3924_v49 }
 0xf48   : > { %v3933_v43 = vpop.xlane.xlu1 %3932  ;;  %v3942_v30 = vpop.xlane.xlu0 %3941 }
 0xf4c   : > { %v3927_v14 = vpop.xlane.xlu1 %3926  ;;  %v3936_v38 = vpop.xlane.xlu0 %3935 }
 0xf4d   : > { %6577 = vrcp.f32 %v3927_v14 }
 0xf4e   : > { %6579 = vrcp.f32 %v3933_v43 }
 0xf4f   : > { %v6576_v46 = vpop.eup %6575  ;;  %6581 = vrcp.f32 %v3930_v61  ;;  %v9762_v61 = vpack.i.bf16 %v8829_v27, %v8823_v0 }
 0xf50   : > { %v3986_v39 = vmul.f32 %v6576_v46, %v8978_v41 }
 0xf57   : > { %v6578_v40 = vpop.eup %6577 }
 0xf58   : > { %v3987_v13 = vmul.f32 %v6578_v40, %v8990_v58  ;;  %v6580_v63 = vpop.eup %6579  ;;  %v9771_v40 = vld [vmem:[#allocation16_spill] sm:$0xff] }
 0xf59   : > { %v6582_v17 = vpop.eup %6581  ;;  %v3989_v41 = vmul.f32 %v6580_v63, %v8982_v37 }
 0xf5a   : > { %v3998_v2 = vpack.c.bf16 %v3987_v13, %v3986_v39  ;;  %v3988_v36 = vmul.f32 %v6582_v17, %v8974_v28  ;;  %v6294_v28 = vld [vmem:[%s6780_s25 + $0x8] sm:$0xff]  }
 0xf5b   : > { %6048 = vmatprep.subr.bf16.mxu0 %v6294_v28 }
 0xf5c   : > { %6038 = vmatprep.mubr.msk.bf16.mxu1 %vm918_vm4, %v3998_v2  ;;  %v3999_v29 = vpack.c.bf16 %v3989_v41, %v3988_v36  ;;  %6049 = vmatpush3.bf16.msra.mxu0 %v6294_v28  ;;  %v9773_v2 = vld [vmem:[#allocation15_spill] sm:$0xff] }
 0xf7f   : > { %v3945_v25 = vpop.xlane.xlu0 %3944 }
 0xf80   : > { %6583 = vrcp.f32 %v3945_v25 }
 0xf81   : > { %6585 = vrcp.f32 %v3936_v38  ;;  %v9774_v38 = vld [vmem:[#allocation14_spill] sm:$0xff] }
 0xf82   : > { %6587 = vrcp.f32 %v3942_v30 }
 0xf83   : > { %v4096_v50 = vpop.permute.xlu0 %4095  ;;  %v3939_v57 = vpop.xlane.xlu1 %3938 }
 0xf84   : > { %6589 = vrcp.f32 %v3939_v57  ;;  %6034 = vmatprep.subr.bf16.mxu1 %v4096_v50 }
 0xf85   : > { %6035 = vmatpush3.bf16.msra.mxu1 %v4096_v50 }
 0xf87   : > { %v4098_v58 = vpop.permute.xlu1 %4097  ;;  %v6169_v0 = vpop.permute.xlu0 %6168 }
 0xf88   : > { %6036 = vmatprep.subr.bf16.mxu1 %v4098_v58  ;;  %v6171_v27 = vunpack.i.h.bf16 %v6169_v0 }
 0xf89   : > { %6037 = vmatpush3.bf16.msra.mxu1 %v4098_v58 }
 0xf8a   : > { %v6584_v62 = vpop.eup %6583 }
 0xf8b   : > { %v6586_v56 = vpop.eup %6585  ;;  %v3993_v45 = vmul.f32 %v6584_v62, %v6572_v22  ;;  %v6174_v33 = vpop.permute.xlu1 %6173 }
 0xf8c   : > { %6039 = vmatmul.mubr.msk.bf16.vlgmr.msra.gmra.mrb[72].mxu1 %vm918_vm4, %v3999_v29  ;;  %v6588_v59 = vpop.eup %6587  ;;  %v3990_v23 = vmul.f32 %v6586_v56, %v8992_v12  ;;  %v6176_v49 = vunpack.i.h.bf16 %v6174_v33  ;;  %v6175_v43 = vunpack.i.l.bf16 %v6174_v33 }
 0xf8d   : > { %v3992_v55 = vmul.f32 %v6588_v59, %v8984_v5 }
 0xf8e   : > { %v6590_v42 = vpop.eup %6589  ;;  %v4375_v30 = vsel %vm1839_vm6, %v9773_v2, %v6176_v49  ;;  %v4374_v25 = vsel %vm1839_vm6, %v9774_v38, %v6175_v43  ;;  %v9782_v38 = vld [vmem:[#allocation28_spill] sm:$0xff] }
 0xf8f   : > { %v3991_v31 = vmul.f32 %v6590_v42, %v6574_v35  ;;  %v4001_v20 = vpack.c.bf16 %v3993_v45, %v3992_v55  ;;  %v9759_v35 = vpack.i.bf16 %v8567_v53, %v8561_v24  ;;  %v9763_v24 = vpack.i.bf16 %v8597_v4, %v8593_v6  ;;  %v9768_v4 = vld [vmem:[#allocation24_spill] sm:$0xff]  ;;  %v6184_v11 = vpop.permute.xlu1 %6183 }
 0xf90   : > { %v9765_v53 = vpack.i.bf16 %v8869_v1, %v8865_v32  ;;  %v9767_v6 = vpack.i.bf16 %v8615_v52, %v8610_v51  ;;  %v9770_v60 = vpack.i.bf16 %v9768_v4, %v9769_v15  ;;  %v6170_v32 = vunpack.i.l.bf16 %v6169_v0  ;;  %v6179_v1 = vpop.permute.xlu0 %6178  ;;  %v9772_v52 = vld [vmem:[#allocation13_spill] sm:$0xff] }
 0xf91   : > { %v4000_v37 = vpack.c.bf16 %v3991_v31, %v3990_v23  ;;  %v6186_v3 = vunpack.i.h.bf16 %v6184_v11  ;;  %v6185_v16 = vunpack.i.l.bf16 %v6184_v11  ;;  %v6181_v14 = vunpack.i.h.bf16 %v6179_v1 }
 0xf92   : > { %v6180_v46 = vunpack.i.l.bf16 %v6179_v1  ;;  %v4373_v51 = vsel %vm1839_vm6, %v9771_v40, %v6171_v27  ;;  %v4372_v39 = vsel %vm1839_vm6, %v9772_v52, %v6170_v32 }
 0xf93   : > { %6042 = vmatprep.mubr.msk.bf16.mxu1 %vm918_vm4, %v4000_v37  ;;  %v4391_v17 = vsel %vm4388_vm7, %v4374_v25, %v6185_v16  ;;  %v4392_v41 = vsel %vm4388_vm7, %v4375_v30, %v6186_v3  ;;  %v4390_v62 = vsel %vm4388_vm7, %v4373_v51, %v6181_v14  ;;  %v9783_v25 = vld [vmem:[#allocation26_spill] sm:$0xff] }
 0xf94   : > { %6043 = vmatmul.mubr.msk.bf16.gmra.mrb[76].mxu1 %vm918_vm4, %v4001_v20  ;;  %v4389_v29 = vsel %vm4388_vm7, %v4372_v39, %v6180_v46  ;;  %v9779_v39 = vld [vmem:[#allocation27_spill] sm:$0xff] }
 0xf9a   : > { %v6024_v44 = vpop.f32.mrb[56].mxu0 }
 0xf9b   : > { %v4060_v9 = vpop.f32.mrb[57].mxu0 }
 0xf9c   : > { %v6025_v47 = vpop.f32.mrb[58].mxu0 }
 0xf9d   : > { %v6192_v7 = vpack.i.bf16 %v6025_v47, %v6024_v44  ;;  %v4063_v21 = vpop.f32.mrb[59].mxu0 }
 0xf9e   : > { %v6187_v22 = vpack.i.bf16 %v4063_v21, %v4060_v9 }
 0xf9f   : > { %6193 = vrot.lane.b32.xlu1 %v6192_v7, %s6696_s27 }
 0xfa0   : > { %6188 = vrot.lane.b32.xlu0 %v6187_v22, %s6696_s27 }
 0xfa2   : > { %v6028_v5 = vpop.f32.mrb[60].mxu0 }
 0xfa3   : > { %v4076_v12 = vpop.f32.mrb[61].mxu0  ;;  %6203 = vrot.lane.b32.xlu1 %v9759_v35, %s6694_s16  ;;  %v9775_v35 = vld [vmem:[#allocation17_spill] sm:$0xff] }
 0xfa4   : > { %v6029_v19 = vpop.f32.mrb[62].mxu0  ;;  %6198 = vrot.lane.b32.xlu0 %v9760_v18, %s6694_s16  ;;  %v9776_v18 = vld [vmem:[#allocation8_spill] sm:$0xff] }
 0xfa5   : > { %v6222_v34 = vpack.i.bf16 %v6029_v19, %v6028_v5  ;;  %v4079_v10 = vpop.f32.mrb[63].mxu0 }
 0xfa6   : > { %v6217_v54 = vpack.i.bf16 %v4079_v10, %v4076_v12 }
 0xfa7   : > { %6213 = vrot.lane.b32.xlu1 %v9761_v48, %s6695_s22 }
 0xfa8   : > { %6208 = vrot.lane.b32.xlu0 %v9762_v61, %s6695_s22  ;;  %v9778_v61 = vld [vmem:[#allocation9_spill] sm:$0xff] }
 0xfab   : > { %6223 = vrot.lane.b32.xlu1 %v6222_v34, %s6696_s27 }
 0xfac   : > { %6218 = vrot.lane.b32.xlu0 %v6217_v54, %s6696_s27  ;;  %v9777_v54 = vld [vmem:[#allocation12_spill] sm:$0xff] }
 0xfaf   : > { %6233 = vrot.lane.b32.xlu1 %v9763_v24, %s6694_s16 }
 0xfb0   : > { %6228 = vrot.lane.b32.xlu0 %v9764_v8, %s6694_s16 }
 0xfb3   : > { %6243 = vrot.lane.b32.xlu1 %v9765_v53, %s6695_s22 }
 0xfb4   : > { %6238 = vrot.lane.b32.xlu0 %v9766_v26, %s6695_s22 }
 0xfb7   : > { %6253 = vrot.lane.b32.xlu1 %v9767_v6, %s6694_s16 }
 0xfb8   : > { %6248 = vrot.lane.b32.xlu0 %v9770_v60, %s6694_s16 }
0x1011   : > { %v6194_v13 = vpop.permute.xlu1 %6193 }
0x1012   : > { %v6196_v63 = vunpack.i.h.bf16 %v6194_v13  ;;  %v6195_v50 = vunpack.i.l.bf16 %v6194_v13  ;;  %v6189_v57 = vpop.permute.xlu0 %6188  ;;  %v9780_v13 = vld [vmem:[#allocation25_spill] sm:$0xff] }
0x1013   : > { %v6191_v58 = vunpack.i.h.bf16 %v6189_v57  ;;  %v6190_v36 = vunpack.i.l.bf16 %v6189_v57  ;;  %v9781_v2 = vpack.i.bf16 %v9779_v39, %v9780_v13  ;;  %v9791_v39 = vld [vmem:[#allocation22_spill] sm:$0xff] }
0x1014   : > { %v4408_v56 = vsel %vm4405_vm8, %v4391_v17, %v6195_v50  ;;  %v4409_v59 = vsel %vm4405_vm8, %v4392_v41, %v6196_v63  ;;  %v9784_v63 = vpack.i.bf16 %v9782_v38, %v9783_v25 }
0x1015   : > { %v4423_v42 = vpack.c.bf16 %v4409_v59, %v4408_v56  ;;  %v4406_v45 = vsel %vm4405_vm8, %v4389_v29, %v6190_v36  ;;  %v4407_v23 = vsel %vm4405_vm8, %v4390_v62, %v6191_v58  ;;  %v6204_v31 = vpop.permute.xlu1 %6203 }
0x1016   : > { %v4422_v55 = vpack.c.bf16 %v4407_v23, %v4406_v45  ;;  %v6199_v37 = vpop.permute.xlu0 %6198  ;;  %v6206_v20 = vunpack.i.h.bf16 %v6204_v31  ;;  %v6205_v28 = vunpack.i.l.bf16 %v6204_v31 }
0x1017   : > { %v6201_v9 = vunpack.i.h.bf16 %v6199_v37  ;;  %v6200_v47 = vunpack.i.l.bf16 %v6199_v37 }
0x1018   : > { %6050 = vmatprep.mubr.msk.bf16.mxu0 %vm540_vm3, %v4422_v55  ;;  %v4379_v19 = vsel %vm1839_vm6, %v9775_v35, %v6206_v20  ;;  %v4378_v34 = vsel %vm1839_vm6, %v9776_v18, %v6205_v28 }
0x1019   : > { %v6214_v44 = vpop.permute.xlu1 %6213  ;;  %6051 = vmatmul.mubr.msk.bf16.vlgmr.msra.gmra.mrb[64].mxu0 %vm540_vm3, %v4423_v42  ;;  %v4377_v48 = vsel %vm1839_vm6, %v9777_v54, %v6201_v9  ;;  %v4376_v24 = vsel %vm1839_vm6, %v9778_v61, %v6200_v47  ;;  %v9786_v47 = vld [vmem:[#allocation10_spill] sm:$0xff] }
0x101a   : > { %v6209_v7 = vpop.permute.xlu0 %6208  ;;  %v6216_v21 = vunpack.i.h.bf16 %v6214_v44  ;;  %v6215_v22 = vunpack.i.l.bf16 %v6214_v44  ;;  %v9785_v44 = vld [vmem:[#allocation7_spill] sm:$0xff] }
0x101b   : > { %v6211_v5 = vunpack.i.h.bf16 %v6209_v7  ;;  %v6210_v12 = vunpack.i.l.bf16 %v6209_v7 }
0x101c   : > { %v4395_v6 = vsel %vm4388_vm7, %v4378_v34, %v6215_v22  ;;  %v4396_v4 = vsel %vm4388_vm7, %v4379_v19, %v6216_v21  ;;  %v9787_v21 = vld [vmem:[#allocation18_spill] sm:$0xff] }
0x101d   : > { %v6224_v10 = vpop.permute.xlu1 %6223  ;;  %v4393_v33 = vsel %vm4388_vm7, %v4376_v24, %v6210_v12  ;;  %v4394_v0 = vsel %vm4388_vm7, %v4377_v48, %v6211_v5  ;;  %v9788_v12 = vld [vmem:[#allocation11_spill] sm:$0xff] }
0x101e   : > { %v6226_v8 = vunpack.i.h.bf16 %v6224_v10  ;;  %v6225_v53 = vunpack.i.l.bf16 %v6224_v10  ;;  %v6219_v26 = vpop.permute.xlu0 %6218 }
0x101f   : > { %v6221_v15 = vunpack.i.h.bf16 %v6219_v26  ;;  %v6220_v60 = vunpack.i.l.bf16 %v6219_v26 }
0x1020   : > { %v4412_v11 = vsel %vm4405_vm8, %v4395_v6, %v6225_v53  ;;  %v4413_v27 = vsel %vm4405_vm8, %v4396_v4, %v6226_v8 }
0x1021   : > { %v4425_v32 = vpack.c.bf16 %v4413_v27, %v4412_v11  ;;  %v4410_v1 = vsel %vm4405_vm8, %v4393_v33, %v6220_v60  ;;  %v4411_v49 = vsel %vm4405_vm8, %v4394_v0, %v6221_v15  ;;  %v6234_v58 = vpop.permute.xlu1 %6233 }
0x1022   : > { %v4424_v43 = vpack.c.bf16 %v4411_v49, %v4410_v1  ;;  %v6229_v36 = vpop.permute.xlu0 %6228  ;;  %v6236_v56 = vunpack.i.h.bf16 %v6234_v58  ;;  %v6235_v59 = vunpack.i.l.bf16 %v6234_v58 }
0x1023   : > { %v6231_v42 = vunpack.i.h.bf16 %v6229_v36  ;;  %v6230_v23 = vunpack.i.l.bf16 %v6229_v36 }
0x1024   : > { %6054 = vmatprep.mubr.msk.bf16.mxu0 %vm540_vm3, %v4424_v43  ;;  %v4383_v9 = vsel %vm1839_vm6, %v9785_v44, %v6236_v56  ;;  %v4382_v7 = vsel %vm1839_vm6, %v9786_v47, %v6235_v59 }
0x1025   : > { %6055 = vmatmul.mubr.msk.bf16.gmra.mrb[68].mxu0 %vm540_vm3, %v4425_v32  ;;  %v6244_v29 = vpop.permute.xlu1 %6243  ;;  %v4381_v22 = vsel %vm1839_vm6, %v9787_v21, %v6231_v42  ;;  %v4380_v35 = vsel %vm1839_vm6, %v9788_v12, %v6230_v23  ;;  %v9172_v23 = vld [vmem:[%s6791_s17] sm:$0x3f] }
0x1026   : > { %v6239_v62 = vpop.permute.xlu0 %6238  ;;  %v6245_v31 = vunpack.i.l.bf16 %v6244_v29  ;;  %v6246_v37 = vunpack.i.h.bf16 %v6244_v29 }
0x1027   : > { %v6240_v20 = vunpack.i.l.bf16 %v6239_v62  ;;  %v6241_v28 = vunpack.i.h.bf16 %v6239_v62 }
0x1028   : > { %v4399_v19 = vsel %vm4388_vm7, %v4382_v7, %v6245_v31  ;;  %v4400_v54 = vsel %vm4388_vm7, %v4383_v9, %v6246_v37  ;;  %v9793_v31 = vld [vmem:[#allocation5_spill] sm:$0xff]  ;;  %v6656_v7 = vld [vmem:[#allocation2] sm:$0xff] }
0x1029   : > { %v6254_v45 = vpop.permute.xlu1 %6253  ;;  %v4397_v48 = vsel %vm4388_vm7, %v4380_v35, %v6240_v20  ;;  %v4398_v8 = vsel %vm4388_vm7, %v4381_v22, %v6241_v28 }
0x102a   : > { %v6249_v55 = vpop.permute.xlu0 %6248  ;;  %v6256_v53 = vunpack.i.h.bf16 %v6254_v45  ;;  %v6255_v4 = vunpack.i.l.bf16 %v6254_v45 }
0x102b   : > { %v6251_v11 = vunpack.i.h.bf16 %v6249_v55  ;;  %v6250_v27 = vunpack.i.l.bf16 %v6249_v55  ;;  %v9176_v55 = vrot.slane %v9172_v23, %v9793_v31 }
0x102d   : > { %v4385_v13 = vsel %vm1839_vm6, %v9791_v39, %v6251_v11 }
0x105f   : > { %v6040_v3 = vpop.f32.mrb[72].mxu1 }
0x1060   : > { %v4149_v16 = vpop.f32.mrb[73].mxu1 }
0x1061   : > { %v6041_v14 = vpop.f32.mrb[74].mxu1 }
0x1062   : > { %v6257_v46 = vpack.i.bf16 %v6041_v14, %v6040_v3  ;;  %v4152_v40 = vpop.f32.mrb[75].mxu1  ;;  %v9789_v14 = vld [vmem:[#allocation21_spill] sm:$0xff] }
0x1063   : > { %v6262_v51 = vpack.i.bf16 %v4152_v40, %v4149_v16  ;;  %v9790_v40 = vld [vmem:[#allocation19_spill] sm:$0xff] }
0x1064   : > { %6258 = vrot.lane.b32.xlu1 %v6257_v46, %s6696_s27  ;;  %v4387_v46 = vsel %vm1839_vm6, %v9789_v14, %v6256_v53 }
0x1065   : > { %6263 = vrot.lane.b32.xlu0 %v6262_v51, %s6696_s27  ;;  %v4386_v51 = vsel %vm1839_vm6, %v9790_v40, %v6255_v4 }
0x1067   : > { %v6044_v52 = vpop.f32.mrb[76].mxu1 }
0x1068   : > { %6273 = vrot.lane.b32.xlu1 %v9781_v2, %s6695_s22  ;;  %v4165_v30 = vpop.f32.mrb[77].mxu1  ;;  %v9792_v2 = vld [vmem:[#allocation20_spill] sm:$0xff] }
0x1069   : > { %6268 = vrot.lane.b32.xlu0 %v9784_v63, %s6695_s22  ;;  %v6045_v50 = vpop.f32.mrb[78].mxu1 }
0x106a   : > { %v6282_v57 = vpack.i.bf16 %v6045_v50, %v6044_v52  ;;  %v4168_v17 = vpop.f32.mrb[79].mxu1 }
0x106b   : > { %v6277_v41 = vpack.i.bf16 %v4168_v17, %v4165_v30  ;;  %v4384_v30 = vsel %vm1839_vm6, %v9792_v2, %v6250_v27  ;;  %v6661_v27 = vld [vmem:[#allocation2 + $0x30] sm:$0xff] }
0x106c   : > { %6283 = vrot.lane.b32.xlu1 %v6282_v57, %s6696_s27 }
0x106d   : > { %6278 = vrot.lane.b32.xlu0 %v6277_v41, %s6696_s27 }
0x10d6   : > { %v6259_v5 = vpop.permute.xlu1 %6258 }
0x10d7   : > { %v6261_v18 = vunpack.i.h.bf16 %v6259_v5  ;;  %v6260_v34 = vunpack.i.l.bf16 %v6259_v5  ;;  %v6264_v10 = vpop.permute.xlu0 %6263  ;;  %v6657_v5 = vld [vmem:[#allocation2 + $0x10] sm:$0xff] }
0x10d8   : > { %v6266_v61 = vunpack.i.h.bf16 %v6264_v10  ;;  %v6265_v24 = vunpack.i.l.bf16 %v6264_v10 }
0x10d9   : > { %v4416_v26 = vsel %vm4405_vm8, %v4399_v19, %v6260_v34  ;;  %v4417_v6 = vsel %vm4405_vm8, %v4400_v54, %v6261_v18  ;;  %v6658_v19 = vld [vmem:[#allocation2 + $0x8] sm:$0xff]  ;;  %v6659_v54 = vld [vmem:[#allocation2 + $0x18] sm:$0xff] }
0x10da   : > { %v4427_v15 = vpack.c.bf16 %v4417_v6, %v4416_v26  ;;  %v4415_v60 = vsel %vm4405_vm8, %v4398_v8, %v6266_v61  ;;  %v4414_v33 = vsel %vm4405_vm8, %v4397_v48, %v6265_v24  ;;  %v6274_v0 = vpop.permute.xlu1 %6273 }
0x10db   : > { %v4426_v32 = vpack.c.bf16 %v4415_v60, %v4414_v33  ;;  %v6269_v1 = vpop.permute.xlu0 %6268  ;;  %v6276_v49 = vunpack.i.h.bf16 %v6274_v0  ;;  %v6275_v43 = vunpack.i.l.bf16 %v6274_v0  ;;  %v6660_v60 = vld [vmem:[#allocation2 + $0x20] sm:$0xff] }
0x10dc   : > { %v6271_v3 = vunpack.i.h.bf16 %v6269_v1  ;;  %v6270_v16 = vunpack.i.l.bf16 %v6269_v1  ;;  %v6662_v1 = vld [vmem:[#allocation2 + $0x28] sm:$0xff] }
0x10dd   : > { %6058 = vmatprep.mubr.msk.bf16.mxu0 %vm540_vm3, %v4426_v32  ;;  %v4403_v50 = vsel %vm4388_vm7, %v4386_v51, %v6275_v43  ;;  %v4404_v57 = vsel %vm4388_vm7, %v4387_v46, %v6276_v49 }
0x10de   : > { %v6284_v52 = vpop.permute.xlu1 %6283  ;;  %6059 = vmatmul.mubr.msk.bf16.gmra.mrb[72].mxu0 %vm540_vm3, %v4427_v15  ;;  %v4402_v58 = vsel %vm4388_vm7, %v4385_v13, %v6271_v3  ;;  %v4401_v36 = vsel %vm4388_vm7, %v4384_v30, %v6270_v16  ;;  %v6663_v3 = vld [vmem:[#allocation2 + $0x38] sm:$0xff] }
0x10df   : > { %v6286_v38 = vunpack.i.h.bf16 %v6284_v52  ;;  %v6285_v25 = vunpack.i.l.bf16 %v6284_v52  ;;  %v6279_v63 = vpop.permute.xlu0 %6278 }
0x10e0   : > { %v6281_v17 = vunpack.i.h.bf16 %v6279_v63  ;;  %v6280_v41 = vunpack.i.l.bf16 %v6279_v63  ;;  %v6664_v63 = vld [vmem:[#allocation2 + $0x40] sm:$0xff] }
0x10e1   : > { %v4420_v29 = vsel %vm4405_vm8, %v4403_v50, %v6285_v25  ;;  %v4421_v62 = vsel %vm4405_vm8, %v4404_v57, %v6286_v38 }
0x10e2   : > { %v4429_v56 = vpack.c.bf16 %v4421_v62, %v4420_v29  ;;  %v4419_v59 = vsel %vm4405_vm8, %v4402_v58, %v6281_v17  ;;  %v4418_v42 = vsel %vm4405_vm8, %v4401_v36, %v6280_v41  ;;  %v6665_v41 = vld [vmem:[#allocation2 + $0x50] sm:$0xff]  ;;  %v6666_v36 = vld [vmem:[#allocation2 + $0x48] sm:$0xff] }
0x10e3   : > { %v4428_v45 = vpack.c.bf16 %v4419_v59, %v4418_v42  ;;  %v6667_v42 = vld [vmem:[#allocation2 + $0x58] sm:$0xff] }
0x10e5   : > { %6062 = vmatprep.mubr.msk.bf16.mxu0 %vm540_vm3, %v4428_v45 }
0x10e6   : > { %6063 = vmatmul.mubr.msk.bf16.gmra.mrb[76].mxu0 %vm540_vm3, %v4429_v56 }
0x10ec   : > { %v6052_v37 = vpop.f32.mrb[64].mxu0 }
0x10ed   : > { %v4508_v20 = vpop.f32.mrb[65].mxu0  ;;  %v4517_v28 = vadd.f32 %v6052_v37, %v9176_v55 }
0x10ee   : > { %v4509_v44 = vadd.f32 %v4508_v20, %v9176_v55  ;;  %v6053_v9 = vpop.f32.mrb[66].mxu0 }
0x10ef   : > { %v4511_v47 = vpop.f32.mrb[67].mxu0  ;;  %v9183_v12 = vadd.f32 %v6657_v5, %v4517_v28  ;;  %v4520_v35 = vadd.f32 %v6053_v9, %v9176_v55 }
0x10f0   : > { %v9180_v21 = vadd.f32 %v6656_v7, %v4509_v44  ;;  %v4512_v22 = vadd.f32 %v4511_v47, %v9176_v55 }
0x10f1   : > { %v9192_v48 = vadd.f32 %v6659_v54, %v4520_v35  ;;  %v4593_v61 = vsel %vm540_vm3, %v9183_v12, 0.0  ;;  %v6668_v35 = vld [vmem:[#allocation2 + $0x60] sm:$0xff] }
0x10f2   : > { %v9186_v18 = vadd.f32 %v6658_v19, %v4512_v22  ;;  %v4587_v34 = vsel %vm540_vm3, %v9180_v21, 0.0 }
0x10f3   : > { %4588 = vadd.xlane.f32.xlu0 %v4587_v34  ;;  %v4596_v4 = vsel %vm540_vm3, %v9192_v48, 0.0 }
0x10f4   : > { %v4590_v10 = vsel %vm540_vm3, %v9186_v18, 0.0 }
0x10f5   : > { %4591 = vadd.xlane.f32.xlu1 %v4590_v10 }
0x10f7   : > { %4594 = vadd.xlane.f32.xlu0 %v4593_v61 }
0x10f8   : > { %v6056_v24 = vpop.f32.mrb[68].mxu0 }
0x10f9   : > { %v4524_v8 = vpop.f32.mrb[69].mxu0  ;;  %v4533_v53 = vadd.f32 %v6056_v24, %v9176_v55 }
0x10fa   : > { %v4525_v26 = vadd.f32 %v4524_v8, %v9176_v55  ;;  %v6057_v6 = vpop.f32.mrb[70].mxu0 }
0x10fb   : > { %v4527_v15 = vpop.f32.mrb[71].mxu0  ;;  %4597 = vadd.xlane.f32.xlu0 %v4596_v4  ;;  %v4536_v0 = vadd.f32 %v6057_v6, %v9176_v55  ;;  %v9204_v32 = vadd.f32 %v6661_v27, %v4533_v53  ;;  %v6669_v53 = vld [vmem:[#allocation2 + $0x70] sm:$0xff]  ;;  %v6670_v6 = vld [vmem:[#allocation2 + $0x68] sm:$0xff] }
0x10fc   : > { %v9200_v33 = vadd.f32 %v6660_v60, %v4525_v26  ;;  %v4528_v11 = vadd.f32 %v4527_v15, %v9176_v55 }
0x10fd   : > { %v9210_v16 = vadd.f32 %v6663_v3, %v4536_v0  ;;  %v4605_v46 = vsel %vm540_vm3, %v9204_v32, 0.0 }
0x10fe   : > { %v9206_v49 = vadd.f32 %v6662_v1, %v4528_v11  ;;  %v4599_v43 = vsel %vm540_vm3, %v9200_v33, 0.0  ;;  %v6671_v11 = vld [vmem:[#allocation2 + $0x78] sm:$0xff] }
0x10ff   : > { %4600 = vadd.xlane.f32.xlu0 %v4599_v43  ;;  %v4608_v40 = vsel %vm540_vm3, %v9210_v16, 0.0 }
0x1100   : > { %v4602_v14 = vsel %vm540_vm3, %v9206_v49, 0.0 }
0x1101   : > { %4603 = vadd.xlane.f32.xlu1 %v4602_v14 }
0x1103   : > { %4606 = vadd.xlane.f32.xlu0 %v4605_v46 }
0x1105   : > { %4609 = vadd.xlane.f32.xlu1 %v4608_v40 }
0x1180   : > { %v4589_v51 = vpop.xlane.xlu0 %4588 }
0x1181   : > { %v4635_v20 = vmul.f32 0.03125, %v4589_v51 }
0x1182   : > { %v4592_v59 = vpop.xlane.xlu1 %4591 }
0x1183   : > { %v4636_v22 = vmul.f32 0.03125, %v4592_v59  ;;  %v9245_v61 = vsub.f32 %v9180_v21, %v4635_v20 }
0x1184   : > { %v4595_v39 = vpop.xlane.xlu0 %4594 }
0x1185   : > { %v4637_v8 = vmul.f32 0.03125, %v4595_v39  ;;  %v4667_v46 = vmul.f32 %v9245_v61, %v9245_v61 }
0x1187   : > { %v9261_v43 = vsub.f32 %v9183_v12, %v4637_v8 }
0x1188   : > { %v4598_v56 = vpop.xlane.xlu0 %4597 }
0x1189   : > { %v4638_v0 = vmul.f32 0.03125, %v4598_v56 }
0x118b   : > { %v9268_v51 = vsub.f32 %v9192_v48, %v4638_v0 }
0x118c   : > { %v4601_v24 = vpop.xlane.xlu0 %4600 }
0x118d   : > { %v4639_v3 = vmul.f32 0.03125, %v4601_v24 }
0x118e   : > { %v4604_v60 = vpop.xlane.xlu1 %4603 }
0x1190   : > { %v4607_v40 = vpop.xlane.xlu0 %4606 }
0x11b1   : > { %v6060_v52 = vpop.f32.mrb[72].mxu0 }
0x11b2   : > { %v4540_v13 = vpop.f32.mrb[73].mxu0  ;;  %v4549_v2 = vadd.f32 %v6060_v52, %v9176_v55  ;;  %v4640_v52 = vmul.f32 0.03125, %v4604_v60 }
0x11b3   : > { %v4541_v30 = vadd.f32 %v4540_v13, %v9176_v55  ;;  %v6061_v38 = vpop.f32.mrb[74].mxu0 }
0x11b4   : > { %v4543_v25 = vpop.f32.mrb[75].mxu0  ;;  %v4552_v57 = vadd.f32 %v6061_v38, %v9176_v55  ;;  %v9224_v58 = vadd.f32 %v6665_v41, %v4549_v2  ;;  %v4610_v2 = vpop.xlane.xlu1 %4609  ;;  %v4641_v38 = vmul.f32 0.03125, %v4607_v40 }
0x11b5   : > { %v9220_v50 = vadd.f32 %v6664_v63, %v4541_v30  ;;  %v4544_v17 = vadd.f32 %v4543_v25, %v9176_v55  ;;  %v9275_v30 = vsub.f32 %v9200_v33, %v4639_v3  ;;  %v4683_v25 = vsel %vm540_vm3, %v4667_v46, 0.0 }
0x11b6   : > { %v9230_v45 = vadd.f32 %v6667_v42, %v4552_v57  ;;  %v4617_v7 = vsel %vm540_vm3, %v9224_v58, 0.0  ;;  %v4669_v63 = vmul.f32 %v9261_v43, %v9261_v43  ;;  %v9281_v57 = vsub.f32 %v9206_v49, %v4640_v52 }
0x11b7   : > { %v9226_v29 = vadd.f32 %v6666_v36, %v4544_v17  ;;  %v4611_v62 = vsel %vm540_vm3, %v9220_v50, 0.0  ;;  %v4642_v17 = vmul.f32 0.03125, %v4610_v2  ;;  %v4670_v36 = vmul.f32 %v9268_v51, %v9268_v51 }
0x11b8   : > { %4612 = vadd.xlane.f32.xlu0 %v4611_v62  ;;  %v4620_v54 = vsel %vm540_vm3, %v9230_v45, 0.0  ;;  %v9287_v62 = vsub.f32 %v9204_v32, %v4641_v38  ;;  %v4689_v56 = vsel %vm540_vm3, %v4669_v63, 0.0  ;;  %v4671_v59 = vmul.f32 %v9275_v30, %v9275_v30 }
0x11b9   : > { %v6064_v31 = vpop.f32.mrb[76].mxu0  ;;  %v4614_v37 = vsel %vm540_vm3, %v9226_v29, 0.0  ;;  %v9293_v42 = vsub.f32 %v9210_v16, %v4642_v17 }
0x11ba   : > { %v4556_v28 = vpop.f32.mrb[77].mxu0  ;;  %4615 = vadd.xlane.f32.xlu1 %v4614_v37  ;;  %v4565_v44 = vadd.f32 %v6064_v31, %v9176_v55  ;;  %v4692_v31 = vsel %vm540_vm3, %v4670_v36, 0.0  ;;  %v4672_v37 = vmul.f32 %v9281_v57, %v9281_v57  ;;  %v4695_v20 = vsel %vm540_vm3, %v4671_v59, 0.0 }
0x11bb   : > { %v4557_v9 = vadd.f32 %v4556_v28, %v9176_v55  ;;  %v6065_v47 = vpop.f32.mrb[78].mxu0  ;;  %v4673_v28 = vmul.f32 %v9287_v62, %v9287_v62 }
0x11bc   : > { %v4559_v5 = vpop.f32.mrb[79].mxu0  ;;  %4618 = vadd.xlane.f32.xlu0 %v4617_v7  ;;  %v4568_v34 = vadd.f32 %v6065_v47, %v9176_v55  ;;  %v9247_v26 = vadd.f32 %v6669_v53, %v4565_v44  ;;  %v4698_v44 = vsel %vm540_vm3, %v4672_v37, 0.0 }
0x11bd   : > { %v9238_v19 = vadd.f32 %v6668_v35, %v4557_v9  ;;  %v4560_v10 = vadd.f32 %v4559_v5, %v9176_v55  ;;  %v9254_v55 = vsub.f32 %v9186_v18, %v4636_v22  ;;  %v4674_v9 = vmul.f32 %v9293_v42, %v9293_v42  ;;  %v6295_v22 = vld [vmem:[%s6786_s29] sm:$0xff]   ;;  %v6296_v5 = vld [vmem:[%s6786_s29 + $0x8] sm:$0xff]  }
0x11be   : > { %4621 = vadd.xlane.f32.xlu1 %v4620_v54  ;;  %v9256_v27 = vadd.f32 %v6671_v11, %v4568_v34  ;;  %v4629_v14 = vsel %vm540_vm3, %v9247_v26, 0.0  ;;  %v4701_v47 = vsel %vm540_vm3, %v4673_v28, 0.0  ;;  %6066 = vmatprep.subr.bf16.mxu1 %v6295_v22 }
0x11bf   : > { %v9249_v4 = vadd.f32 %v6670_v6, %v4560_v10  ;;  %v4623_v15 = vsel %vm540_vm3, %v9238_v19, 0.0  ;;  %v4668_v13 = vmul.f32 %v9254_v55, %v9254_v55  ;;  %v4704_v7 = vsel %vm540_vm3, %v4674_v9, 0.0  ;;  %6067 = vmatpush3.bf16.msra.mxu1 %v6295_v22 }
0x11c0   : > { %4624 = vadd.xlane.f32.xlu0 %v4623_v15  ;;  %v4632_v39 = vsel %vm540_vm3, %v9256_v27, 0.0  ;;  %6068 = vmatprep.subr.bf16.mxu1 %v6296_v5 }
0x11c1   : > { %v4626_v1 = vsel %vm540_vm3, %v9249_v4, 0.0  ;;  %v4686_v41 = vsel %vm540_vm3, %v4668_v13, 0.0 }
0x11c2   : > { %4627 = vadd.xlane.f32.xlu1 %v4626_v1 }
0x11c3   : > { %6069 = vmatpush3.bf16.msra.mxu1 %v6296_v5 }
0x11c4   : > { %4630 = vadd.xlane.f32.xlu0 %v4629_v14 }
0x11c6   : > { %4633 = vadd.xlane.f32.xlu1 %v4632_v39 }
0x11c8   : > { %4684 = vadd.xlane.f32.xlu0 %v4683_v25 }
0x11ca   : > { %4687 = vadd.xlane.f32.xlu1 %v4686_v41 }
0x11cc   : > { %4690 = vadd.xlane.f32.xlu0 %v4689_v56 }
0x11ce   : > { %4693 = vadd.xlane.f32.xlu1 %v4692_v31 }
0x11d0   : > { %4696 = vadd.xlane.f32.xlu0 %v4695_v20 }
0x11d2   : > { %4699 = vadd.xlane.f32.xlu1 %v4698_v44 }
0x11d4   : > { %4702 = vadd.xlane.f32.xlu0 %v4701_v47 }
0x11d6   : > { %4705 = vadd.xlane.f32.xlu1 %v4704_v7 }
0x1245   : > { %v4613_v35 = vpop.xlane.xlu0 %4612 }
0x1246   : > { %v4643_v34 = vmul.f32 0.03125, %v4613_v35 }
0x1247   : > { %v4616_v10 = vpop.xlane.xlu1 %4615 }
0x1248   : > { %v9309_v54 = vsub.f32 %v9220_v50, %v4643_v34  ;;  %v4644_v24 = vmul.f32 0.03125, %v4616_v10 }
0x1249   : > { %v4619_v8 = vpop.xlane.xlu0 %4618 }
0x124a   : > { %v9312_v53 = vsub.f32 %v9226_v29, %v4644_v24  ;;  %v4645_v6 = vmul.f32 0.03125, %v4619_v8  ;;  %v4675_v15 = vmul.f32 %v9309_v54, %v9309_v54 }
0x124b   : > { %v4622_v60 = vpop.xlane.xlu1 %4621 }
0x124c   : > { %v9317_v0 = vsub.f32 %v9224_v58, %v4645_v6  ;;  %v4646_v11 = vmul.f32 0.03125, %v4622_v60  ;;  %v4707_v1 = vsel %vm540_vm3, %v4675_v15, 0.0  ;;  %v4676_v3 = vmul.f32 %v9312_v53, %v9312_v53 }
0x124d   : > { %4708 = vadd.xlane.f32.xlu0 %v4707_v1  ;;  %v4625_v14 = vpop.xlane.xlu0 %4624 }
0x124e   : > { %v9323_v46 = vsub.f32 %v9230_v45, %v4646_v11  ;;  %v4647_v40 = vmul.f32 0.03125, %v4625_v14  ;;  %v4710_v52 = vsel %vm540_vm3, %v4676_v3, 0.0  ;;  %v4677_v39 = vmul.f32 %v9317_v0, %v9317_v0 }
0x124f   : > { %v4628_v13 = vpop.xlane.xlu1 %4627  ;;  %4711 = vadd.xlane.f32.xlu1 %v4710_v52 }
0x1250   : > { %v9329_v2 = vsub.f32 %v9238_v19, %v4647_v40  ;;  %v4648_v38 = vmul.f32 0.03125, %v4628_v13  ;;  %v4713_v25 = vsel %vm540_vm3, %v4677_v39, 0.0  ;;  %v4678_v63 = vmul.f32 %v9323_v46, %v9323_v46 }
0x1251   : > { %4714 = vadd.xlane.f32.xlu0 %v4713_v25  ;;  %v4631_v17 = vpop.xlane.xlu0 %4630 }
0x1252   : > { %v9335_v41 = vsub.f32 %v9249_v4, %v4648_v38  ;;  %v4649_v36 = vmul.f32 0.03125, %v4631_v17  ;;  %v4716_v56 = vsel %vm540_vm3, %v4678_v63, 0.0  ;;  %v4679_v59 = vmul.f32 %v9329_v2, %v9329_v2 }
0x1253   : > { %v4634_v31 = vpop.xlane.xlu1 %4633  ;;  %4717 = vadd.xlane.f32.xlu1 %v4716_v56  ;;  %v9794_v56 = vld [vmem:[#allocation6_spill] sm:$0xff] }
0x1254   : > { %v9341_v37 = vsub.f32 %v9247_v26, %v4649_v36  ;;  %v4650_v20 = vmul.f32 0.03125, %v4634_v31  ;;  %v4719_v28 = vsel %vm540_vm3, %v4679_v59, 0.0  ;;  %v4680_v44 = vmul.f32 %v9335_v41, %v9335_v41 }
0x1255   : > { %4720 = vadd.xlane.f32.xlu0 %v4719_v28  ;;  %v4685_v9 = vpop.xlane.xlu0 %4684  ;;  %v9358_v59 = vrot.slane %v9172_v23, %v9794_v56 }
0x1256   : > { %v9347_v47 = vsub.f32 %v9256_v27, %v4650_v20  ;;  %v4731_v7 = vmul.f32 0.03125, %v4685_v9  ;;  %v4722_v22 = vsel %vm540_vm3, %v4680_v44, 0.0  ;;  %v4681_v5 = vmul.f32 %v9341_v37, %v9341_v37 }
0x1257   : > { %v4688_v35 = vpop.xlane.xlu1 %4687  ;;  %4723 = vadd.xlane.f32.xlu1 %v4722_v22 }
0x1258   : > { %v4747_v34 = vadd.f32 1e-05, %v4731_v7  ;;  %v4732_v10 = vmul.f32 0.03125, %v4688_v35  ;;  %v4725_v24 = vsel %vm540_vm3, %v4681_v5, 0.0  ;;  %v4682_v8 = vmul.f32 %v9347_v47, %v9347_v47  ;;  %v9795_v35 = vld [vmem:[#allocation4_spill] sm:$0xff] }
0x1259   : > { %4726 = vadd.xlane.f32.xlu0 %v4725_v24  ;;  %v4691_v6 = vpop.xlane.xlu0 %4690 }
0x125a   : > { %6591 = vrsqrt.f32 %v4747_v34  ;;  %v4748_v15 = vadd.f32 1e-05, %v4732_v10  ;;  %v4733_v60 = vmul.f32 0.03125, %v4691_v6  ;;  %v4728_v11 = vsel %vm540_vm3, %v4682_v8, 0.0 }
0x125b   : > { %4729 = vadd.xlane.f32.xlu1 %v4728_v11  ;;  %v4694_v1 = vpop.xlane.xlu1 %4693  ;;  %v9796_v34 = vsub.s32 4, %v9795_v35 }
0x125c   : > { %6593 = vrsqrt.f32 %v4748_v15  ;;  %v4749_v3 = vadd.f32 1e-05, %v4733_v60  ;;  %v4734_v14 = vmul.f32 0.03125, %v4694_v1 }
0x125d   : > { %v4697_v40 = vpop.xlane.xlu0 %4696  ;;  %v9365_v10 = vrot.slane %v9172_v23, %v9796_v34 }
0x125e   : > { %6595 = vrsqrt.f32 %v4749_v3  ;;  %v4750_v52 = vadd.f32 1e-05, %v4734_v14  ;;  %v4735_v39 = vmul.f32 0.03125, %v4697_v40 }
0x125f   : > { %v4700_v13 = vpop.xlane.xlu1 %4699 }
0x1260   : > { %6597 = vrsqrt.f32 %v4750_v52  ;;  %v4751_v38 = vadd.f32 1e-05, %v4735_v39  ;;  %v4736_v25 = vmul.f32 0.03125, %v4700_v13 }
0x1261   : > { %v4703_v63 = vpop.xlane.xlu0 %4702 }
0x1262   : > { %6599 = vrsqrt.f32 %v4751_v38  ;;  %v4752_v17 = vadd.f32 1e-05, %v4736_v25  ;;  %v4737_v36 = vmul.f32 0.03125, %v4703_v63 }
0x1263   : > { %v4706_v31 = vpop.xlane.xlu1 %4705 }
0x1264   : > { %v6592_v20 = vpop.eup %6591  ;;  %6601 = vrsqrt.f32 %v4752_v17  ;;  %v4753_v28 = vadd.f32 1e-05, %v4737_v36  ;;  %v4738_v44 = vmul.f32 0.03125, %v4706_v31 }
0x1265   : > { %v4779_v9 = vmul.f32 %v6592_v20, %v9245_v61 }
0x1266   : > { %v6594_v7 = vpop.eup %6593  ;;  %6603 = vrsqrt.f32 %v4753_v28  ;;  %v4754_v22 = vadd.f32 1e-05, %v4738_v44 }
0x1267   : > { %v4780_v5 = vmul.f32 %v6594_v7, %v9254_v55  ;;  %v4799_v24 = vmul.f32 %v9358_v59, %v4779_v9 }
0x1268   : > { %v6596_v8 = vpop.eup %6595  ;;  %6605 = vrsqrt.f32 %v4754_v22 }
0x1269   : > { %v4781_v6 = vmul.f32 %v6596_v8, %v9261_v43  ;;  %v4800_v15 = vmul.f32 %v9358_v59, %v4780_v5  ;;  %v4819_v55 = vadd.f32 %v9365_v10, %v4799_v24 }
0x126a   : > { %v6598_v60 = vpop.eup %6597 }
0x126b   : > { %v4801_v61 = vmul.f32 %v9358_v59, %v4781_v6  ;;  %v4782_v11 = vmul.f32 %v6598_v60, %v9268_v51  ;;  %v4820_v1 = vadd.f32 %v9365_v10, %v4800_v15 }
0x126c   : > { %v6600_v3 = vpop.eup %6599 }
0x126d   : > { %v4802_v23 = vmul.f32 %v9358_v59, %v4782_v11  ;;  %v4783_v14 = vmul.f32 %v6600_v3, %v9275_v30  ;;  %v4835_v40 = vpack.c.bf16 %v4820_v1, %v4819_v55  ;;  %v4821_v43 = vadd.f32 %v9365_v10, %v4801_v61 }
0x126e   : > { %v6602_v52 = vpop.eup %6601 }
0x126f   : > { %v4822_v39 = vadd.f32 %v9365_v10, %v4802_v23  ;;  %v4784_v13 = vmul.f32 %v6602_v52, %v9281_v57  ;;  %6070 = vmatprep.mubr.msk.bf16.mxu1 %vm540_vm3, %v4835_v40  ;;  %v4803_v51 = vmul.f32 %v9358_v59, %v4783_v14 }
0x1270   : > { %v6604_v38 = vpop.eup %6603 }
0x1271   : > { %v4785_v25 = vmul.f32 %v6604_v38, %v9287_v62  ;;  %v4836_v63 = vpack.c.bf16 %v4822_v39, %v4821_v43  ;;  %v4804_v17 = vmul.f32 %v9358_v59, %v4784_v13  ;;  %v4823_v56 = vadd.f32 %v9365_v10, %v4803_v51 }
0x1272   : > { %v6606_v36 = vpop.eup %6605 }
0x1273   : > { %v4786_v30 = vmul.f32 %v6606_v36, %v9293_v42  ;;  %6071 = vmatmul.mubr.msk.bf16.vlgmr.msra.gmra.mrb[80].mxu1 %vm540_vm3, %v4836_v63  ;;  %v4824_v31 = vadd.f32 %v9365_v10, %v4804_v17  ;;  %v4805_v57 = vmul.f32 %v9358_v59, %v4785_v25 }
0x1275   : > { %v4837_v20 = vpack.c.bf16 %v4824_v31, %v4823_v56  ;;  %v4806_v28 = vmul.f32 %v9358_v59, %v4786_v30  ;;  %v4825_v62 = vadd.f32 %v9365_v10, %v4805_v57  ;;  %v6297_v31 = vld [vmem:[%s6801_s24] sm:$0xff]   ;;  %v6298_v57 = vld [vmem:[%s6801_s24 + $0x8] sm:$0xff]  }
0x1276   : > { %6086 = vmatprep.subr.bf16.mxu0 %v6297_v31 }
0x1277   : > { %6074 = vmatprep.mubr.msk.bf16.mxu1 %vm540_vm3, %v4837_v20  ;;  %v4826_v44 = vadd.f32 %v9365_v10, %v4806_v28  ;;  %6087 = vmatpush3.bf16.msra.mxu0 %v6297_v31 }
0x1278   : > { %6088 = vmatprep.subr.bf16.mxu0 %v6298_v57 }
0x1279   : > { %v4838_v9 = vpack.c.bf16 %v4826_v44, %v4825_v62 }
0x127b   : > { %6075 = vmatmul.mubr.msk.bf16.gmra.mrb[84].mxu1 %vm540_vm3, %v4838_v9  ;;  %6089 = vmatpush3.bf16.msra.mxu0 %v6298_v57 }
0x12da   : > { %v4709_v42 = vpop.xlane.xlu0 %4708 }
0x12db   : > { %v4739_v7 = vmul.f32 0.03125, %v4709_v42 }
0x12dc   : > { %v4712_v22 = vpop.xlane.xlu1 %4711 }
0x12dd   : > { %v4755_v5 = vadd.f32 1e-05, %v4739_v7  ;;  %v4740_v34 = vmul.f32 0.03125, %v4712_v22  ;;  %v6299_v7 = vld [vmem:[%s6801_s24 + $0x10] sm:$0xff]  }
0x12de   : > { %v4715_v24 = vpop.xlane.xlu0 %4714  ;;  %6090 = vmatprep.subr.bf16.mxu0 %v6299_v7 }
0x12df   : > { %6607 = vrsqrt.f32 %v4755_v5  ;;  %v4756_v8 = vadd.f32 1e-05, %v4740_v34  ;;  %v4741_v6 = vmul.f32 0.03125, %v4715_v24  ;;  %6091 = vmatpush3.bf16.msra.mxu0 %v6299_v7 }
0x12e0   : > { %v4718_v15 = vpop.xlane.xlu1 %4717 }
0x12e1   : > { %6609 = vrsqrt.f32 %v4756_v8  ;;  %v4757_v60 = vadd.f32 1e-05, %v4741_v6  ;;  %v4742_v61 = vmul.f32 0.03125, %v4718_v15 }
0x12e2   : > { %v4721_v11 = vpop.xlane.xlu0 %4720 }
0x12e3   : > { %6611 = vrsqrt.f32 %v4757_v60  ;;  %v4758_v55 = vadd.f32 1e-05, %v4742_v61  ;;  %v4743_v1 = vmul.f32 0.03125, %v4721_v11  ;;  %v6300_v60 = vld [vmem:[%s6801_s24 + $0x18] sm:$0xff]  }
0x12e4   : > { %v4724_v3 = vpop.xlane.xlu1 %4723  ;;  %6092 = vmatprep.subr.bf16.mxu0 %v6300_v60 }
0x12e5   : > { %6613 = vrsqrt.f32 %v4758_v55  ;;  %v4759_v23 = vadd.f32 1e-05, %v4743_v1  ;;  %v4744_v14 = vmul.f32 0.03125, %v4724_v3  ;;  %6093 = vmatpush3.bf16.msra.mxu0 %v6300_v60 }
0x12e6   : > { %v4727_v40 = vpop.xlane.xlu0 %4726 }
0x12e7   : > { %6615 = vrsqrt.f32 %v4759_v23  ;;  %v4760_v52 = vadd.f32 1e-05, %v4744_v14  ;;  %v4745_v43 = vmul.f32 0.03125, %v4727_v40 }
0x12e8   : > { %v4730_v39 = vpop.xlane.xlu1 %4729 }
0x12e9   : > { %v6608_v13 = vpop.eup %6607  ;;  %6617 = vrsqrt.f32 %v4760_v52  ;;  %v4761_v51 = vadd.f32 1e-05, %v4745_v43  ;;  %v4746_v38 = vmul.f32 0.03125, %v4730_v39 }
0x12ea   : > { %v4787_v25 = vmul.f32 %v6608_v13, %v9309_v54 }
0x12eb   : > { %v6610_v63 = vpop.eup %6609  ;;  %6619 = vrsqrt.f32 %v4761_v51  ;;  %v4762_v17 = vadd.f32 1e-05, %v4746_v38 }
0x12ec   : > { %v4788_v36 = vmul.f32 %v6610_v63, %v9312_v53  ;;  %v4807_v30 = vmul.f32 %v9358_v59, %v4787_v25 }
0x12ed   : > { %v6612_v56 = vpop.eup %6611  ;;  %6621 = vrsqrt.f32 %v4762_v17 }
0x12ee   : > { %v4789_v20 = vmul.f32 %v6612_v56, %v9317_v0  ;;  %v4808_v28 = vmul.f32 %v9358_v59, %v4788_v36  ;;  %v4827_v44 = vadd.f32 %v9365_v10, %v4807_v30 }
0x12ef   : > { %v6614_v62 = vpop.eup %6613 }
0x12f0   : > { %v4790_v54 = vmul.f32 %v6614_v62, %v9323_v46  ;;  %v4828_v9 = vadd.f32 %v9365_v10, %v4808_v28  ;;  %v4809_v53 = vmul.f32 %v9358_v59, %v4789_v20 }
0x12f1   : > { %v6616_v42 = vpop.eup %6615 }
0x12f2   : > { %v4791_v22 = vmul.f32 %v6616_v42, %v9329_v2  ;;  %v4839_v0 = vpack.c.bf16 %v4828_v9, %v4827_v44  ;;  %v4810_v5 = vmul.f32 %v9358_v59, %v4790_v54  ;;  %v4829_v24 = vadd.f32 %v9365_v10, %v4809_v53 }
0x12f3   : > { %v6618_v34 = vpop.eup %6617 }
0x12f4   : > { %v4792_v46 = vmul.f32 %v6618_v34, %v9335_v41  ;;  %6078 = vmatprep.mubr.msk.bf16.mxu1 %vm540_vm3, %v4839_v0  ;;  %v4830_v8 = vadd.f32 %v9365_v10, %v4810_v5  ;;  %v4811_v6 = vmul.f32 %v9358_v59, %v4791_v22 }
0x12f5   : > { %v6620_v15 = vpop.eup %6619 }
0x12f6   : > { %v4793_v2 = vmul.f32 %v6620_v15, %v9341_v37  ;;  %v4840_v61 = vpack.c.bf16 %v4830_v8, %v4829_v24  ;;  %v4812_v11 = vmul.f32 %v9358_v59, %v4792_v46  ;;  %v4831_v1 = vadd.f32 %v9365_v10, %v4811_v6 }
0x12f7   : > { %v6622_v55 = vpop.eup %6621 }
0x12f8   : > { %v4794_v41 = vmul.f32 %v6622_v55, %v9347_v47  ;;  %6079 = vmatmul.mubr.msk.bf16.gmra.mrb[88].mxu1 %vm540_vm3, %v4840_v61  ;;  %v4832_v3 = vadd.f32 %v9365_v10, %v4812_v11  ;;  %v4813_v23 = vmul.f32 %v9358_v59, %v4793_v2  ;;  %v9430_v47 = vld [vmem:[%s437_s13] ss:$0 sm:$0xff] }
0x12fa   : > { %v4841_v14 = vpack.c.bf16 %v4832_v3, %v4831_v1  ;;  %v4814_v37 = vmul.f32 %v9358_v59, %v4794_v41  ;;  %v4833_v40 = vadd.f32 %v9365_v10, %v4813_v23 }
0x12fc   : > { %6082 = vmatprep.mubr.msk.bf16.mxu1 %vm540_vm3, %v4841_v14  ;;  %v4834_v52 = vadd.f32 %v9365_v10, %v4814_v37 }
0x12fe   : > { %v4842_v43 = vpack.c.bf16 %v4834_v52, %v4833_v40 }
0x1300   : > { %6083 = vmatmul.mubr.msk.bf16.gmra.mrb[92].mxu1 %vm540_vm3, %v4842_v43 }
0x1346   : > { %v6072_v39 = vpop.f32.mrb[80].mxu1 }
0x1347   : > { %v9433_v13 = vadd.f32 %v6072_v39, %v9430_v47  ;;  %v4924_v59 = vpop.f32.mrb[81].mxu1 }
0x1348   : > { %v9436_v51 = vadd.f32 %v9430_v47, %v4924_v59  ;;  %v6073_v38 = vpop.f32.mrb[82].mxu1 }
0x1349   : > { %v4989_v10 = vmul.f32 %v9433_v13, %v9433_v13  ;;  %v9441_v25 = vadd.f32 %v6073_v38, %v9430_v47  ;;  %v4927_v63 = vpop.f32.mrb[83].mxu1 }
0x134a   : > { %v4987_v17 = vmul.f32 %v9436_v51, %v9436_v51  ;;  %v9446_v36 = vadd.f32 %v9430_v47, %v4927_v63 }
0x134b   : > { %v5005_v30 = vmul.f32 %v4989_v10, %v9433_v13  ;;  %v4990_v56 = vmul.f32 %v9441_v25, %v9441_v25 }
0x134c   : > { %v5003_v31 = vmul.f32 %v4987_v17, %v9436_v51  ;;  %v4988_v57 = vmul.f32 %v9446_v36, %v9446_v36 }
0x134d   : > { %v5021_v20 = vmul.f32 0.044715, %v5005_v30  ;;  %v5006_v28 = vmul.f32 %v4990_v56, %v9441_v25 }
0x134e   : > { %v5019_v62 = vmul.f32 0.044715, %v5003_v31  ;;  %v5004_v54 = vmul.f32 %v4988_v57, %v9446_v36  ;;  %v6076_v44 = vpop.f32.mrb[84].mxu1 }
0x134f   : > { %v5037_v9 = vadd.f32 %v5021_v20, %v9433_v13  ;;  %v5022_v53 = vmul.f32 0.044715, %v5006_v28  ;;  %v9458_v42 = vadd.f32 %v6076_v44, %v9430_v47  ;;  %v4940_v7 = vpop.f32.mrb[85].mxu1 }
0x1350   : > { %v5035_v22 = vadd.f32 %v5019_v62, %v9436_v51  ;;  %v5020_v0 = vmul.f32 0.044715, %v5004_v54  ;;  %v9462_v5 = vadd.f32 %v9430_v47, %v4940_v7  ;;  %v6077_v34 = vpop.f32.mrb[86].mxu1 }
0x1351   : > { %v5053_v24 = vmul.f32 0.7978846, %v5037_v9  ;;  %v5038_v46 = vadd.f32 %v5022_v53, %v9441_v25  ;;  %v4993_v8 = vmul.f32 %v9458_v42, %v9458_v42  ;;  %v9468_v6 = vadd.f32 %v6077_v34, %v9430_v47  ;;  %v4943_v15 = vpop.f32.mrb[87].mxu1 }
0x1352   : > { %v5051_v60 = vmul.f32 0.7978846, %v5035_v22  ;;  %v5036_v2 = vadd.f32 %v5020_v0, %v9446_v36  ;;  %v4991_v61 = vmul.f32 %v9462_v5, %v9462_v5  ;;  %v9474_v11 = vadd.f32 %v9430_v47, %v4943_v15 }
0x1353   : > { %6623 = vtanh.f32 %v5053_v24  ;;  %v5054_v55 = vmul.f32 0.7978846, %v5038_v46  ;;  %v5009_v1 = vmul.f32 %v4993_v8, %v9458_v42  ;;  %v4994_v41 = vmul.f32 %v9468_v6, %v9468_v6 }
0x1354   : > { %6625 = vtanh.f32 %v5051_v60  ;;  %v5052_v3 = vmul.f32 0.7978846, %v5036_v2  ;;  %v5007_v23 = vmul.f32 %v4991_v61, %v9462_v5  ;;  %v4992_v14 = vmul.f32 %v9474_v11, %v9474_v11 }
0x1355   : > { %6627 = vtanh.f32 %v5054_v55  ;;  %v5025_v37 = vmul.f32 0.044715, %v5009_v1  ;;  %v5010_v40 = vmul.f32 %v4994_v41, %v9468_v6 }
0x1356   : > { %6629 = vtanh.f32 %v5052_v3  ;;  %v5023_v52 = vmul.f32 0.044715, %v5007_v23  ;;  %v5008_v43 = vmul.f32 %v4992_v14, %v9474_v11 }
0x1357   : > { %v5041_v39 = vadd.f32 %v5025_v37, %v9458_v42  ;;  %v5026_v59 = vmul.f32 0.044715, %v5010_v40 }
0x1358   : > { %v5039_v38 = vadd.f32 %v5023_v52, %v9462_v5  ;;  %v5024_v10 = vmul.f32 0.044715, %v5008_v43 }
0x1359   : > { %v5057_v63 = vmul.f32 0.7978846, %v5041_v39  ;;  %v5042_v17 = vadd.f32 %v5026_v59, %v9468_v6 }
0x135a   : > { %v5055_v30 = vmul.f32 0.7978846, %v5039_v38  ;;  %v5040_v56 = vadd.f32 %v5024_v10, %v9474_v11 }
0x135b   : > { %6631 = vtanh.f32 %v5057_v63  ;;  %v5058_v31 = vmul.f32 0.7978846, %v5042_v17 }
0x135c   : > { %6633 = vtanh.f32 %v5055_v30  ;;  %v5056_v57 = vmul.f32 0.7978846, %v5040_v56 }
0x135d   : > { %v6624_v20 = vpop.eup %6623  ;;  %6635 = vtanh.f32 %v5058_v31 }
0x135e   : > { %v6626_v28 = vpop.eup %6625  ;;  %v5085_v62 = vadd.f32 1.0, %v6624_v20  ;;  %6637 = vtanh.f32 %v5056_v57 }
0x135f   : > { %v6628_v54 = vpop.eup %6627  ;;  %v5083_v44 = vadd.f32 1.0, %v6626_v28 }
0x1360   : > { %v6630_v9 = vpop.eup %6629  ;;  %v5101_v53 = vmul.f32 0.5, %v5085_v62  ;;  %v5086_v7 = vadd.f32 1.0, %v6628_v54 }
0x1361   : > { %v5099_v22 = vmul.f32 0.5, %v5083_v44  ;;  %v5084_v0 = vadd.f32 1.0, %v6630_v9 }
0x1362   : > { %v5102_v34 = vmul.f32 0.5, %v5086_v7  ;;  %v5117_v46 = vmul.f32 %v5101_v53, %v9433_v13 }
0x1363   : > { %v5100_v24 = vmul.f32 0.5, %v5084_v0  ;;  %v5115_v60 = vmul.f32 %v5099_v22, %v9436_v51 }
0x1364   : > { %v5118_v8 = vmul.f32 %v5102_v34, %v9441_v25 }
0x1365   : > { %v6632_v15 = vpop.eup %6631  ;;  %v5116_v2 = vmul.f32 %v5100_v24, %v9446_v36 }
0x1366   : > { %v6634_v61 = vpop.eup %6633  ;;  %v5132_v55 = vpack.c.bf16 %v5118_v8, %v5117_v46  ;;  %v5089_v1 = vadd.f32 1.0, %v6632_v15 }
0x1367   : > { %v6636_v41 = vpop.eup %6635  ;;  %v5087_v3 = vadd.f32 1.0, %v6634_v61  ;;  %v5131_v23 = vpack.c.bf16 %v5116_v2, %v5115_v60 }
0x1368   : > { %v6638_v14 = vpop.eup %6637  ;;  %v5105_v37 = vmul.f32 0.5, %v5089_v1  ;;  %v5090_v40 = vadd.f32 1.0, %v6636_v41 }
0x1369   : > { %v5103_v52 = vmul.f32 0.5, %v5087_v3  ;;  %v5088_v43 = vadd.f32 1.0, %v6638_v14  ;;  %6094 = vmatprep.mubr.msk.bf16.mxu0 %vm918_vm4, %v5131_v23 }
0x136a   : > { %v5106_v13 = vmul.f32 0.5, %v5090_v40  ;;  %6095 = vmatmul.mubr.msk.bf16.vlgmr.msra.gmra.mrb[80].mxu0 %vm918_vm4, %v5132_v55  ;;  %v5121_v51 = vmul.f32 %v5105_v37, %v9458_v42 }
0x136b   : > { %v5104_v25 = vmul.f32 0.5, %v5088_v43  ;;  %v5119_v39 = vmul.f32 %v5103_v52, %v9462_v5 }
0x136c   : > { %v5122_v36 = vmul.f32 %v5106_v13, %v9468_v6 }
0x136d   : > { %v5120_v59 = vmul.f32 %v5104_v25, %v9474_v11 }
0x136e   : > { %v5134_v38 = vpack.c.bf16 %v5122_v36, %v5121_v51 }
0x136f   : > { %v5133_v10 = vpack.c.bf16 %v5120_v59, %v5119_v39 }
0x1371   : > { %6098 = vmatprep.mubr.msk.bf16.mxu0 %vm918_vm4, %v5133_v10 }
0x1372   : > { %6099 = vmatmul.mubr.msk.bf16.gmra.mrb[84].mxu0 %vm918_vm4, %v5134_v38 }
0x13cb   : > { %v6080_v63 = vpop.f32.mrb[88].mxu1 }
0x13cc   : > { %v9501_v17 = vadd.f32 %v6080_v63, %v9430_v47  ;;  %v4956_v30 = vpop.f32.mrb[89].mxu1 }
0x13cd   : > { %v9504_v56 = vadd.f32 %v9430_v47, %v4956_v30  ;;  %v6081_v42 = vpop.f32.mrb[90].mxu1 }
0x13ce   : > { %v4997_v5 = vmul.f32 %v9501_v17, %v9501_v17  ;;  %v9509_v6 = vadd.f32 %v6081_v42, %v9430_v47  ;;  %v4959_v11 = vpop.f32.mrb[91].mxu1 }
0x13cf   : > { %v4995_v31 = vmul.f32 %v9504_v56, %v9504_v56  ;;  %v9514_v57 = vadd.f32 %v9430_v47, %v4959_v11 }
0x13d0   : > { %v5013_v20 = vmul.f32 %v4997_v5, %v9501_v17  ;;  %v4998_v28 = vmul.f32 %v9509_v6, %v9509_v6 }
0x13d1   : > { %v5011_v62 = vmul.f32 %v4995_v31, %v9504_v56  ;;  %v4996_v54 = vmul.f32 %v9514_v57, %v9514_v57 }
0x13d2   : > { %v5029_v44 = vmul.f32 0.044715, %v5013_v20  ;;  %v5014_v9 = vmul.f32 %v4998_v28, %v9509_v6 }
0x13d3   : > { %v5027_v53 = vmul.f32 0.044715, %v5011_v62  ;;  %v5012_v7 = vmul.f32 %v4996_v54, %v9514_v57  ;;  %v6084_v22 = vpop.f32.mrb[92].mxu1 }
0x13d4   : > { %v5045_v0 = vadd.f32 %v5029_v44, %v9501_v17  ;;  %v5030_v34 = vmul.f32 0.044715, %v5014_v9  ;;  %v9526_v24 = vadd.f32 %v6084_v22, %v9430_v47  ;;  %v4972_v46 = vpop.f32.mrb[93].mxu1 }
0x13d5   : > { %v5043_v8 = vadd.f32 %v5027_v53, %v9504_v56  ;;  %v5028_v15 = vmul.f32 0.044715, %v5012_v7  ;;  %v9530_v60 = vadd.f32 %v9430_v47, %v4972_v46  ;;  %v6085_v2 = vpop.f32.mrb[94].mxu1 }
0x13d6   : > { %v5061_v61 = vmul.f32 0.7978846, %v5045_v0  ;;  %v5046_v55 = vadd.f32 %v5030_v34, %v9509_v6  ;;  %v5001_v1 = vmul.f32 %v9526_v24, %v9526_v24  ;;  %v9536_v41 = vadd.f32 %v6085_v2, %v9430_v47  ;;  %v4975_v3 = vpop.f32.mrb[95].mxu1 }
0x13d7   : > { %v5059_v23 = vmul.f32 0.7978846, %v5043_v8  ;;  %v5044_v14 = vadd.f32 %v5028_v15, %v9514_v57  ;;  %v4999_v37 = vmul.f32 %v9530_v60, %v9530_v60  ;;  %v9542_v40 = vadd.f32 %v9430_v47, %v4975_v3 }
0x13d8   : > { %6639 = vtanh.f32 %v5061_v61  ;;  %v5062_v52 = vmul.f32 0.7978846, %v5046_v55  ;;  %v5017_v43 = vmul.f32 %v5001_v1, %v9526_v24  ;;  %v5002_v13 = vmul.f32 %v9536_v41, %v9536_v41 }
0x13d9   : > { %6641 = vtanh.f32 %v5059_v23  ;;  %v5060_v25 = vmul.f32 0.7978846, %v5044_v14  ;;  %v5015_v51 = vmul.f32 %v4999_v37, %v9530_v60  ;;  %v5000_v36 = vmul.f32 %v9542_v40, %v9542_v40 }
0x13da   : > { %6643 = vtanh.f32 %v5062_v52  ;;  %v5033_v39 = vmul.f32 0.044715, %v5017_v43  ;;  %v5018_v59 = vmul.f32 %v5002_v13, %v9536_v41 }
0x13db   : > { %6645 = vtanh.f32 %v5060_v25  ;;  %v5031_v47 = vmul.f32 0.044715, %v5015_v51  ;;  %v5016_v38 = vmul.f32 %v5000_v36, %v9542_v40 }
0x13dc   : > { %v5049_v10 = vadd.f32 %v5033_v39, %v9526_v24  ;;  %v5034_v63 = vmul.f32 0.044715, %v5018_v59 }
0x13dd   : > { %v5047_v30 = vadd.f32 %v5031_v47, %v9530_v60  ;;  %v5032_v42 = vmul.f32 0.044715, %v5016_v38 }
0x13de   : > { %v5065_v5 = vmul.f32 0.7978846, %v5049_v10  ;;  %v5050_v11 = vadd.f32 %v5034_v63, %v9536_v41 }
0x13df   : > { %v5063_v31 = vmul.f32 0.7978846, %v5047_v30  ;;  %v5048_v20 = vadd.f32 %v5032_v42, %v9542_v40  ;;  %v6672_v42 = vld [vmem:[%s6791_s17] sm:$0x3f] }
0x13e0   : > { %6647 = vtanh.f32 %v5065_v5  ;;  %v5066_v28 = vmul.f32 0.7978846, %v5050_v11  ;;  %v9797_v5 = vsub.s32 5, %v9795_v35 }
0x13e1   : > { %6649 = vtanh.f32 %v5063_v31  ;;  %v5064_v62 = vmul.f32 0.7978846, %v5048_v20 }
0x13e2   : > { %v6640_v54 = vpop.eup %6639  ;;  %6651 = vtanh.f32 %v5066_v28  ;;  %v5150_v11 = vrot.slane %v6672_v42, %v9797_v5 }
0x13e3   : > { %v6642_v44 = vpop.eup %6641  ;;  %v5093_v9 = vadd.f32 1.0, %v6640_v54  ;;  %6653 = vtanh.f32 %v5064_v62 }
0x13e4   : > { %v6644_v53 = vpop.eup %6643  ;;  %v5091_v7 = vadd.f32 1.0, %v6642_v44 }
0x13e5   : > { %v6646_v22 = vpop.eup %6645  ;;  %v5109_v0 = vmul.f32 0.5, %v5093_v9  ;;  %v5094_v34 = vadd.f32 1.0, %v6644_v53 }
0x13e6   : > { %v5107_v46 = vmul.f32 0.5, %v5091_v7  ;;  %v5092_v8 = vadd.f32 1.0, %v6646_v22 }
0x13e7   : > { %v5110_v15 = vmul.f32 0.5, %v5094_v34  ;;  %v5125_v61 = vmul.f32 %v5109_v0, %v9501_v17 }
0x13e8   : > { %v5108_v2 = vmul.f32 0.5, %v5092_v8  ;;  %v5123_v3 = vmul.f32 %v5107_v46, %v9504_v56 }
0x13e9   : > { %v5126_v55 = vmul.f32 %v5110_v15, %v9509_v6 }
0x13ea   : > { %v6648_v1 = vpop.eup %6647  ;;  %v5124_v23 = vmul.f32 %v5108_v2, %v9514_v57 }
0x13eb   : > { %v6650_v14 = vpop.eup %6649  ;;  %v5097_v37 = vadd.f32 1.0, %v6648_v1  ;;  %v5136_v52 = vpack.c.bf16 %v5126_v55, %v5125_v61 }
0x13ec   : > { %v6652_v43 = vpop.eup %6651  ;;  %v5095_v13 = vadd.f32 1.0, %v6650_v14  ;;  %v5135_v25 = vpack.c.bf16 %v5124_v23, %v5123_v3 }
0x13ed   : > { %v6654_v51 = vpop.eup %6653  ;;  %v5113_v36 = vmul.f32 0.5, %v5097_v37  ;;  %v5098_v39 = vadd.f32 1.0, %v6652_v43 }
0x13ee   : > { %v5111_v59 = vmul.f32 0.5, %v5095_v13  ;;  %v5096_v47 = vadd.f32 1.0, %v6654_v51  ;;  %6102 = vmatprep.mubr.msk.bf16.mxu0 %vm918_vm4, %v5135_v25 }
0x13ef   : > { %v5114_v17 = vmul.f32 0.5, %v5098_v39  ;;  %6103 = vmatmul.mubr.msk.bf16.gmra.mrb[88].mxu0 %vm918_vm4, %v5136_v52  ;;  %v5129_v6 = vmul.f32 %v5113_v36, %v9526_v24 }
0x13f0   : > { %v5112_v56 = vmul.f32 0.5, %v5096_v47  ;;  %v5127_v38 = vmul.f32 %v5111_v59, %v9530_v60 }
0x13f1   : > { %v5130_v57 = vmul.f32 %v5114_v17, %v9536_v41 }
0x13f2   : > { %v5128_v10 = vmul.f32 %v5112_v56, %v9542_v40 }
0x13f3   : > { %v5138_v63 = vpack.c.bf16 %v5130_v57, %v5129_v6 }
0x13f4   : > { %v5137_v30 = vpack.c.bf16 %v5128_v10, %v5127_v38 }
0x13f6   : > { %6106 = vmatprep.mubr.msk.bf16.mxu0 %vm918_vm4, %v5137_v30 }
0x13f7   : > { %6107 = vmatmul.mubr.msk.bf16.gmra.mrb[92].mxu0 %vm918_vm4, %v5138_v63 }
0x143d   : > { %v6096_v31 = vpop.f32.mrb[80].mxu0 }
0x143e   : > { %v5242_v20 = vadd.f32 %v6096_v31, %v5150_v11  ;;  %v5233_v28 = vpop.f32.mrb[81].mxu0 }
0x143f   : > { %v5234_v24 = vadd.f32 %v5233_v28, %v5150_v11  ;;  %v6097_v62 = vpop.f32.mrb[82].mxu0 }
0x1440   : > { %v9572_v41 = vadd.f32 %v5242_v20, %v9183_v12  ;;  %v5245_v60 = vadd.f32 %v6097_v62, %v5150_v11  ;;  %v5236_v40 = vpop.f32.mrb[83].mxu0 }
0x1441   : > { %v5296_v54 = vadd.f32 %v5234_v24, %v9180_v21  ;;  %v5237_v44 = vadd.f32 %v5236_v40, %v5150_v11 }
0x1442   : > { %5314 = vst.msk [vmem:[#allocation2 + $0x10] sm:$0xff] %vm540_vm3, %v9572_v41  ;;  %v5299_v9 = vadd.f32 %v5245_v60, %v9192_v48  ;;  %5334 = vst.msk [vmem:[%s9684_s9 + $0x10] sm:$0xff] (!%p5581_p5), %vm540_vm3, %v9572_v41 }
0x1443   : > { %5312 = vst.msk [vmem:[#allocation2] sm:$0xff] %vm540_vm3, %v5296_v54  ;;  %v5297_v35 = vadd.f32 %v5237_v44, %v9186_v18  ;;  %5332 = vst.msk [vmem:[%s9684_s9] sm:$0xff] (!%p5581_p5), %vm540_vm3, %v5296_v54 }
0x1444   : > { %5315 = vst.msk [vmem:[#allocation2 + $0x18] sm:$0xff] %vm540_vm3, %v5299_v9  ;;  %5335 = vst.msk [vmem:[%s9684_s9 + $0x18] sm:$0xff] (!%p5581_p5), %vm540_vm3, %v5299_v9 }
0x1445   : > { %5313 = vst.msk [vmem:[#allocation2 + $0x8] sm:$0xff] %vm540_vm3, %v5297_v35  ;;  %v6100_v12 = vpop.f32.mrb[84].mxu0  ;;  %5333 = vst.msk [vmem:[%s9684_s9 + $0x8] sm:$0xff] (!%p5581_p5), %vm540_vm3, %v5297_v35 }
0x1446   : > { %v5258_v53 = vadd.f32 %v6100_v12, %v5150_v11  ;;  %v5249_v7 = vpop.f32.mrb[85].mxu0 }
0x1447   : > { %v5250_v22 = vadd.f32 %v5249_v7, %v5150_v11  ;;  %v6101_v0 = vpop.f32.mrb[86].mxu0 }
0x1448   : > { %v5302_v21 = vadd.f32 %v5258_v53, %v9204_v32  ;;  %v5261_v34 = vadd.f32 %v6101_v0, %v5150_v11  ;;  %v5252_v46 = vpop.f32.mrb[87].mxu0 }
0x1449   : > { %v5300_v8 = vadd.f32 %v5250_v22, %v9200_v33  ;;  %v5253_v48 = vadd.f32 %v5252_v46, %v5150_v11 }
0x144a   : > { %5318 = vst.msk [vmem:[#allocation2 + $0x30] sm:$0xff] %vm540_vm3, %v5302_v21  ;;  %v5303_v18 = vadd.f32 %v5261_v34, %v9210_v16  ;;  %5338 = vst.msk [vmem:[%s9684_s9 + $0x30] sm:$0xff] (!%p5581_p5), %vm540_vm3, %v5302_v21 }
0x144b   : > { %5316 = vst.msk [vmem:[#allocation2 + $0x20] sm:$0xff] %vm540_vm3, %v5300_v8  ;;  %v5301_v15 = vadd.f32 %v5253_v48, %v9206_v49  ;;  %5336 = vst.msk [vmem:[%s9684_s9 + $0x20] sm:$0xff] (!%p5581_p5), %vm540_vm3, %v5300_v8 }
0x144c   : > { %5319 = vst.msk [vmem:[#allocation2 + $0x38] sm:$0xff] %vm540_vm3, %v5303_v18  ;;  %5339 = vst.msk [vmem:[%s9684_s9 + $0x38] sm:$0xff] (!%p5581_p5), %vm540_vm3, %v5303_v18 }
0x144d   : > { %5317 = vst.msk [vmem:[#allocation2 + $0x28] sm:$0xff] %vm540_vm3, %v5301_v15  ;;  %5337 = vst.msk [vmem:[%s9684_s9 + $0x28] sm:$0xff] (!%p5581_p5), %vm540_vm3, %v5301_v15 }
0x14c2   : > { %v6104_v2 = vpop.f32.mrb[88].mxu0 }
0x14c3   : > { %v5274_v61 = vadd.f32 %v6104_v2, %v5150_v11  ;;  %v5265_v32 = vpop.f32.mrb[89].mxu0 }
0x14c4   : > { %v5266_v55 = vadd.f32 %v5265_v32, %v5150_v11  ;;  %v6105_v1 = vpop.f32.mrb[90].mxu0 }
0x14c5   : > { %v5306_v33 = vadd.f32 %v5274_v61, %v9224_v58  ;;  %v5277_v3 = vadd.f32 %v6105_v1, %v5150_v11  ;;  %v5268_v23 = vpop.f32.mrb[91].mxu0 }
0x14c6   : > { %v5304_v14 = vadd.f32 %v5266_v55, %v9220_v50  ;;  %v5269_v16 = vadd.f32 %v5268_v23, %v5150_v11 }
0x14c7   : > { %5322 = vst.msk [vmem:[#allocation2 + $0x50] sm:$0xff] %vm540_vm3, %v5306_v33  ;;  %v5307_v49 = vadd.f32 %v5277_v3, %v9230_v45  ;;  %5342 = vst.msk [vmem:[%s9684_s9 + $0x50] sm:$0xff] (!%p5581_p5), %vm540_vm3, %v5306_v33 }
0x14c8   : > { %5320 = vst.msk [vmem:[#allocation2 + $0x40] sm:$0xff] %vm540_vm3, %v5304_v14  ;;  %v5305_v37 = vadd.f32 %v5269_v16, %v9226_v29  ;;  %5340 = vst.msk [vmem:[%s9684_s9 + $0x40] sm:$0xff] (!%p5581_p5), %vm540_vm3, %v5304_v14 }
0x14c9   : > { %5323 = vst.msk [vmem:[#allocation2 + $0x58] sm:$0xff] %vm540_vm3, %v5307_v49  ;;  %5343 = vst.msk [vmem:[%s9684_s9 + $0x58] sm:$0xff] (!%p5581_p5), %vm540_vm3, %v5307_v49 }
0x14ca   : > { %5321 = vst.msk [vmem:[#allocation2 + $0x48] sm:$0xff] %vm540_vm3, %v5305_v37  ;;  %v6108_v52 = vpop.f32.mrb[92].mxu0  ;;  %5341 = vst.msk [vmem:[%s9684_s9 + $0x48] sm:$0xff] (!%p5581_p5), %vm540_vm3, %v5305_v37 }
0x14cb   : > { %v5290_v43 = vadd.f32 %v6108_v52, %v5150_v11  ;;  %v5281_v58 = vpop.f32.mrb[93].mxu0 }
0x14cc   : > { %v5282_v13 = vadd.f32 %v5281_v58, %v5150_v11  ;;  %v6109_v25 = vpop.f32.mrb[94].mxu0  ;;  %5331 = sbr.rel (%p5581_p5) target bundleno = 5331 (0x14d3), region = 64 }
0x14cd   : > { %v5310_v50 = vadd.f32 %v5290_v43, %v9247_v26  ;;  %v5293_v51 = vadd.f32 %v6109_v25, %v5150_v11  ;;  %v5284_v36 = vpop.f32.mrb[95].mxu0 }
0x14ce   : > { %v5308_v39 = vadd.f32 %v5282_v13, %v9238_v19  ;;  %v5285_v45 = vadd.f32 %v5284_v36, %v5150_v11 }
0x14cf   : > { %5326 = vst.msk [vmem:[#allocation2 + $0x70] sm:$0xff] %vm540_vm3, %v5310_v50  ;;  %v5311_v29 = vadd.f32 %v5293_v51, %v9256_v27  ;;  %5346 = vst.msk [vmem:[%s9684_s9 + $0x70] sm:$0xff] (!%p5581_p5), %vm540_vm3, %v5310_v50 }
0x14d0   : > { %5324 = vst.msk [vmem:[#allocation2 + $0x60] sm:$0xff] %vm540_vm3, %v5308_v39  ;;  %v5309_v59 = vadd.f32 %v5285_v45, %v9249_v4  ;;  %5344 = vst.msk [vmem:[%s9684_s9 + $0x60] sm:$0xff] (!%p5581_p5), %vm540_vm3, %v5308_v39 }
0x14d1   : > { %5327 = vst.msk [vmem:[#allocation2 + $0x78] sm:$0xff] %vm540_vm3, %v5311_v29  ;;  %5347 = vst.msk [vmem:[%s9684_s9 + $0x78] sm:$0xff] (!%p5581_p5), %vm540_vm3, %v5311_v29 }
0x14d2   : > { %5325 = vst.msk [vmem:[#allocation2 + $0x68] sm:$0xff] %vm540_vm3, %v5309_v59  ;;  %5345 = vst.msk [vmem:[%s9684_s9 + $0x68] sm:$0xff] (!%p5581_p5), %vm540_vm3, %v5309_v59 }
0x14d3 PF: > { %s19_s30 = sadd.s32 1, %s6679_s30  }
0x14d4   : > { %p16_p6 = scmp.ge.s32.totalorder %s19_s30, 4  }
0x14d6   :  { %18 = sbr.rel (!%p16_p6) target bundleno = 1 (0x1), region = 113 }

</bundles_post_ra>
